<compile_context>
chip_gen: v6e
topology: v6e:2x2x1
jax: 0.10.0
libtpu: 0.0.40
codegen_flags: <defaults>
</compile_context>

<pallas_src>
import numpy as np
import jax
import jax.numpy as jnp
from jax import lax
from jax.experimental import pallas as pl
from jax.experimental.pallas import tpu as pltpu

# ----------------------------- configuration (small) -----------------------------------
SEARCH_SPACE = ('none', 'skip_connect', 'nor_conv_1x1', 'nor_conv_3x3', 'avg_pool_3x3')
C = 8            # stem channels
N_LAYER = 1      # cells per stage
MAX_NODES = 4
NUM_CLASSES = 10
TAU = 10.0
BN_EPS = 1e-5
LANES = 128      # every internal activation is a lane-dense [M, W*C] tile with W*C == 128
_MM_DTYPE = jnp.bfloat16   # MXU operand dtype (accumulation stays f32); float32 => exact numerics

EDGE2INDEX = {}
for _i in range(1, MAX_NODES):
    for _j in range(_i):
        EDGE2INDEX[f"{_i}<-{_j}"] = len(EDGE2INDEX)
NUM_EDGE = len(EDGE2INDEX)
NUM_OPS = len(SEARCH_SPACE)


# --------------------- host-side weight packing helpers (run under jit) -----------------
class _Packer:
    """Stacks [rows, 128] blocks into one array; returns 8-row-aligned static offsets."""

    def __init__(self):
        self.mats = []
        self.rows = 0

    def add(self, mat):
        mat = mat.astype(jnp.float32)
        assert mat.ndim == 2 and mat.shape[1] == LANES
        off = self.rows
        self.mats.append(mat)
        self.rows += mat.shape[0]
        pad = (-self.rows) % 8
        if pad:
            self.mats.append(jnp.zeros((pad, LANES), jnp.float32))
            self.rows += pad
        return off

    def pack(self):
        return jnp.concatenate(self.mats, axis=0)


def _w_shift_selector(w_in, w_out, stride, offset):
    """0/1 matrix S with S[wi, wo] = 1 iff wi == stride*wo + offset (W-direction conv tap)."""
    s = np.zeros((w_in, w_out), np.float32)
    for wo in range(w_out):
        wi = stride * wo + offset
        if 0 <= wi < w_in:
            s[wi, wo] = 1.0
    return jnp.asarray(s)


def _expand_conv(w, w_in, w_out, stride, pad, col_scale=None, cin_pad=None):
    """[kh,kw,Cin,Cout] conv kernel -> kh stacked [w_in*Cin, w_out*Cout] block matrices.

    Acting on a lane-dense [M, w_in*Cin] activation, `x @ block[dy]` applies all kw taps of
    kernel row dy (W padding / W stride folded into the 0/1 shift selectors, BN scale folded
    into output channels).  The H direction is handled in-kernel by rolls / selectors.
    """
    kh, kw, cin, cout = w.shape
    if col_scale is not None:
        w = w * col_scale                      # fold BatchNorm scale into the weights
    if cin_pad is not None and cin_pad > cin:
        w = jnp.pad(w, ((0, 0), (0, 0), (0, cin_pad - cin), (0, 0)))
        cin = cin_pad
    blocks = []
    for dy in range(kh):
        acc = jnp.zeros((w_in * cin, w_out * cout), jnp.float32)
        for dx in range(kw):
            acc = acc + jnp.kron(_w_shift_selector(w_in, w_out, stride, dx - pad), w[dy, dx])
        blocks.append(acc)
    return jnp.concatenate(blocks, axis=0)


def _pool_kernel(c):
    w = np.zeros((3, 3, c, c), np.float32)
    for i in range(c):
        w[:, :, i, i] = 1.0
    return jnp.asarray(w)


def _inv_count_map(h, w, c):
    """AvgPool2d(3,1,1,count_include_pad=False): per-pixel 1/valid-count, tiled over channels."""
    cnt = np.zeros((h, w), np.float32)
    for y in range(h):
        for x in range(w):
            cnt[y, x] = ((min(y + 1, h - 1) - max(y - 1, 0) + 1) *
                         (min(x + 1, w - 1) - max(x - 1, 0) + 1))
    return jnp.asarray(np.repeat(1.0 / cnt, c, axis=1))          # [h, w*c]


def _tile_row(vec_c, w):
    return jnp.tile(vec_c, (w,))[None, :]                        # [1, w*C] (channel minor)


def _images_per_step(batch):
    """How many images to pack into the sublane (M) dim per grid step.

    v5e/v6e have one TensorCore: pack the whole batch into M (grid=(1,)).
    v7x/v4 have multiple TensorCores: one image per grid step so the 'parallel'
    grid axis shards images across cores.  Detection failure only affects perf."""
    if batch <= 1:
        return 1
    try:
        dev = jax.devices()[0]
        kind = str(getattr(dev, 'device_kind', '')).lower()
        cores = int(getattr(dev, 'num_cores', 1) or 1)
    except Exception:
        kind, cores = '', 1
    multi_tc = cores > 1 or ('v7' in kind) or ('7x' in kind) or ('v4' in kind)
    return 1 if multi_tc else batch


# ----------------------------- fused forward builder -------------------------------------
def build_forward(index_sel):
    """index_sel: per-edge argmax op ids (python ints, like index.item() in torch)."""
    index_sel = tuple(int(i) for i in index_sel)
    layer_channels = [C] * N_LAYER + [C * 2] + [C * 2] * N_LAYER + [C * 4] + [C * 4] * N_LAYER
    layer_reductions = [False] * N_LAYER + [True] + [False] * N_LAYER + [True] + [False] * N_LAYER

    def forward(x_nchw, params, hardwts):
        n, cin, hin, win = x_nchw.shape
        assert (cin, hin, win) == (3, 16, 16)
        g = _images_per_step(n)          # images packed into M per grid step
        assert n % g == 0
        steps = n // g
        wp, vp = _Packer(), _Packer()

        def reg_spatial(expanded, h_in, h_out, stride, offs):
            assert expanded.shape == (len(offs) * LANES, LANES)
            return dict(w_off=wp.add(expanded), offs=tuple(offs),
                        h_in=h_in, h_out=h_out, stride=stride)

        # straight-through hardwts -> per-edge (selected, sum-of-others) broadcast rows
        edge_ab = []
        for e in range(NUM_EDGE):
            a = hardwts[e, index_sel[e]]
            b = jnp.sum(hardwts[e]) - a
            edge_ab.append((vp.add(jnp.broadcast_to(a, (1, LANES))),
                            vp.add(jnp.broadcast_to(b, (1, LANES)))))

        # stem: Conv3x3(3->C, pad 1, bias=False) + BN   (input channels zero-padded 3 -> 8)
        s_scale, s_shift = params['stem_bn']
        stem = reg_spatial(_expand_conv(params['stem_w'], 16, 16, 1, 1,
                                        col_scale=s_scale, cin_pad=LANES // 16),
                           16, 16, 1, (-1, 0, 1))
        stem_shift = vp.add(_tile_row(s_shift, 16))

        pool_cache = {}

        def get_pool(hw_, ch):
            if hw_ not in pool_cache:
                pool_cache[hw_] = (
                    reg_spatial(_expand_conv(_pool_kernel(ch), hw_, hw_, 1, 1),
                                hw_, hw_, 1, (-1, 0, 1)),
                    vp.add(jnp.tile(_inv_count_map(hw_, hw_, ch), (g, 1))))
            return pool_cache[hw_]

        cells_desc = []
        c_prev, hw = C, 16
        for cell_p, c_curr, reduction in zip(params['cells'], layer_channels, layer_reductions):
            if reduction:          # ResNetBasicblock(c_prev -> c_curr, stride 2)
                h_in, h_out = hw, hw // 2
                sa, ba = cell_p['bn_a']
                sb, bb = cell_p['bn_b']
                conv_a = reg_spatial(_expand_conv(cell_p['conv_a_w'], h_in, h_out, 2, 1, col_scale=sa),
                                     h_in, h_out, 2, (-1, 0, 1))
                conv_b = reg_spatial(_expand_conv(cell_p['conv_b_w'], h_out, h_out, 1, 1, col_scale=sb),
                                     h_out, h_out, 1, (-1, 0, 1))
                # downsample = AvgPool2d(2,2) + Conv1x1 == 2x2/stride-2 conv with 0.25*W taps
                down_k = jnp.broadcast_to(0.25 * cell_p['down_w'], (2, 2) + cell_p['down_w'].shape)
                down = reg_spatial(_expand_conv(down_k, h_in, h_out, 2, 0), h_in, h_out, 2, (0, 1))
                cells_desc.append(dict(kind='res', conv_a=conv_a, conv_b=conv_b, down=down,
                                       shift_a=vp.add(_tile_row(ba, h_out)),
                                       shift_b=vp.add(_tile_row(bb, h_out))))
                hw = h_out
            else:                  # SearchCell.forward_gdas: only the argmax op per edge runs
                bn_s, bn_b = cell_p['bn']
                edges = {}
                for i in range(1, MAX_NODES):
                    for j in range(i):
                        ns = f"{i}<-{j}"
                        e = EDGE2INDEX[ns]
                        op = SEARCH_SPACE[index_sel[e]]
                        ed = dict(op=op, ab=edge_ab[e])
                        if op == 'nor_conv_3x3':
                            ed['conv'] = reg_spatial(
                                _expand_conv(cell_p['edges'][ns]['conv3x3_w'], hw, hw, 1, 1,
                                             col_scale=bn_s), hw, hw, 1, (-1, 0, 1))
                            ed['shift'] = vp.add(_tile_row(bn_b, hw))
                        elif op == 'nor_conv_1x1':
                            ed['conv'] = reg_spatial(
                                _expand_conv(cell_p['edges'][ns]['conv1x1_w'], hw, hw, 1, 0,
                                             col_scale=bn_s), hw, hw, 1, (0,))
                            ed['shift'] = vp.add(_tile_row(bn_b, hw))
                        elif op == 'avg_pool_3x3':
                            ed['conv'], ed['cnt'] = get_pool(hw, c_curr)
                        edges[(i, j)] = ed
                cells_desc.append(dict(kind='search', h=hw, edges=edges))
            c_prev = c_curr

        # head: BN + ReLU + global average pool + Linear  (pool & Linear folded into one matmul)
        l_scale, l_shift = params['last_bn']
        head_scale = vp.add(_tile_row(l_scale, hw))
        head_shift = vp.add(_tile_row(l_shift, hw))
        head_bias = vp.add(jnp.pad(params['cls_b'][None, :], ((0, 0), (0, LANES - NUM_CLASSES))))
        head_w = jnp.kron(jnp.ones((hw, 1), jnp.float32), params['cls_w']) / float(hw * hw)
        head_mat = wp.add(jnp.pad(head_w, ((0, 0), (0, LANES - NUM_CLASSES))))
        hw_final = hw

        w_all = wp.pack().astype(_MM_DTYPE)     # MXU operands in bf16 (halves weight DMA too)
        v_all = vp.pack()                       # per-row vectors stay f32 (VPU adds/muls)

        # input NCHW -> lane-dense [N*16, 128] (channels zero-padded 3 -> 8, channel minor)
        xt = jnp.transpose(x_nchw.astype(jnp.float32), (0, 2, 3, 1))
        xt = jnp.pad(xt, ((0, 0), (0, 0), (0, 0), (0, LANES // 16 - 3)))
        x_in = xt.reshape(n * 16, LANES)

        # ----------------------------- the fused Pallas kernel ------------------------------
        def kernel(x_ref, w_ref, v_ref, o_ref):
            cache = {}   # trace-time constant cache (JAX does not CSE broadcast_in_dim)

            def const(key, build):
                if key not in cache:
                    cache[key] = build()
                return cache[key]

            def mm(a, b):
                return jnp.dot(a.astype(_MM_DTYPE), b.astype(_MM_DTYPE),
                               preferred_element_type=jnp.float32)

            def vrow(off, rows=1):
                return v_ref[off:off + rows, :]

            def tap_mask(h, off):
                # [g*h, 1] mask zeroing per-image boundary rows the roll wrapped around (|off|==1)
                def build():
                    m = g * h
                    r = lax.broadcasted_iota(jnp.int32, (m, 1), 0)
                    bad_row = 0 if off < 0 else h - 1
                    bad = (r == bad_row)
                    for img in range(1, g):
                        bad = jnp.logical_or(bad, r == img * h + bad_row)
                    return jnp.logical_not(bad).astype(jnp.float32)
                return const(('mask', h, off), build)

            def shift_seg(x, h, off):
                # seg[r] = x[r + off] within each image, rows outside the image zeroed.
                if off == 0:
                    return x
                m = g * h
                if m % 8 == 0:   # whole-sublane tiles: XLU roll + VPU mask (no MXU work)
                    return pltpu.roll(x, (-off) % m, axis=0) * tap_mask(h, off)
                # tiny 4-row tile (last cell, unpacked batch): 0/1 selector matmul instead
                assert g == 1

                def build():
                    r = lax.broadcasted_iota(jnp.int32, (m, m), 0)
                    c_ = lax.broadcasted_iota(jnp.int32, (m, m), 1)
                    return (c_ == r + off).astype(_MM_DTYPE)
                return mm(const(('shift_sel', m, off), build), x)

            def stride2_rows(h_out, h_in):
                # even-row subsampler; per-image correct because h_in == 2 * h_out exactly.
                def build():
                    r = lax.broadcasted_iota(jnp.int32, (g * h_out, g * h_in), 0)
                    c_ = lax.broadcasted_iota(jnp.int32, (g * h_out, g * h_in), 1)
                    return (c_ == 2 * r).astype(_MM_DTYPE)
                return const(('sub2', h_out, h_in), build)

            def spatial(x, d):
                # Fuse all kernel-row taps into one [M, K*128] x [K*128, 128] MXU matmul.
                segs = [shift_seg(x, d['h_in'], off) for off in d['offs']]
                xcat = segs[0] if len(segs) == 1 else jnp.concatenate(segs, axis=1)
                out = mm(xcat, w_ref[d['w_off']:d['w_off'] + len(d['offs']) * LANES, :])
                if d['stride'] == 2:
                    out = mm(stride2_rows(d['h_out'], d['h_in']), out)
                return out

            feat = spatial(x_ref[...], stem) + vrow(stem_shift)

            for cd in cells_desc:
                if cd['kind'] == 'res':
                    a = spatial(jnp.maximum(feat, 0.0), cd['conv_a']) + vrow(cd['shift_a'])
                    bb = spatial(jnp.maximum(a, 0.0), cd['conv_b']) + vrow(cd['shift_b'])
                    feat = bb + spatial(feat, cd['down'])
                else:
                    h = cd['h']
                    nodes = [feat]
                    relu = {}                      # ReLU hoisted: once per source node
                    for i in range(1, MAX_NODES):
                        acc = None
                        for j in range(i):
                            ed = cd['edges'][(i, j)]
                            a_off, b_off = ed['ab']
                            if ed['op'] == 'none':
                                term = jnp.broadcast_to(vrow(b_off), (g * h, LANES))
                            else:
                                if ed['op'] == 'skip_connect':
                                    out = nodes[j]
                                elif ed['op'] == 'avg_pool_3x3':
                                    out = spatial(nodes[j], ed['conv']) * vrow(ed['cnt'], g * h)
                                else:   # nor_conv_1x1 / nor_conv_3x3  (ReLU -> conv -> BN)
                                    if j not in relu:
                                        relu[j] = jnp.maximum(nodes[j], 0.0)
                                    out = spatial(relu[j], ed['conv']) + vrow(ed['shift'])
                                term = out * vrow(a_off) + vrow(b_off)  # straight-through hardwts
                            acc = term if acc is None else acc + term
                        nodes.append(acc)
                    feat = nodes[MAX_NODES - 1]

            # head: BN + ReLU + per-image global average pool + Linear (pool folded into matmul)
            y = jnp.maximum(feat * vrow(head_scale) + vrow(head_shift), 0.0)
            if g == 1:
                pooled = jnp.sum(y, axis=0, keepdims=True)              # [1, 128]
            else:
                def build_pool_sel():
                    ii = lax.broadcasted_iota(jnp.int32, (g, g * hw_final), 0)
                    rr = lax.broadcasted_iota(jnp.int32, (g, g * hw_final), 1)
                    lo = ii * hw_final
                    return jnp.logical_and(rr >= lo, rr < lo + hw_final).astype(_MM_DTYPE)
                pooled = mm(const(('pool_sel',), build_pool_sel), y)    # [g, 128]
            logits = mm(pooled, w_ref[head_mat:head_mat + LANES, :]) + vrow(head_bias)
            o_ref[0] = logits                                           # lane-dense [g, 128] store

        out = pl.pallas_call(
            kernel,
            out_shape=jax.ShapeDtypeStruct((steps, g, LANES), jnp.float32),
            grid=(steps,),
            in_specs=[
                pl.BlockSpec((g * 16, LANES), lambda b: (b, 0)),
                pl.BlockSpec((w_all.shape[0], LANES), lambda b: (0, 0)),
                pl.BlockSpec((v_all.shape[0], LANES), lambda b: (0, 0)),
            ],
            out_specs=pl.BlockSpec((1, g, LANES), lambda b: (b, 0, 0)),
            compiler_params=pltpu.CompilerParams(
                dimension_semantics=("parallel",),
                vmem_limit_bytes=32 * 1024 * 1024,
            ),
        )(x_in, w_all, v_all)
        return out.reshape(n, LANES)[:, :NUM_CLASSES]

    return forward


# ----------------------------- deterministic parameter init -----------------------------
def init_params(key):
    keys = list(jax.random.split(key, 512))
    kidx = [0]

    def nk():
        k = keys[kidx[0]]
        kidx[0] += 1
        return k

    def conv_w(kh, kw, cin, cout):
        fan_in = kh * kw * cin
        return jax.random.normal(nk(), (kh, kw, cin, cout), jnp.float32) * np.sqrt(2.0 / fan_in)

    def bn_fold(c):
        # PyTorch-default BN init: gamma=1, beta=0, running_mean=0, running_var=1 (eval mode).
        gamma = jnp.ones((c,), jnp.float32)
        beta = jnp.zeros((c,), jnp.float32)
        mean = jnp.zeros((c,), jnp.float32)
        var = jnp.ones((c,), jnp.float32)
        scale = gamma / jnp.sqrt(var + BN_EPS)
        return scale, beta - mean * scale

    params = {'stem_w': conv_w(3, 3, 3, C), 'stem_bn': bn_fold(C)}
    layer_channels = [C] * N_LAYER + [C * 2] + [C * 2] * N_LAYER + [C * 4] + [C * 4] * N_LAYER
    layer_reductions = [False] * N_LAYER + [True] + [False] * N_LAYER + [True] + [False] * N_LAYER
    cells = []
    c_prev = C
    for c_curr, reduction in zip(layer_channels, layer_reductions):
        if reduction:
            cell = {
                'conv_a_w': conv_w(3, 3, c_prev, c_curr), 'bn_a': bn_fold(c_curr),
                'conv_b_w': conv_w(3, 3, c_curr, c_curr), 'bn_b': bn_fold(c_curr),
                'down_w': conv_w(1, 1, c_prev, c_curr).reshape(c_prev, c_curr),
            }
        else:
            edges = {}
            for i in range(1, MAX_NODES):
                for j in range(i):
                    edges[f"{i}<-{j}"] = {
                        'conv1x1_w': conv_w(1, 1, c_curr, c_curr),
                        'conv3x3_w': conv_w(3, 3, c_curr, c_curr),
                    }
            cell = {'edges': edges, 'bn': bn_fold(c_curr)}   # affine=False BN, shared fold
        cells.append(cell)
        c_prev = c_curr
    params['cells'] = cells
    params['last_bn'] = bn_fold(c_prev)
    params['cls_w'] = jax.random.normal(nk(), (c_prev, NUM_CLASSES), jnp.float32) * np.sqrt(1.0 / c_prev)
    params['cls_b'] = jnp.zeros((NUM_CLASSES,), jnp.float32)
    return params


# ----------------------------- main ------------------------------------------------------
if __name__ == "__main__":
    key = jax.random.PRNGKey(0)
    k_params, k_arch, k_gumbel, k_x = jax.random.split(key, 4)

    params = init_params(k_params)
    arch_parameters = 0.001 * jax.random.normal(k_arch, (NUM_EDGE, NUM_OPS), jnp.float32)

    # GDAS hard Gumbel-softmax sampling (tiny [num_edge, num_ops] tensor -> plain-JAX glue).
    gumbels = jax.random.gumbel(k_gumbel, arch_parameters.shape, jnp.float32)
    logits = (jax.nn.log_softmax(arch_parameters, axis=1) + gumbels) / TAU
    probs = jax.nn.softmax(logits, axis=1)
    index = jnp.argmax(probs, axis=1)
    one_h = jax.nn.one_hot(index, NUM_OPS, dtype=jnp.float32)
    hardwts = one_h - jax.lax.stop_gradient(probs) + probs     # straight-through (forward = one-hot)
    index_sel = tuple(int(i) for i in np.asarray(index))       # host ints, like index.item() in torch

    x = jax.random.normal(k_x, (2, 3, 16, 16), jnp.float32)    # NCHW input, like PyTorch

    fwd = jax.jit(build_forward(index_sel))
    logits_out = jax.block_until_ready(fwd(x, params, hardwts))
    assert logits_out.shape == (2, NUM_CLASSES) and bool(jnp.all(jnp.isfinite(logits_out)))
    print("KERNEL_OK")
</pallas_src>

<mosaic_0001>
module attributes {stable_mosaic.version = 11 : i64} {
  func.func @kernel(%arg0: i32, %arg1: memref<32x128xf32, #tpu.memory_space<vmem>>, %arg2: memref<5248x128xbf16, #tpu.memory_space<vmem>>, %arg3: memref<232x128xf32, #tpu.memory_space<vmem>>, %arg4: memref<1x2x128xf32, #tpu.memory_space<vmem>>) attributes {dimension_semantics = [#tpu.dimension_semantics<parallel>], iteration_bounds = array<i64: 1>, scalar_prefetch = 0 : i64, scratch_operands = 0 : i64, tpu.core_type = #tpu.core_type<tc>, window_params = [{transform_indices = @transform_0, window_bounds = array<i64: 32, 128>}, {pipeline_mode = #tpu.pipeline_mode<synchronous>, transform_indices = @transform_1, window_bounds = array<i64: 5248, 128>}, {pipeline_mode = #tpu.pipeline_mode<synchronous>, transform_indices = @transform_2, window_bounds = array<i64: 232, 128>}, {transform_indices = @transform_3, window_bounds = array<i64: 1, 2, 128>}]} {
    %c0 = arith.constant 0 : index
    %c0_0 = arith.constant 0 : index
    %0 = vector.load %arg1[%c0, %c0_0] : memref<32x128xf32, #tpu.memory_space<vmem>>, vector<32x128xf32>
    %c1_i32 = arith.constant 1 : i32
    %1 = tpu.dynamic_rotate %0 by %c1_i32 dim 0 : vector<32x128xf32>, i32 -> vector<32x128xf32>
    %2 = tpu.iota {dimensions = array<i32: 0>} : vector<32x1xi32>
    %c0_i32 = arith.constant 0 : i32
    %3 = vector.broadcast %c0_i32 : i32 to vector<32x1xi32>
    %4 = arith.cmpi eq, %2, %3 : vector<32x1xi32>
    %c16_i32 = arith.constant 16 : i32
    %5 = vector.broadcast %c16_i32 : i32 to vector<32x1xi32>
    %6 = arith.cmpi eq, %2, %5 : vector<32x1xi32>
    %7 = arith.ori %4, %6 : vector<32x1xi1>
    %cst = arith.constant dense<true> : vector<32x1xi1>
    %8 = arith.xori %7, %cst : vector<32x1xi1>
    %9 = arith.extui %8 : vector<32x1xi1> to vector<32x1xi32>
    %10 = arith.sitofp %9 : vector<32x1xi32> to vector<32x1xf32>
    %11 = vector.broadcast %10 : vector<32x1xf32> to vector<32x128xf32>
    %12 = arith.mulf %1, %11 : vector<32x128xf32>
    %c31_i32 = arith.constant 31 : i32
    %13 = tpu.dynamic_rotate %0 by %c31_i32 dim 0 : vector<32x128xf32>, i32 -> vector<32x128xf32>
    %14 = tpu.iota {dimensions = array<i32: 0>} : vector<32x1xi32>
    %c15_i32 = arith.constant 15 : i32
    %15 = vector.broadcast %c15_i32 : i32 to vector<32x1xi32>
    %16 = arith.cmpi eq, %14, %15 : vector<32x1xi32>
    %c31_i32_1 = arith.constant 31 : i32
    %17 = vector.broadcast %c31_i32_1 : i32 to vector<32x1xi32>
    %18 = arith.cmpi eq, %14, %17 : vector<32x1xi32>
    %19 = arith.ori %16, %18 : vector<32x1xi1>
    %cst_2 = arith.constant dense<true> : vector<32x1xi1>
    %20 = arith.xori %19, %cst_2 : vector<32x1xi1>
    %21 = arith.extui %20 : vector<32x1xi1> to vector<32x1xi32>
    %22 = arith.sitofp %21 : vector<32x1xi32> to vector<32x1xf32>
    %23 = vector.broadcast %22 : vector<32x1xf32> to vector<32x128xf32>
    %24 = arith.mulf %13, %23 : vector<32x128xf32>
    %25 = tpu.concatenate %12, %0, %24 in 1 : vector<32x128xf32>, vector<32x128xf32>, vector<32x128xf32> -> vector<32x384xf32>
    %c0_3 = arith.constant 0 : index
    %c0_4 = arith.constant 0 : index
    %26 = vector.load %arg2[%c0_3, %c0_4] : memref<5248x128xbf16, #tpu.memory_space<vmem>>, vector<384x128xbf16>
    %27 = arith.truncf %25 : vector<32x384xf32> to vector<32x384xbf16>
    %cst_5 = arith.constant dense<0.000000e+00> : vector<32x128xf32>
    %28 = tpu.matmul %27, %26, %cst_5 {dimension_numbers = #tpu.dot_dimension_numbers<[1], [0], [0], [1], [0, 0, 1, 1], [], []>} : vector<32x384xbf16>, vector<384x128xbf16>, vector<32x128xf32> -> vector<32x128xf32>
    %c96 = arith.constant 96 : index
    %c0_6 = arith.constant 0 : index
    %29 = vector.load %arg3[%c96, %c0_6] : memref<232x128xf32, #tpu.memory_space<vmem>>, vector<1x128xf32>
    %30 = vector.broadcast %29 : vector<1x128xf32> to vector<32x128xf32>
    %31 = arith.addf %28, %30 : vector<32x128xf32>
    %c0_7 = arith.constant 0 : index
    %c0_8 = arith.constant 0 : index
    %32 = vector.load %arg3[%c0_7, %c0_8] : memref<232x128xf32, #tpu.memory_space<vmem>>, vector<1x128xf32>
    %33 = vector.broadcast %32 : vector<1x128xf32> to vector<32x128xf32>
    %34 = arith.mulf %31, %33 : vector<32x128xf32>
    %c8 = arith.constant 8 : index
    %c0_9 = arith.constant 0 : index
    %35 = vector.load %arg3[%c8, %c0_9] : memref<232x128xf32, #tpu.memory_space<vmem>>, vector<1x128xf32>
    %36 = vector.broadcast %35 : vector<1x128xf32> to vector<32x128xf32>
    %37 = arith.addf %34, %36 : vector<32x128xf32>
    %c16 = arith.constant 16 : index
    %c0_10 = arith.constant 0 : index
    %38 = vector.load %arg3[%c16, %c0_10] : memref<232x128xf32, #tpu.memory_space<vmem>>, vector<1x128xf32>
    %39 = vector.broadcast %38 : vector<1x128xf32> to vector<32x128xf32>
    %40 = arith.mulf %31, %39 : vector<32x128xf32>
    %c24 = arith.constant 24 : index
    %c0_11 = arith.constant 0 : index
    %41 = vector.load %arg3[%c24, %c0_11] : memref<232x128xf32, #tpu.memory_space<vmem>>, vector<1x128xf32>
    %42 = vector.broadcast %41 : vector<1x128xf32> to vector<32x128xf32>
    %43 = arith.addf %40, %42 : vector<32x128xf32>
    %c32 = arith.constant 32 : index
    %c0_12 = arith.constant 0 : index
    %44 = vector.load %arg3[%c32, %c0_12] : memref<232x128xf32, #tpu.memory_space<vmem>>, vector<1x128xf32>
    %45 = vector.broadcast %44 : vector<1x128xf32> to vector<32x128xf32>
    %46 = arith.mulf %37, %45 : vector<32x128xf32>
    %c40 = arith.constant 40 : index
    %c0_13 = arith.constant 0 : index
    %47 = vector.load %arg3[%c40, %c0_13] : memref<232x128xf32, #tpu.memory_space<vmem>>, vector<1x128xf32>
    %48 = vector.broadcast %47 : vector<1x128xf32> to vector<32x128xf32>
    %49 = arith.addf %46, %48 : vector<32x128xf32>
    %50 = arith.addf %43, %49 : vector<32x128xf32>
    %cst_14 = arith.constant 0.000000e+00 : f32
    %51 = vector.broadcast %cst_14 : f32 to vector<32x128xf32>
    %52 = arith.maximumf %31, %51 : vector<32x128xf32>
    %c1_i32_15 = arith.constant 1 : i32
    %53 = tpu.dynamic_rotate %52 by %c1_i32_15 dim 0 : vector<32x128xf32>, i32 -> vector<32x128xf32>
    %54 = vector.broadcast %10 : vector<32x1xf32> to vector<32x128xf32>
    %55 = arith.mulf %53, %54 : vector<32x128xf32>
    %c31_i32_16 = arith.constant 31 : i32
    %56 = tpu.dynamic_rotate %52 by %c31_i32_16 dim 0 : vector<32x128xf32>, i32 -> vector<32x128xf32>
    %57 = vector.broadcast %22 : vector<32x1xf32> to vector<32x128xf32>
    %58 = arith.mulf %56, %57 : vector<32x128xf32>
    %59 = tpu.concatenate %55, %52, %58 in 1 : vector<32x128xf32>, vector<32x128xf32>, vector<32x128xf32> -> vector<32x384xf32>
    %c384 = arith.constant 384 : index
    %c0_17 = arith.constant 0 : index
    %60 = vector.load %arg2[%c384, %c0_17] : memref<5248x128xbf16, #tpu.memory_space<vmem>>, vector<384x128xbf16>
    %61 = arith.truncf %59 : vector<32x384xf32> to vector<32x384xbf16>
    %cst_18 = arith.constant dense<0.000000e+00> : vector<32x128xf32>
    %62 = tpu.matmul %61, %60, %cst_18 {dimension_numbers = #tpu.dot_dimension_numbers<[1], [0], [0], [1], [0, 0, 1, 1], [], []>} : vector<32x384xbf16>, vector<384x128xbf16>, vector<32x128xf32> -> vector<32x128xf32>
    %c104 = arith.constant 104 : index
    %c0_19 = arith.constant 0 : index
    %63 = vector.load %arg3[%c104, %c0_19] : memref<232x128xf32, #tpu.memory_space<vmem>>, vector<1x128xf32>
    %64 = vector.broadcast %63 : vector<1x128xf32> to vector<32x128xf32>
    %65 = arith.addf %62, %64 : vector<32x128xf32>
    %c48 = arith.constant 48 : index
    %c0_20 = arith.constant 0 : index
    %66 = vector.load %arg3[%c48, %c0_20] : memref<232x128xf32, #tpu.memory_space<vmem>>, vector<1x128xf32>
    %67 = vector.broadcast %66 : vector<1x128xf32> to vector<32x128xf32>
    %68 = arith.mulf %65, %67 : vector<32x128xf32>
    %c56 = arith.constant 56 : index
    %c0_21 = arith.constant 0 : index
    %69 = vector.load %arg3[%c56, %c0_21] : memref<232x128xf32, #tpu.memory_space<vmem>>, vector<1x128xf32>
    %70 = vector.broadcast %69 : vector<1x128xf32> to vector<32x128xf32>
    %71 = arith.addf %68, %70 : vector<32x128xf32>
    %cst_22 = arith.constant 0.000000e+00 : f32
    %72 = vector.broadcast %cst_22 : f32 to vector<32x128xf32>
    %73 = arith.maximumf %37, %72 : vector<32x128xf32>
    %c1_i32_23 = arith.constant 1 : i32
    %74 = tpu.dynamic_rotate %73 by %c1_i32_23 dim 0 : vector<32x128xf32>, i32 -> vector<32x128xf32>
    %75 = vector.broadcast %10 : vector<32x1xf32> to vector<32x128xf32>
    %76 = arith.mulf %74, %75 : vector<32x128xf32>
    %c31_i32_24 = arith.constant 31 : i32
    %77 = tpu.dynamic_rotate %73 by %c31_i32_24 dim 0 : vector<32x128xf32>, i32 -> vector<32x128xf32>
    %78 = vector.broadcast %22 : vector<32x1xf32> to vector<32x128xf32>
    %79 = arith.mulf %77, %78 : vector<32x128xf32>
    %80 = tpu.concatenate %76, %73, %79 in 1 : vector<32x128xf32>, vector<32x128xf32>, vector<32x128xf32> -> vector<32x384xf32>
    %c768 = arith.constant 768 : index
    %c0_25 = arith.constant 0 : index
    %81 = vector.load %arg2[%c768, %c0_25] : memref<5248x128xbf16, #tpu.memory_space<vmem>>, vector<384x128xbf16>
    %82 = arith.truncf %80 : vector<32x384xf32> to vector<32x384xbf16>
    %cst_26 = arith.constant dense<0.000000e+00> : vector<32x128xf32>
    %83 = tpu.matmul %82, %81, %cst_26 {dimension_numbers = #tpu.dot_dimension_numbers<[1], [0], [0], [1], [0, 0, 1, 1], [], []>} : vector<32x384xbf16>, vector<384x128xbf16>, vector<32x128xf32> -> vector<32x128xf32>
    %c112 = arith.constant 112 : index
    %c0_27 = arith.constant 0 : index
    %84 = vector.load %arg3[%c112, %c0_27] : memref<232x128xf32, #tpu.memory_space<vmem>>, vector<1x128xf32>
    %85 = vector.broadcast %84 : vector<1x128xf32> to vector<32x128xf32>
    %86 = arith.addf %83, %85 : vector<32x128xf32>
    %c64 = arith.constant 64 : index
    %c0_28 = arith.constant 0 : index
    %87 = vector.load %arg3[%c64, %c0_28] : memref<232x128xf32, #tpu.memory_space<vmem>>, vector<1x128xf32>
    %88 = vector.broadcast %87 : vector<1x128xf32> to vector<32x128xf32>
    %89 = arith.mulf %86, %88 : vector<32x128xf32>
    %c72 = arith.constant 72 : index
    %c0_29 = arith.constant 0 : index
    %90 = vector.load %arg3[%c72, %c0_29] : memref<232x128xf32, #tpu.memory_space<vmem>>, vector<1x128xf32>
    %91 = vector.broadcast %90 : vector<1x128xf32> to vector<32x128xf32>
    %92 = arith.addf %89, %91 : vector<32x128xf32>
    %93 = arith.addf %71, %92 : vector<32x128xf32>
    %cst_30 = arith.constant 0.000000e+00 : f32
    %94 = vector.broadcast %cst_30 : f32 to vector<32x128xf32>
    %95 = arith.maximumf %50, %94 : vector<32x128xf32>
    %c1152 = arith.constant 1152 : index
    %c0_31 = arith.constant 0 : index
    %96 = vector.load %arg2[%c1152, %c0_31] : memref<5248x128xbf16, #tpu.memory_space<vmem>>, vector<128x128xbf16>
    %97 = arith.truncf %95 : vector<32x128xf32> to vector<32x128xbf16>
    %cst_32 = arith.constant dense<0.000000e+00> : vector<32x128xf32>
    %98 = tpu.matmul %97, %96, %cst_32 {dimension_numbers = #tpu.dot_dimension_numbers<[1], [0], [0], [1], [0, 0, 1, 1], [], []>} : vector<32x128xbf16>, vector<128x128xbf16>, vector<32x128xf32> -> vector<32x128xf32>
    %c120 = arith.constant 120 : index
    %c0_33 = arith.constant 0 : index
    %99 = vector.load %arg3[%c120, %c0_33] : memref<232x128xf32, #tpu.memory_space<vmem>>, vector<1x128xf32>
    %100 = vector.broadcast %99 : vector<1x128xf32> to vector<32x128xf32>
    %101 = arith.addf %98, %100 : vector<32x128xf32>
    %c80 = arith.constant 80 : index
    %c0_34 = arith.constant 0 : index
    %102 = vector.load %arg3[%c80, %c0_34] : memref<232x128xf32, #tpu.memory_space<vmem>>, vector<1x128xf32>
    %103 = vector.broadcast %102 : vector<1x128xf32> to vector<32x128xf32>
    %104 = arith.mulf %101, %103 : vector<32x128xf32>
    %c88 = arith.constant 88 : index
    %c0_35 = arith.constant 0 : index
    %105 = vector.load %arg3[%c88, %c0_35] : memref<232x128xf32, #tpu.memory_space<vmem>>, vector<1x128xf32>
    %106 = vector.broadcast %105 : vector<1x128xf32> to vector<32x128xf32>
    %107 = arith.addf %104, %106 : vector<32x128xf32>
    %108 = arith.addf %93, %107 : vector<32x128xf32>
    %cst_36 = arith.constant 0.000000e+00 : f32
    %109 = vector.broadcast %cst_36 : f32 to vector<32x128xf32>
    %110 = arith.maximumf %108, %109 : vector<32x128xf32>
    %c1_i32_37 = arith.constant 1 : i32
    %111 = tpu.dynamic_rotate %110 by %c1_i32_37 dim 0 : vector<32x128xf32>, i32 -> vector<32x128xf32>
    %112 = vector.broadcast %10 : vector<32x1xf32> to vector<32x128xf32>
    %113 = arith.mulf %111, %112 : vector<32x128xf32>
    %c31_i32_38 = arith.constant 31 : i32
    %114 = tpu.dynamic_rotate %110 by %c31_i32_38 dim 0 : vector<32x128xf32>, i32 -> vector<32x128xf32>
    %115 = vector.broadcast %22 : vector<32x1xf32> to vector<32x128xf32>
    %116 = arith.mulf %114, %115 : vector<32x128xf32>
    %117 = tpu.concatenate %113, %110, %116 in 1 : vector<32x128xf32>, vector<32x128xf32>, vector<32x128xf32> -> vector<32x384xf32>
    %c1280 = arith.constant 1280 : index
    %c0_39 = arith.constant 0 : index
    %118 = vector.load %arg2[%c1280, %c0_39] : memref<5248x128xbf16, #tpu.memory_space<vmem>>, vector<384x128xbf16>
    %119 = arith.truncf %117 : vector<32x384xf32> to vector<32x384xbf16>
    %cst_40 = arith.constant dense<0.000000e+00> : vector<32x128xf32>
    %120 = tpu.matmul %119, %118, %cst_40 {dimension_numbers = #tpu.dot_dimension_numbers<[1], [0], [0], [1], [0, 0, 1, 1], [], []>} : vector<32x384xbf16>, vector<384x128xbf16>, vector<32x128xf32> -> vector<32x128xf32>
    %121 = tpu.iota {dimensions = array<i32: 0>} : vector<16x32xi32>
    %122 = tpu.iota {dimensions = array<i32: 1>} : vector<16x32xi32>
    %c2_i32 = arith.constant 2 : i32
    %123 = vector.broadcast %c2_i32 : i32 to vector<16x32xi32>
    %124 = arith.muli %123, %121 : vector<16x32xi32>
    %125 = arith.cmpi eq, %122, %124 : vector<16x32xi32>
    %126 = arith.extui %125 : vector<16x32xi1> to vector<16x32xi32>
    %127 = arith.sitofp %126 : vector<16x32xi32> to vector<16x32xf32>
    %128 = arith.truncf %127 : vector<16x32xf32> to vector<16x32xbf16>
    %129 = arith.truncf %120 : vector<32x128xf32> to vector<32x128xbf16>
    %cst_41 = arith.constant dense<0.000000e+00> : vector<16x128xf32>
    %130 = tpu.matmul %128, %129, %cst_41 {dimension_numbers = #tpu.dot_dimension_numbers<[1], [0], [0], [1], [0, 0, 1, 1], [], []>} : vector<16x32xbf16>, vector<32x128xbf16>, vector<16x128xf32> -> vector<16x128xf32>
    %c128 = arith.constant 128 : index
    %c0_42 = arith.constant 0 : index
    %131 = vector.load %arg3[%c128, %c0_42] : memref<232x128xf32, #tpu.memory_space<vmem>>, vector<1x128xf32>
    %132 = vector.broadcast %131 : vector<1x128xf32> to vector<16x128xf32>
    %133 = arith.addf %130, %132 : vector<16x128xf32>
    %cst_43 = arith.constant 0.000000e+00 : f32
    %134 = vector.broadcast %cst_43 : f32 to vector<16x128xf32>
    %135 = arith.maximumf %133, %134 : vector<16x128xf32>
    %c1_i32_44 = arith.constant 1 : i32
    %136 = tpu.dynamic_rotate %135 by %c1_i32_44 dim 0 : vector<16x128xf32>, i32 -> vector<16x128xf32>
    %137 = tpu.iota {dimensions = array<i32: 0>} : vector<16x1xi32>
    %c0_i32_45 = arith.constant 0 : i32
    %138 = vector.broadcast %c0_i32_45 : i32 to vector<16x1xi32>
    %139 = arith.cmpi eq, %137, %138 : vector<16x1xi32>
    %c8_i32 = arith.constant 8 : i32
    %140 = vector.broadcast %c8_i32 : i32 to vector<16x1xi32>
    %141 = arith.cmpi eq, %137, %140 : vector<16x1xi32>
    %142 = arith.ori %139, %141 : vector<16x1xi1>
    %cst_46 = arith.constant dense<true> : vector<16x1xi1>
    %143 = arith.xori %142, %cst_46 : vector<16x1xi1>
    %144 = arith.extui %143 : vector<16x1xi1> to vector<16x1xi32>
    %145 = arith.sitofp %144 : vector<16x1xi32> to vector<16x1xf32>
    %146 = vector.broadcast %145 : vector<16x1xf32> to vector<16x128xf32>
    %147 = arith.mulf %136, %146 : vector<16x128xf32>
    %c15_i32_47 = arith.constant 15 : i32
    %148 = tpu.dynamic_rotate %135 by %c15_i32_47 dim 0 : vector<16x128xf32>, i32 -> vector<16x128xf32>
    %149 = tpu.iota {dimensions = array<i32: 0>} : vector<16x1xi32>
    %c7_i32 = arith.constant 7 : i32
    %150 = vector.broadcast %c7_i32 : i32 to vector<16x1xi32>
    %151 = arith.cmpi eq, %149, %150 : vector<16x1xi32>
    %c15_i32_48 = arith.constant 15 : i32
    %152 = vector.broadcast %c15_i32_48 : i32 to vector<16x1xi32>
    %153 = arith.cmpi eq, %149, %152 : vector<16x1xi32>
    %154 = arith.ori %151, %153 : vector<16x1xi1>
    %cst_49 = arith.constant dense<true> : vector<16x1xi1>
    %155 = arith.xori %154, %cst_49 : vector<16x1xi1>
    %156 = arith.extui %155 : vector<16x1xi1> to vector<16x1xi32>
    %157 = arith.sitofp %156 : vector<16x1xi32> to vector<16x1xf32>
    %158 = vector.broadcast %157 : vector<16x1xf32> to vector<16x128xf32>
    %159 = arith.mulf %148, %158 : vector<16x128xf32>
    %160 = tpu.concatenate %147, %135, %159 in 1 : vector<16x128xf32>, vector<16x128xf32>, vector<16x128xf32> -> vector<16x384xf32>
    %c1664 = arith.constant 1664 : index
    %c0_50 = arith.constant 0 : index
    %161 = vector.load %arg2[%c1664, %c0_50] : memref<5248x128xbf16, #tpu.memory_space<vmem>>, vector<384x128xbf16>
    %162 = arith.truncf %160 : vector<16x384xf32> to vector<16x384xbf16>
    %cst_51 = arith.constant dense<0.000000e+00> : vector<16x128xf32>
    %163 = tpu.matmul %162, %161, %cst_51 {dimension_numbers = #tpu.dot_dimension_numbers<[1], [0], [0], [1], [0, 0, 1, 1], [], []>} : vector<16x384xbf16>, vector<384x128xbf16>, vector<16x128xf32> -> vector<16x128xf32>
    %c136 = arith.constant 136 : index
    %c0_52 = arith.constant 0 : index
    %164 = vector.load %arg3[%c136, %c0_52] : memref<232x128xf32, #tpu.memory_space<vmem>>, vector<1x128xf32>
    %165 = vector.broadcast %164 : vector<1x128xf32> to vector<16x128xf32>
    %166 = arith.addf %163, %165 : vector<16x128xf32>
    %c31_i32_53 = arith.constant 31 : i32
    %167 = tpu.dynamic_rotate %108 by %c31_i32_53 dim 0 : vector<32x128xf32>, i32 -> vector<32x128xf32>
    %168 = vector.broadcast %22 : vector<32x1xf32> to vector<32x128xf32>
    %169 = arith.mulf %167, %168 : vector<32x128xf32>
    %170 = tpu.concatenate %108, %169 in 1 : vector<32x128xf32>, vector<32x128xf32> -> vector<32x256xf32>
    %c2048 = arith.constant 2048 : index
    %c0_54 = arith.constant 0 : index
    %171 = vector.load %arg2[%c2048, %c0_54] : memref<5248x128xbf16, #tpu.memory_space<vmem>>, vector<256x128xbf16>
    %172 = arith.truncf %170 : vector<32x256xf32> to vector<32x256xbf16>
    %cst_55 = arith.constant dense<0.000000e+00> : vector<32x128xf32>
    %173 = tpu.matmul %172, %171, %cst_55 {dimension_numbers = #tpu.dot_dimension_numbers<[1], [0], [0], [1], [0, 0, 1, 1], [], []>} : vector<32x256xbf16>, vector<256x128xbf16>, vector<32x128xf32> -> vector<32x128xf32>
    %174 = arith.truncf %173 : vector<32x128xf32> to vector<32x128xbf16>
    %cst_56 = arith.constant dense<0.000000e+00> : vector<16x128xf32>
    %175 = tpu.matmul %128, %174, %cst_56 {dimension_numbers = #tpu.dot_dimension_numbers<[1], [0], [0], [1], [0, 0, 1, 1], [], []>} : vector<16x32xbf16>, vector<32x128xbf16>, vector<16x128xf32> -> vector<16x128xf32>
    %176 = arith.addf %166, %175 : vector<16x128xf32>
    %c0_57 = arith.constant 0 : index
    %c0_58 = arith.constant 0 : index
    %177 = vector.load %arg3[%c0_57, %c0_58] : memref<232x128xf32, #tpu.memory_space<vmem>>, vector<1x128xf32>
    %178 = vector.broadcast %177 : vector<1x128xf32> to vector<16x128xf32>
    %179 = arith.mulf %176, %178 : vector<16x128xf32>
    %c8_59 = arith.constant 8 : index
    %c0_60 = arith.constant 0 : index
    %180 = vector.load %arg3[%c8_59, %c0_60] : memref<232x128xf32, #tpu.memory_space<vmem>>, vector<1x128xf32>
    %181 = vector.broadcast %180 : vector<1x128xf32> to vector<16x128xf32>
    %182 = arith.addf %179, %181 : vector<16x128xf32>
    %c16_61 = arith.constant 16 : index
    %c0_62 = arith.constant 0 : index
    %183 = vector.load %arg3[%c16_61, %c0_62] : memref<232x128xf32, #tpu.memory_space<vmem>>, vector<1x128xf32>
    %184 = vector.broadcast %183 : vector<1x128xf32> to vector<16x128xf32>
    %185 = arith.mulf %176, %184 : vector<16x128xf32>
    %c24_63 = arith.constant 24 : index
    %c0_64 = arith.constant 0 : index
    %186 = vector.load %arg3[%c24_63, %c0_64] : memref<232x128xf32, #tpu.memory_space<vmem>>, vector<1x128xf32>
    %187 = vector.broadcast %186 : vector<1x128xf32> to vector<16x128xf32>
    %188 = arith.addf %185, %187 : vector<16x128xf32>
    %c32_65 = arith.constant 32 : index
    %c0_66 = arith.constant 0 : index
    %189 = vector.load %arg3[%c32_65, %c0_66] : memref<232x128xf32, #tpu.memory_space<vmem>>, vector<1x128xf32>
    %190 = vector.broadcast %189 : vector<1x128xf32> to vector<16x128xf32>
    %191 = arith.mulf %182, %190 : vector<16x128xf32>
    %c40_67 = arith.constant 40 : index
    %c0_68 = arith.constant 0 : index
    %192 = vector.load %arg3[%c40_67, %c0_68] : memref<232x128xf32, #tpu.memory_space<vmem>>, vector<1x128xf32>
    %193 = vector.broadcast %192 : vector<1x128xf32> to vector<16x128xf32>
    %194 = arith.addf %191, %193 : vector<16x128xf32>
    %195 = arith.addf %188, %194 : vector<16x128xf32>
    %cst_69 = arith.constant 0.000000e+00 : f32
    %196 = vector.broadcast %cst_69 : f32 to vector<16x128xf32>
    %197 = arith.maximumf %176, %196 : vector<16x128xf32>
    %c1_i32_70 = arith.constant 1 : i32
    %198 = tpu.dynamic_rotate %197 by %c1_i32_70 dim 0 : vector<16x128xf32>, i32 -> vector<16x128xf32>
    %199 = vector.broadcast %145 : vector<16x1xf32> to vector<16x128xf32>
    %200 = arith.mulf %198, %199 : vector<16x128xf32>
    %c15_i32_71 = arith.constant 15 : i32
    %201 = tpu.dynamic_rotate %197 by %c15_i32_71 dim 0 : vector<16x128xf32>, i32 -> vector<16x128xf32>
    %202 = vector.broadcast %157 : vector<16x1xf32> to vector<16x128xf32>
    %203 = arith.mulf %201, %202 : vector<16x128xf32>
    %204 = tpu.concatenate %200, %197, %203 in 1 : vector<16x128xf32>, vector<16x128xf32>, vector<16x128xf32> -> vector<16x384xf32>
    %c2304 = arith.constant 2304 : index
    %c0_72 = arith.constant 0 : index
    %205 = vector.load %arg2[%c2304, %c0_72] : memref<5248x128xbf16, #tpu.memory_space<vmem>>, vector<384x128xbf16>
    %206 = arith.truncf %204 : vector<16x384xf32> to vector<16x384xbf16>
    %cst_73 = arith.constant dense<0.000000e+00> : vector<16x128xf32>
    %207 = tpu.matmul %206, %205, %cst_73 {dimension_numbers = #tpu.dot_dimension_numbers<[1], [0], [0], [1], [0, 0, 1, 1], [], []>} : vector<16x384xbf16>, vector<384x128xbf16>, vector<16x128xf32> -> vector<16x128xf32>
    %c144 = arith.constant 144 : index
    %c0_74 = arith.constant 0 : index
    %208 = vector.load %arg3[%c144, %c0_74] : memref<232x128xf32, #tpu.memory_space<vmem>>, vector<1x128xf32>
    %209 = vector.broadcast %208 : vector<1x128xf32> to vector<16x128xf32>
    %210 = arith.addf %207, %209 : vector<16x128xf32>
    %c48_75 = arith.constant 48 : index
    %c0_76 = arith.constant 0 : index
    %211 = vector.load %arg3[%c48_75, %c0_76] : memref<232x128xf32, #tpu.memory_space<vmem>>, vector<1x128xf32>
    %212 = vector.broadcast %211 : vector<1x128xf32> to vector<16x128xf32>
    %213 = arith.mulf %210, %212 : vector<16x128xf32>
    %c56_77 = arith.constant 56 : index
    %c0_78 = arith.constant 0 : index
    %214 = vector.load %arg3[%c56_77, %c0_78] : memref<232x128xf32, #tpu.memory_space<vmem>>, vector<1x128xf32>
    %215 = vector.broadcast %214 : vector<1x128xf32> to vector<16x128xf32>
    %216 = arith.addf %213, %215 : vector<16x128xf32>
    %cst_79 = arith.constant 0.000000e+00 : f32
    %217 = vector.broadcast %cst_79 : f32 to vector<16x128xf32>
    %218 = arith.maximumf %182, %217 : vector<16x128xf32>
    %c1_i32_80 = arith.constant 1 : i32
    %219 = tpu.dynamic_rotate %218 by %c1_i32_80 dim 0 : vector<16x128xf32>, i32 -> vector<16x128xf32>
    %220 = vector.broadcast %145 : vector<16x1xf32> to vector<16x128xf32>
    %221 = arith.mulf %219, %220 : vector<16x128xf32>
    %c15_i32_81 = arith.constant 15 : i32
    %222 = tpu.dynamic_rotate %218 by %c15_i32_81 dim 0 : vector<16x128xf32>, i32 -> vector<16x128xf32>
    %223 = vector.broadcast %157 : vector<16x1xf32> to vector<16x128xf32>
    %224 = arith.mulf %222, %223 : vector<16x128xf32>
    %225 = tpu.concatenate %221, %218, %224 in 1 : vector<16x128xf32>, vector<16x128xf32>, vector<16x128xf32> -> vector<16x384xf32>
    %c2688 = arith.constant 2688 : index
    %c0_82 = arith.constant 0 : index
    %226 = vector.load %arg2[%c2688, %c0_82] : memref<5248x128xbf16, #tpu.memory_space<vmem>>, vector<384x128xbf16>
    %227 = arith.truncf %225 : vector<16x384xf32> to vector<16x384xbf16>
    %cst_83 = arith.constant dense<0.000000e+00> : vector<16x128xf32>
    %228 = tpu.matmul %227, %226, %cst_83 {dimension_numbers = #tpu.dot_dimension_numbers<[1], [0], [0], [1], [0, 0, 1, 1], [], []>} : vector<16x384xbf16>, vector<384x128xbf16>, vector<16x128xf32> -> vector<16x128xf32>
    %c152 = arith.constant 152 : index
    %c0_84 = arith.constant 0 : index
    %229 = vector.load %arg3[%c152, %c0_84] : memref<232x128xf32, #tpu.memory_space<vmem>>, vector<1x128xf32>
    %230 = vector.broadcast %229 : vector<1x128xf32> to vector<16x128xf32>
    %231 = arith.addf %228, %230 : vector<16x128xf32>
    %c64_85 = arith.constant 64 : index
    %c0_86 = arith.constant 0 : index
    %232 = vector.load %arg3[%c64_85, %c0_86] : memref<232x128xf32, #tpu.memory_space<vmem>>, vector<1x128xf32>
    %233 = vector.broadcast %232 : vector<1x128xf32> to vector<16x128xf32>
    %234 = arith.mulf %231, %233 : vector<16x128xf32>
    %c72_87 = arith.constant 72 : index
    %c0_88 = arith.constant 0 : index
    %235 = vector.load %arg3[%c72_87, %c0_88] : memref<232x128xf32, #tpu.memory_space<vmem>>, vector<1x128xf32>
    %236 = vector.broadcast %235 : vector<1x128xf32> to vector<16x128xf32>
    %237 = arith.addf %234, %236 : vector<16x128xf32>
    %238 = arith.addf %216, %237 : vector<16x128xf32>
    %cst_89 = arith.constant 0.000000e+00 : f32
    %239 = vector.broadcast %cst_89 : f32 to vector<16x128xf32>
    %240 = arith.maximumf %195, %239 : vector<16x128xf32>
    %c3072 = arith.constant 3072 : index
    %c0_90 = arith.constant 0 : index
    %241 = vector.load %arg2[%c3072, %c0_90] : memref<5248x128xbf16, #tpu.memory_space<vmem>>, vector<128x128xbf16>
    %242 = arith.truncf %240 : vector<16x128xf32> to vector<16x128xbf16>
    %cst_91 = arith.constant dense<0.000000e+00> : vector<16x128xf32>
    %243 = tpu.matmul %242, %241, %cst_91 {dimension_numbers = #tpu.dot_dimension_numbers<[1], [0], [0], [1], [0, 0, 1, 1], [], []>} : vector<16x128xbf16>, vector<128x128xbf16>, vector<16x128xf32> -> vector<16x128xf32>
    %c160 = arith.constant 160 : index
    %c0_92 = arith.constant 0 : index
    %244 = vector.load %arg3[%c160, %c0_92] : memref<232x128xf32, #tpu.memory_space<vmem>>, vector<1x128xf32>
    %245 = vector.broadcast %244 : vector<1x128xf32> to vector<16x128xf32>
    %246 = arith.addf %243, %245 : vector<16x128xf32>
    %c80_93 = arith.constant 80 : index
    %c0_94 = arith.constant 0 : index
    %247 = vector.load %arg3[%c80_93, %c0_94] : memref<232x128xf32, #tpu.memory_space<vmem>>, vector<1x128xf32>
    %248 = vector.broadcast %247 : vector<1x128xf32> to vector<16x128xf32>
    %249 = arith.mulf %246, %248 : vector<16x128xf32>
    %c88_95 = arith.constant 88 : index
    %c0_96 = arith.constant 0 : index
    %250 = vector.load %arg3[%c88_95, %c0_96] : memref<232x128xf32, #tpu.memory_space<vmem>>, vector<1x128xf32>
    %251 = vector.broadcast %250 : vector<1x128xf32> to vector<16x128xf32>
    %252 = arith.addf %249, %251 : vector<16x128xf32>
    %253 = arith.addf %238, %252 : vector<16x128xf32>
    %cst_97 = arith.constant 0.000000e+00 : f32
    %254 = vector.broadcast %cst_97 : f32 to vector<16x128xf32>
    %255 = arith.maximumf %253, %254 : vector<16x128xf32>
    %c1_i32_98 = arith.constant 1 : i32
    %256 = tpu.dynamic_rotate %255 by %c1_i32_98 dim 0 : vector<16x128xf32>, i32 -> vector<16x128xf32>
    %257 = vector.broadcast %145 : vector<16x1xf32> to vector<16x128xf32>
    %258 = arith.mulf %256, %257 : vector<16x128xf32>
    %c15_i32_99 = arith.constant 15 : i32
    %259 = tpu.dynamic_rotate %255 by %c15_i32_99 dim 0 : vector<16x128xf32>, i32 -> vector<16x128xf32>
    %260 = vector.broadcast %157 : vector<16x1xf32> to vector<16x128xf32>
    %261 = arith.mulf %259, %260 : vector<16x128xf32>
    %262 = tpu.concatenate %258, %255, %261 in 1 : vector<16x128xf32>, vector<16x128xf32>, vector<16x128xf32> -> vector<16x384xf32>
    %c3200 = arith.constant 3200 : index
    %c0_100 = arith.constant 0 : index
    %263 = vector.load %arg2[%c3200, %c0_100] : memref<5248x128xbf16, #tpu.memory_space<vmem>>, vector<384x128xbf16>
    %264 = arith.truncf %262 : vector<16x384xf32> to vector<16x384xbf16>
    %cst_101 = arith.constant dense<0.000000e+00> : vector<16x128xf32>
    %265 = tpu.matmul %264, %263, %cst_101 {dimension_numbers = #tpu.dot_dimension_numbers<[1], [0], [0], [1], [0, 0, 1, 1], [], []>} : vector<16x384xbf16>, vector<384x128xbf16>, vector<16x128xf32> -> vector<16x128xf32>
    %266 = tpu.iota {dimensions = array<i32: 0>} : vector<8x16xi32>
    %267 = tpu.iota {dimensions = array<i32: 1>} : vector<8x16xi32>
    %c2_i32_102 = arith.constant 2 : i32
    %268 = vector.broadcast %c2_i32_102 : i32 to vector<8x16xi32>
    %269 = arith.muli %268, %266 : vector<8x16xi32>
    %270 = arith.cmpi eq, %267, %269 : vector<8x16xi32>
    %271 = arith.extui %270 : vector<8x16xi1> to vector<8x16xi32>
    %272 = arith.sitofp %271 : vector<8x16xi32> to vector<8x16xf32>
    %273 = arith.truncf %272 : vector<8x16xf32> to vector<8x16xbf16>
    %274 = arith.truncf %265 : vector<16x128xf32> to vector<16x128xbf16>
    %cst_103 = arith.constant dense<0.000000e+00> : vector<8x128xf32>
    %275 = tpu.matmul %273, %274, %cst_103 {dimension_numbers = #tpu.dot_dimension_numbers<[1], [0], [0], [1], [0, 0, 1, 1], [], []>} : vector<8x16xbf16>, vector<16x128xbf16>, vector<8x128xf32> -> vector<8x128xf32>
    %c168 = arith.constant 168 : index
    %c0_104 = arith.constant 0 : index
    %276 = vector.load %arg3[%c168, %c0_104] : memref<232x128xf32, #tpu.memory_space<vmem>>, vector<1x128xf32>
    %277 = vector.broadcast %276 : vector<1x128xf32> to vector<8x128xf32>
    %278 = arith.addf %275, %277 : vector<8x128xf32>
    %cst_105 = arith.constant 0.000000e+00 : f32
    %279 = vector.broadcast %cst_105 : f32 to vector<8x128xf32>
    %280 = arith.maximumf %278, %279 : vector<8x128xf32>
    %c1_i32_106 = arith.constant 1 : i32
    %281 = tpu.dynamic_rotate %280 by %c1_i32_106 dim 0 : vector<8x128xf32>, i32 -> vector<8x128xf32>
    %282 = tpu.iota {dimensions = array<i32: 0>} : vector<8x1xi32>
    %c0_i32_107 = arith.constant 0 : i32
    %283 = vector.broadcast %c0_i32_107 : i32 to vector<8x1xi32>
    %284 = arith.cmpi eq, %282, %283 : vector<8x1xi32>
    %c4_i32 = arith.constant 4 : i32
    %285 = vector.broadcast %c4_i32 : i32 to vector<8x1xi32>
    %286 = arith.cmpi eq, %282, %285 : vector<8x1xi32>
    %287 = arith.ori %284, %286 : vector<8x1xi1>
    %cst_108 = arith.constant dense<true> : vector<8x1xi1>
    %288 = arith.xori %287, %cst_108 : vector<8x1xi1>
    %289 = arith.extui %288 : vector<8x1xi1> to vector<8x1xi32>
    %290 = arith.sitofp %289 : vector<8x1xi32> to vector<8x1xf32>
    %291 = vector.broadcast %290 : vector<8x1xf32> to vector<8x128xf32>
    %292 = arith.mulf %281, %291 : vector<8x128xf32>
    %c7_i32_109 = arith.constant 7 : i32
    %293 = tpu.dynamic_rotate %280 by %c7_i32_109 dim 0 : vector<8x128xf32>, i32 -> vector<8x128xf32>
    %294 = tpu.iota {dimensions = array<i32: 0>} : vector<8x1xi32>
    %c3_i32 = arith.constant 3 : i32
    %295 = vector.broadcast %c3_i32 : i32 to vector<8x1xi32>
    %296 = arith.cmpi eq, %294, %295 : vector<8x1xi32>
    %c7_i32_110 = arith.constant 7 : i32
    %297 = vector.broadcast %c7_i32_110 : i32 to vector<8x1xi32>
    %298 = arith.cmpi eq, %294, %297 : vector<8x1xi32>
    %299 = arith.ori %296, %298 : vector<8x1xi1>
    %cst_111 = arith.constant dense<true> : vector<8x1xi1>
    %300 = arith.xori %299, %cst_111 : vector<8x1xi1>
    %301 = arith.extui %300 : vector<8x1xi1> to vector<8x1xi32>
    %302 = arith.sitofp %301 : vector<8x1xi32> to vector<8x1xf32>
    %303 = vector.broadcast %302 : vector<8x1xf32> to vector<8x128xf32>
    %304 = arith.mulf %293, %303 : vector<8x128xf32>
    %305 = tpu.concatenate %292, %280, %304 in 1 : vector<8x128xf32>, vector<8x128xf32>, vector<8x128xf32> -> vector<8x384xf32>
    %c3584 = arith.constant 3584 : index
    %c0_112 = arith.constant 0 : index
    %306 = vector.load %arg2[%c3584, %c0_112] : memref<5248x128xbf16, #tpu.memory_space<vmem>>, vector<384x128xbf16>
    %307 = arith.truncf %305 : vector<8x384xf32> to vector<8x384xbf16>
    %cst_113 = arith.constant dense<0.000000e+00> : vector<8x128xf32>
    %308 = tpu.matmul %307, %306, %cst_113 {dimension_numbers = #tpu.dot_dimension_numbers<[1], [0], [0], [1], [0, 0, 1, 1], [], []>} : vector<8x384xbf16>, vector<384x128xbf16>, vector<8x128xf32> -> vector<8x128xf32>
    %c176 = arith.constant 176 : index
    %c0_114 = arith.constant 0 : index
    %309 = vector.load %arg3[%c176, %c0_114] : memref<232x128xf32, #tpu.memory_space<vmem>>, vector<1x128xf32>
    %310 = vector.broadcast %309 : vector<1x128xf32> to vector<8x128xf32>
    %311 = arith.addf %308, %310 : vector<8x128xf32>
    %c15_i32_115 = arith.constant 15 : i32
    %312 = tpu.dynamic_rotate %253 by %c15_i32_115 dim 0 : vector<16x128xf32>, i32 -> vector<16x128xf32>
    %313 = vector.broadcast %157 : vector<16x1xf32> to vector<16x128xf32>
    %314 = arith.mulf %312, %313 : vector<16x128xf32>
    %315 = tpu.concatenate %253, %314 in 1 : vector<16x128xf32>, vector<16x128xf32> -> vector<16x256xf32>
    %c3968 = arith.constant 3968 : index
    %c0_116 = arith.constant 0 : index
    %316 = vector.load %arg2[%c3968, %c0_116] : memref<5248x128xbf16, #tpu.memory_space<vmem>>, vector<256x128xbf16>
    %317 = arith.truncf %315 : vector<16x256xf32> to vector<16x256xbf16>
    %cst_117 = arith.constant dense<0.000000e+00> : vector<16x128xf32>
    %318 = tpu.matmul %317, %316, %cst_117 {dimension_numbers = #tpu.dot_dimension_numbers<[1], [0], [0], [1], [0, 0, 1, 1], [], []>} : vector<16x256xbf16>, vector<256x128xbf16>, vector<16x128xf32> -> vector<16x128xf32>
    %319 = arith.truncf %318 : vector<16x128xf32> to vector<16x128xbf16>
    %cst_118 = arith.constant dense<0.000000e+00> : vector<8x128xf32>
    %320 = tpu.matmul %273, %319, %cst_118 {dimension_numbers = #tpu.dot_dimension_numbers<[1], [0], [0], [1], [0, 0, 1, 1], [], []>} : vector<8x16xbf16>, vector<16x128xbf16>, vector<8x128xf32> -> vector<8x128xf32>
    %321 = arith.addf %311, %320 : vector<8x128xf32>
    %c0_119 = arith.constant 0 : index
    %c0_120 = arith.constant 0 : index
    %322 = vector.load %arg3[%c0_119, %c0_120] : memref<232x128xf32, #tpu.memory_space<vmem>>, vector<1x128xf32>
    %323 = vector.broadcast %322 : vector<1x128xf32> to vector<8x128xf32>
    %324 = arith.mulf %321, %323 : vector<8x128xf32>
    %c8_121 = arith.constant 8 : index
    %c0_122 = arith.constant 0 : index
    %325 = vector.load %arg3[%c8_121, %c0_122] : memref<232x128xf32, #tpu.memory_space<vmem>>, vector<1x128xf32>
    %326 = vector.broadcast %325 : vector<1x128xf32> to vector<8x128xf32>
    %327 = arith.addf %324, %326 : vector<8x128xf32>
    %c16_123 = arith.constant 16 : index
    %c0_124 = arith.constant 0 : index
    %328 = vector.load %arg3[%c16_123, %c0_124] : memref<232x128xf32, #tpu.memory_space<vmem>>, vector<1x128xf32>
    %329 = vector.broadcast %328 : vector<1x128xf32> to vector<8x128xf32>
    %330 = arith.mulf %321, %329 : vector<8x128xf32>
    %c24_125 = arith.constant 24 : index
    %c0_126 = arith.constant 0 : index
    %331 = vector.load %arg3[%c24_125, %c0_126] : memref<232x128xf32, #tpu.memory_space<vmem>>, vector<1x128xf32>
    %332 = vector.broadcast %331 : vector<1x128xf32> to vector<8x128xf32>
    %333 = arith.addf %330, %332 : vector<8x128xf32>
    %c32_127 = arith.constant 32 : index
    %c0_128 = arith.constant 0 : index
    %334 = vector.load %arg3[%c32_127, %c0_128] : memref<232x128xf32, #tpu.memory_space<vmem>>, vector<1x128xf32>
    %335 = vector.broadcast %334 : vector<1x128xf32> to vector<8x128xf32>
    %336 = arith.mulf %327, %335 : vector<8x128xf32>
    %c40_129 = arith.constant 40 : index
    %c0_130 = arith.constant 0 : index
    %337 = vector.load %arg3[%c40_129, %c0_130] : memref<232x128xf32, #tpu.memory_space<vmem>>, vector<1x128xf32>
    %338 = vector.broadcast %337 : vector<1x128xf32> to vector<8x128xf32>
    %339 = arith.addf %336, %338 : vector<8x128xf32>
    %340 = arith.addf %333, %339 : vector<8x128xf32>
    %cst_131 = arith.constant 0.000000e+00 : f32
    %341 = vector.broadcast %cst_131 : f32 to vector<8x128xf32>
    %342 = arith.maximumf %321, %341 : vector<8x128xf32>
    %c1_i32_132 = arith.constant 1 : i32
    %343 = tpu.dynamic_rotate %342 by %c1_i32_132 dim 0 : vector<8x128xf32>, i32 -> vector<8x128xf32>
    %344 = vector.broadcast %290 : vector<8x1xf32> to vector<8x128xf32>
    %345 = arith.mulf %343, %344 : vector<8x128xf32>
    %c7_i32_133 = arith.constant 7 : i32
    %346 = tpu.dynamic_rotate %342 by %c7_i32_133 dim 0 : vector<8x128xf32>, i32 -> vector<8x128xf32>
    %347 = vector.broadcast %302 : vector<8x1xf32> to vector<8x128xf32>
    %348 = arith.mulf %346, %347 : vector<8x128xf32>
    %349 = tpu.concatenate %345, %342, %348 in 1 : vector<8x128xf32>, vector<8x128xf32>, vector<8x128xf32> -> vector<8x384xf32>
    %c4224 = arith.constant 4224 : index
    %c0_134 = arith.constant 0 : index
    %350 = vector.load %arg2[%c4224, %c0_134] : memref<5248x128xbf16, #tpu.memory_space<vmem>>, vector<384x128xbf16>
    %351 = arith.truncf %349 : vector<8x384xf32> to vector<8x384xbf16>
    %cst_135 = arith.constant dense<0.000000e+00> : vector<8x128xf32>
    %352 = tpu.matmul %351, %350, %cst_135 {dimension_numbers = #tpu.dot_dimension_numbers<[1], [0], [0], [1], [0, 0, 1, 1], [], []>} : vector<8x384xbf16>, vector<384x128xbf16>, vector<8x128xf32> -> vector<8x128xf32>
    %c184 = arith.constant 184 : index
    %c0_136 = arith.constant 0 : index
    %353 = vector.load %arg3[%c184, %c0_136] : memref<232x128xf32, #tpu.memory_space<vmem>>, vector<1x128xf32>
    %354 = vector.broadcast %353 : vector<1x128xf32> to vector<8x128xf32>
    %355 = arith.addf %352, %354 : vector<8x128xf32>
    %c48_137 = arith.constant 48 : index
    %c0_138 = arith.constant 0 : index
    %356 = vector.load %arg3[%c48_137, %c0_138] : memref<232x128xf32, #tpu.memory_space<vmem>>, vector<1x128xf32>
    %357 = vector.broadcast %356 : vector<1x128xf32> to vector<8x128xf32>
    %358 = arith.mulf %355, %357 : vector<8x128xf32>
    %c56_139 = arith.constant 56 : index
    %c0_140 = arith.constant 0 : index
    %359 = vector.load %arg3[%c56_139, %c0_140] : memref<232x128xf32, #tpu.memory_space<vmem>>, vector<1x128xf32>
    %360 = vector.broadcast %359 : vector<1x128xf32> to vector<8x128xf32>
    %361 = arith.addf %358, %360 : vector<8x128xf32>
    %cst_141 = arith.constant 0.000000e+00 : f32
    %362 = vector.broadcast %cst_141 : f32 to vector<8x128xf32>
    %363 = arith.maximumf %327, %362 : vector<8x128xf32>
    %c1_i32_142 = arith.constant 1 : i32
    %364 = tpu.dynamic_rotate %363 by %c1_i32_142 dim 0 : vector<8x128xf32>, i32 -> vector<8x128xf32>
    %365 = vector.broadcast %290 : vector<8x1xf32> to vector<8x128xf32>
    %366 = arith.mulf %364, %365 : vector<8x128xf32>
    %c7_i32_143 = arith.constant 7 : i32
    %367 = tpu.dynamic_rotate %363 by %c7_i32_143 dim 0 : vector<8x128xf32>, i32 -> vector<8x128xf32>
    %368 = vector.broadcast %302 : vector<8x1xf32> to vector<8x128xf32>
    %369 = arith.mulf %367, %368 : vector<8x128xf32>
    %370 = tpu.concatenate %366, %363, %369 in 1 : vector<8x128xf32>, vector<8x128xf32>, vector<8x128xf32> -> vector<8x384xf32>
    %c4608 = arith.constant 4608 : index
    %c0_144 = arith.constant 0 : index
    %371 = vector.load %arg2[%c4608, %c0_144] : memref<5248x128xbf16, #tpu.memory_space<vmem>>, vector<384x128xbf16>
    %372 = arith.truncf %370 : vector<8x384xf32> to vector<8x384xbf16>
    %cst_145 = arith.constant dense<0.000000e+00> : vector<8x128xf32>
    %373 = tpu.matmul %372, %371, %cst_145 {dimension_numbers = #tpu.dot_dimension_numbers<[1], [0], [0], [1], [0, 0, 1, 1], [], []>} : vector<8x384xbf16>, vector<384x128xbf16>, vector<8x128xf32> -> vector<8x128xf32>
    %c192 = arith.constant 192 : index
    %c0_146 = arith.constant 0 : index
    %374 = vector.load %arg3[%c192, %c0_146] : memref<232x128xf32, #tpu.memory_space<vmem>>, vector<1x128xf32>
    %375 = vector.broadcast %374 : vector<1x128xf32> to vector<8x128xf32>
    %376 = arith.addf %373, %375 : vector<8x128xf32>
    %c64_147 = arith.constant 64 : index
    %c0_148 = arith.constant 0 : index
    %377 = vector.load %arg3[%c64_147, %c0_148] : memref<232x128xf32, #tpu.memory_space<vmem>>, vector<1x128xf32>
    %378 = vector.broadcast %377 : vector<1x128xf32> to vector<8x128xf32>
    %379 = arith.mulf %376, %378 : vector<8x128xf32>
    %c72_149 = arith.constant 72 : index
    %c0_150 = arith.constant 0 : index
    %380 = vector.load %arg3[%c72_149, %c0_150] : memref<232x128xf32, #tpu.memory_space<vmem>>, vector<1x128xf32>
    %381 = vector.broadcast %380 : vector<1x128xf32> to vector<8x128xf32>
    %382 = arith.addf %379, %381 : vector<8x128xf32>
    %383 = arith.addf %361, %382 : vector<8x128xf32>
    %cst_151 = arith.constant 0.000000e+00 : f32
    %384 = vector.broadcast %cst_151 : f32 to vector<8x128xf32>
    %385 = arith.maximumf %340, %384 : vector<8x128xf32>
    %c4992 = arith.constant 4992 : index
    %c0_152 = arith.constant 0 : index
    %386 = vector.load %arg2[%c4992, %c0_152] : memref<5248x128xbf16, #tpu.memory_space<vmem>>, vector<128x128xbf16>
    %387 = arith.truncf %385 : vector<8x128xf32> to vector<8x128xbf16>
    %cst_153 = arith.constant dense<0.000000e+00> : vector<8x128xf32>
    %388 = tpu.matmul %387, %386, %cst_153 {dimension_numbers = #tpu.dot_dimension_numbers<[1], [0], [0], [1], [0, 0, 1, 1], [], []>} : vector<8x128xbf16>, vector<128x128xbf16>, vector<8x128xf32> -> vector<8x128xf32>
    %c200 = arith.constant 200 : index
    %c0_154 = arith.constant 0 : index
    %389 = vector.load %arg3[%c200, %c0_154] : memref<232x128xf32, #tpu.memory_space<vmem>>, vector<1x128xf32>
    %390 = vector.broadcast %389 : vector<1x128xf32> to vector<8x128xf32>
    %391 = arith.addf %388, %390 : vector<8x128xf32>
    %c80_155 = arith.constant 80 : index
    %c0_156 = arith.constant 0 : index
    %392 = vector.load %arg3[%c80_155, %c0_156] : memref<232x128xf32, #tpu.memory_space<vmem>>, vector<1x128xf32>
    %393 = vector.broadcast %392 : vector<1x128xf32> to vector<8x128xf32>
    %394 = arith.mulf %391, %393 : vector<8x128xf32>
    %c88_157 = arith.constant 88 : index
    %c0_158 = arith.constant 0 : index
    %395 = vector.load %arg3[%c88_157, %c0_158] : memref<232x128xf32, #tpu.memory_space<vmem>>, vector<1x128xf32>
    %396 = vector.broadcast %395 : vector<1x128xf32> to vector<8x128xf32>
    %397 = arith.addf %394, %396 : vector<8x128xf32>
    %398 = arith.addf %383, %397 : vector<8x128xf32>
    %c208 = arith.constant 208 : index
    %c0_159 = arith.constant 0 : index
    %399 = vector.load %arg3[%c208, %c0_159] : memref<232x128xf32, #tpu.memory_space<vmem>>, vector<1x128xf32>
    %400 = vector.broadcast %399 : vector<1x128xf32> to vector<8x128xf32>
    %401 = arith.mulf %398, %400 : vector<8x128xf32>
    %c216 = arith.constant 216 : index
    %c0_160 = arith.constant 0 : index
    %402 = vector.load %arg3[%c216, %c0_160] : memref<232x128xf32, #tpu.memory_space<vmem>>, vector<1x128xf32>
    %403 = vector.broadcast %402 : vector<1x128xf32> to vector<8x128xf32>
    %404 = arith.addf %401, %403 : vector<8x128xf32>
    %cst_161 = arith.constant 0.000000e+00 : f32
    %405 = vector.broadcast %cst_161 : f32 to vector<8x128xf32>
    %406 = arith.maximumf %404, %405 : vector<8x128xf32>
    %407 = tpu.iota {dimensions = array<i32: 0>} : vector<2x8xi32>
    %408 = tpu.iota {dimensions = array<i32: 1>} : vector<2x8xi32>
    %c4_i32_162 = arith.constant 4 : i32
    %409 = vector.broadcast %c4_i32_162 : i32 to vector<2x8xi32>
    %410 = arith.muli %407, %409 : vector<2x8xi32>
    %411 = arith.cmpi sge, %408, %410 : vector<2x8xi32>
    %c4_i32_163 = arith.constant 4 : i32
    %412 = vector.broadcast %c4_i32_163 : i32 to vector<2x8xi32>
    %413 = arith.addi %410, %412 : vector<2x8xi32>
    %414 = arith.cmpi slt, %408, %413 : vector<2x8xi32>
    %415 = arith.andi %411, %414 : vector<2x8xi1>
    %416 = arith.extui %415 : vector<2x8xi1> to vector<2x8xi32>
    %417 = arith.sitofp %416 : vector<2x8xi32> to vector<2x8xf32>
    %418 = arith.truncf %417 : vector<2x8xf32> to vector<2x8xbf16>
    %419 = arith.truncf %406 : vector<8x128xf32> to vector<8x128xbf16>
    %cst_164 = arith.constant dense<0.000000e+00> : vector<2x128xf32>
    %420 = tpu.matmul %418, %419, %cst_164 {dimension_numbers = #tpu.dot_dimension_numbers<[1], [0], [0], [1], [0, 0, 1, 1], [], []>} : vector<2x8xbf16>, vector<8x128xbf16>, vector<2x128xf32> -> vector<2x128xf32>
    %c5120 = arith.constant 5120 : index
    %c0_165 = arith.constant 0 : index
    %421 = vector.load %arg2[%c5120, %c0_165] : memref<5248x128xbf16, #tpu.memory_space<vmem>>, vector<128x128xbf16>
    %422 = arith.truncf %420 : vector<2x128xf32> to vector<2x128xbf16>
    %cst_166 = arith.constant dense<0.000000e+00> : vector<2x128xf32>
    %423 = tpu.matmul %422, %421, %cst_166 {dimension_numbers = #tpu.dot_dimension_numbers<[1], [0], [0], [1], [0, 0, 1, 1], [], []>} : vector<2x128xbf16>, vector<128x128xbf16>, vector<2x128xf32> -> vector<2x128xf32>
    %c224 = arith.constant 224 : index
    %c0_167 = arith.constant 0 : index
    %424 = vector.load %arg3[%c224, %c0_167] : memref<232x128xf32, #tpu.memory_space<vmem>>, vector<1x128xf32>
    %425 = vector.broadcast %424 : vector<1x128xf32> to vector<2x128xf32>
    %426 = arith.addf %423, %425 : vector<2x128xf32>
    %c0_168 = arith.constant 0 : index
    %c0_169 = arith.constant 0 : index
    %c0_170 = arith.constant 0 : index
    %427 = vector.load %arg4[%c0_168, %c0_169, %c0_170] : memref<1x2x128xf32, #tpu.memory_space<vmem>>, vector<1x2x128xf32>
    %428 = vector.shape_cast %427 : vector<1x2x128xf32> to vector<2x128xf32>
    %429 = vector.shape_cast %426 : vector<2x128xf32> to vector<1x2x128xf32>
    tpu.vector_store %arg4[%c0_168, %c0_169, %c0_170], %429 {strides = array<i32>} : memref<1x2x128xf32, #tpu.memory_space<vmem>>, vector<1x2x128xf32>,
    return
  }
  func.func @transform_0(%arg0: i32) -> (i32, i32) {
    %c0_i32 = arith.constant 0 : i32
    %c0_i32_0 = arith.constant 0 : i32
    return %arg0, %c0_i32 : i32, i32
  }
  func.func @transform_1(%arg0: i32) -> (i32, i32) {
    %c0_i32 = arith.constant 0 : i32
    %c0_i32_0 = arith.constant 0 : i32
    %c0_i32_1 = arith.constant 0 : i32
    return %c0_i32, %c0_i32_0 : i32, i32
  }
  func.func @transform_2(%arg0: i32) -> (i32, i32) {
    %c0_i32 = arith.constant 0 : i32
    %c0_i32_0 = arith.constant 0 : i32
    %c0_i32_1 = arith.constant 0 : i32
    return %c0_i32, %c0_i32_0 : i32, i32
  }
  func.func @transform_3(%arg0: i32) -> (i32, i32, i32) {
    %c0_i32 = arith.constant 0 : i32
    %c0_i32_0 = arith.constant 0 : i32
    %c0_i32_1 = arith.constant 0 : i32
    return %arg0, %c0_i32, %c0_i32_0 : i32, i32, i32
  }
}

</mosaic_0001>

<bundles_post_ra>
// kernel: tile.83
= control target key start
LH: loop header
LB: loop body
LE: loop exit
PB: predicated region body
PF: predicated region fallthrough
CT: control target
= control target key end

     0   :  { %s28_s0 = inlined_call_operand.vmem [shape: f32[8], index: 0, kind: input, shape index: {}]   ;;  %s29_s1 = inlined_call_operand.vmem [shape: f32[16,8], index: 1, kind: output, shape index: {}]  }
   0x1   :  { %v4_v0 = vld [vmem:[%s28_s0] ss:$0 sm:$0xff] }
   0x2   :  { %5 = vst [vmem:[%s29_s1] sm:$0xff] %v4_v0  ;;  %8 = vst [vmem:[%s29_s1 + $0x8] sm:$0xff] %v4_v0 }

// kernel: tile.84
= control target key start
LH: loop header
LB: loop body
LE: loop exit
PB: predicated region body
PF: predicated region fallthrough
CT: control target
= control target key end

     0   :  { %s133_s10 = smov 120   ;;  %s134_s11 = smov 104   ;;  %vm3_vm0 = vcmask 64512   ;;  %vm9_vm1 = vcmask 1048512   ;;  %vm15_vm2 = vcmask 982912   ;;  %vm21_vm3 = vcmask 917312   ;;  %s209_s0 = inlined_call_operand.vmem [shape: f32[16,8], index: 0, kind: input, shape index: {}]   ;;  %s210_s1 = inlined_call_operand.vmem [shape: f32[1,128], index: 1, kind: output, shape index: {}]  }
   0x1   :  { %v103_v0 = vld [vmem:[%s209_s0 + $0xf] sm:$0x1]   ;;  %v105_v1 = vld [vmem:[%s209_s0 + $0xd] sm:$0x1]   ;;  %v104_v2 = vld [vmem:[%s209_s0 + $0xe] sm:$0x1]  }
   0x2   :  { %7 = vrot.lane.b32.xlu0 %v103_v0, %s133_s10  ;;  %19 = vrot.lane.b32.xlu1 %v105_v1, %s134_s11  ;;  %v106_v3 = vld [vmem:[%s209_s0 + $0xc] sm:$0x1]   ;;  %s135_s16 = smov 112   ;;  %s136_s17 = smov 96   ;;  %v107_v4 = vld [vmem:[%s209_s0 + $0xb] sm:$0x1]  }
   0x3   :  { %v108_v5 = vld [vmem:[%s209_s0 + $0xa] sm:$0x1]   ;;  %v2_v6 = vld [vmem:[%s209_s0] sm:$0x1]   ;;  %s137_s24 = smov 88   ;;  %s138_s25 = smov 80  }
   0x4   :  { %4 = vst.msk [vmem:[#allocation0] sm:$0x1] %vm3_vm0, %v2_v6   ;;  %v109_v7 = vld [vmem:[%s209_s0 + $0x9] sm:$0x1]   ;;  %v110_v8 = vld [vmem:[%s209_s0 + $0x8] sm:$0x1]  }
   0x5   :  { %s139_s30 = smov 72   ;;  %s140_s2 = smov 64   ;;  %v111_v9 = vld [vmem:[%s209_s0 + $0x7] sm:$0x1]   ;;  %v112_v10 = vld [vmem:[%s209_s0 + $0x6] sm:$0x1]  }
   0x6   :  { %13 = vrot.lane.b32.xlu0 %v104_v2, %s135_s16  ;;  %25 = vrot.lane.b32.xlu1 %v106_v3, %s136_s17  ;;  %s141_s7 = smov 56   ;;  %s142_s8 = smov 48   ;;  %v113_v11 = vld [vmem:[%s209_s0 + $0x5] sm:$0x1]   ;;  %v114_v12 = vld [vmem:[%s209_s0 + $0x4] sm:$0x1]  }
   0x7   :  { %s143_s13 = smov 40   ;;  %s144_s14 = smov 32   ;;  %v115_v13 = vld [vmem:[%s209_s0 + $0x3] sm:$0x1]   ;;  %v116_v14 = vld [vmem:[%s209_s0 + $0x2] sm:$0x1]  }
   0x8   :  { %s145_s19 = smov 24   ;;  %s146_s20 = smov 16   ;;  %v117_v15 = vld [vmem:[%s209_s0 + $0x1] sm:$0x1]   ;;  %vm27_vm4 = vcmask 851712   ;;  %vm33_vm5 = vcmask 786112  }
   0x9   :  { %s147_s0 = smov 8   ;;  %vm39_vm6 = vcmask 720512   ;;  %vm45_vm7 = vcmask 654912   ;;  %vm51_vm8 = vcmask 589312   ;;  %vm57_vm9 = vcmask 523712  }
   0xa   :  { %31 = vrot.lane.b32.xlu0 %v107_v4, %s137_s24  ;;  %37 = vrot.lane.b32.xlu1 %v108_v5, %s138_s25  ;;  %vm63_vm10 = vcmask 458112   ;;  %vm69_vm11 = vcmask 392512   ;;  %vm75_vm12 = vcmask 326912   ;;  %vm81_vm13 = vcmask 261312  }
   0xb   :  { %vm87_vm14 = vcmask 195712   ;;  %vm93_vm15 = vcmask 130112  }
   0xe   :  { %43 = vrot.lane.b32.xlu0 %v109_v7, %s139_s30  ;;  %49 = vrot.lane.b32.xlu1 %v110_v8, %s140_s2 }
  0x12   :  { %55 = vrot.lane.b32.xlu0 %v111_v9, %s141_s7  ;;  %61 = vrot.lane.b32.xlu1 %v112_v10, %s142_s8 }
  0x16   :  { %67 = vrot.lane.b32.xlu0 %v113_v11, %s143_s13  ;;  %73 = vrot.lane.b32.xlu1 %v114_v12, %s144_s14 }
  0x1a   :  { %79 = vrot.lane.b32.xlu0 %v115_v13, %s145_s19  ;;  %85 = vrot.lane.b32.xlu1 %v116_v14, %s146_s20 }
  0x1e   :  { %91 = vrot.lane.b32.xlu0 %v117_v15, %s147_s0 }
  0x74   :  { %v8_v16 = vpop.permute.xlu0 %7   ;;  %v20_v17 = vpop.permute.xlu1 %19  }
  0x75   :  { %10 = vst.msk [vmem:[#allocation0] sm:$0x1] %vm9_vm1, %v8_v16  }
  0x78   :  { %v14_v18 = vpop.permute.xlu0 %13   ;;  %v26_v19 = vpop.permute.xlu1 %25  }
  0x79   :  { %16 = vst.msk [vmem:[#allocation0] sm:$0x1] %vm15_vm2, %v14_v18  }
  0x7a   :  { %22 = vst.msk [vmem:[#allocation0] sm:$0x1] %vm21_vm3, %v20_v17  }
  0x7b   :  { %28 = vst.msk [vmem:[#allocation0] sm:$0x1] %vm27_vm4, %v26_v19  }
  0x7c   :  { %v32_v20 = vpop.permute.xlu0 %31   ;;  %v38_v21 = vpop.permute.xlu1 %37  }
  0x7d   :  { %34 = vst.msk [vmem:[#allocation0] sm:$0x1] %vm33_vm5, %v32_v20  }
  0x7e   :  { %40 = vst.msk [vmem:[#allocation0] sm:$0x1] %vm39_vm6, %v38_v21  }
  0x80   :  { %v44_v22 = vpop.permute.xlu0 %43   ;;  %v50_v23 = vpop.permute.xlu1 %49  }
  0x81   :  { %46 = vst.msk [vmem:[#allocation0] sm:$0x1] %vm45_vm7, %v44_v22  }
  0x82   :  { %52 = vst.msk [vmem:[#allocation0] sm:$0x1] %vm51_vm8, %v50_v23  }
  0x84   :  { %v56_v24 = vpop.permute.xlu0 %55   ;;  %v62_v25 = vpop.permute.xlu1 %61  }
  0x85   :  { %58 = vst.msk [vmem:[#allocation0] sm:$0x1] %vm57_vm9, %v56_v24  }
  0x86   :  { %64 = vst.msk [vmem:[#allocation0] sm:$0x1] %vm63_vm10, %v62_v25  }
  0x88   :  { %v68_v26 = vpop.permute.xlu0 %67   ;;  %v74_v27 = vpop.permute.xlu1 %73  }
  0x89   :  { %70 = vst.msk [vmem:[#allocation0] sm:$0x1] %vm69_vm11, %v68_v26  }
  0x8a   :  { %76 = vst.msk [vmem:[#allocation0] sm:$0x1] %vm75_vm12, %v74_v27  }
  0x8c   :  { %v80_v28 = vpop.permute.xlu0 %79   ;;  %v86_v29 = vpop.permute.xlu1 %85  }
  0x8d   :  { %82 = vst.msk [vmem:[#allocation0] sm:$0x1] %vm81_vm13, %v80_v28  }
  0x8e   :  { %88 = vst.msk [vmem:[#allocation0] sm:$0x1] %vm87_vm14, %v86_v29  }
  0x90   :  { %v92_v30 = vpop.permute.xlu0 %91  }
  0x91   :  { %94 = vst.msk [vmem:[#allocation0] sm:$0x1] %vm93_vm15, %v92_v30  }
  0x98   :  { %v99_v31 = vld [vmem:[#allocation0] sm:$0x1] }
  0x99   :  { %102 = vst [vmem:[%s210_s1] sm:$0x1] %v99_v31 }

// kernel: tile.103
= control target key start
LH: loop header
LB: loop body
LE: loop exit
PB: predicated region body
PF: predicated region fallthrough
CT: control target
= control target key end

     0   :  { %s22_s0 = inlined_call_operand.vmem [shape: f32[16], index: 0, kind: input, shape index: {}]   ;;  %s23_s1 = inlined_call_operand.vmem [shape: f32[8,16], index: 1, kind: output, shape index: {}]  }
   0x1   :  { %v4_v0 = vld [vmem:[%s22_s0] ss:$0 sm:$0xff] }
   0x2   :  { %5 = vst [vmem:[%s23_s1] sm:$0xff] %v4_v0 }

// kernel: tile.104
= control target key start
LH: loop header
LB: loop body
LE: loop exit
PB: predicated region body
PF: predicated region fallthrough
CT: control target
= control target key end

     0   :  { %s69_s10 = smov 112   ;;  %s70_s11 = smov 80   ;;  %vm3_vm0 = vcmask 130048   ;;  %vm9_vm1 = vcmask 1048448   ;;  %vm15_vm2 = vcmask 917248   ;;  %vm21_vm3 = vcmask 786048   ;;  %s113_s0 = inlined_call_operand.vmem [shape: f32[8,16], index: 0, kind: input, shape index: {}]   ;;  %s114_s1 = inlined_call_operand.vmem [shape: f32[1,128], index: 1, kind: output, shape index: {}]  }
   0x1   :  { %v55_v0 = vld [vmem:[%s113_s0 + $0x7] sm:$0x1]   ;;  %v57_v1 = vld [vmem:[%s113_s0 + $0x5] sm:$0x1]   ;;  %v56_v2 = vld [vmem:[%s113_s0 + $0x6] sm:$0x1]  }
   0x2   :  { %7 = vrot.lane.b32.xlu0 %v55_v0, %s69_s10  ;;  %19 = vrot.lane.b32.xlu1 %v57_v1, %s70_s11  ;;  %v58_v3 = vld [vmem:[%s113_s0 + $0x4] sm:$0x1]   ;;  %v2_v4 = vld [vmem:[%s113_s0] sm:$0x1]   ;;  %s71_s18 = smov 96   ;;  %s72_s19 = smov 64  }
   0x3   :  { %4 = vst.msk [vmem:[#allocation0] sm:$0x1] %vm3_vm0, %v2_v4   ;;  %v59_v5 = vld [vmem:[%s113_s0 + $0x3] sm:$0x1]   ;;  %v60_v6 = vld [vmem:[%s113_s0 + $0x2] sm:$0x1]  }
   0x4   :  { %s73_s24 = smov 48   ;;  %s74_s25 = smov 32   ;;  %v61_v7 = vld [vmem:[%s113_s0 + $0x1] sm:$0x1]   ;;  %vm27_vm4 = vcmask 654848   ;;  %vm33_vm5 = vcmask 523648  }
   0x5   :  { %s75_s0 = smov 16   ;;  %vm39_vm6 = vcmask 392448   ;;  %vm45_vm7 = vcmask 261248  }
   0x6   :  { %13 = vrot.lane.b32.xlu0 %v56_v2, %s71_s18  ;;  %25 = vrot.lane.b32.xlu1 %v58_v3, %s72_s19 }
   0xa   :  { %31 = vrot.lane.b32.xlu0 %v59_v5, %s73_s24  ;;  %37 = vrot.lane.b32.xlu1 %v60_v6, %s74_s25 }
   0xe   :  { %43 = vrot.lane.b32.xlu0 %v61_v7, %s75_s0 }
  0x74   :  { %v8_v8 = vpop.permute.xlu0 %7   ;;  %v20_v9 = vpop.permute.xlu1 %19  }
  0x75   :  { %10 = vst.msk [vmem:[#allocation0] sm:$0x1] %vm9_vm1, %v8_v8  }
  0x78   :  { %v14_v10 = vpop.permute.xlu0 %13   ;;  %v26_v11 = vpop.permute.xlu1 %25  }
  0x79   :  { %16 = vst.msk [vmem:[#allocation0] sm:$0x1] %vm15_vm2, %v14_v10  }
  0x7a   :  { %22 = vst.msk [vmem:[#allocation0] sm:$0x1] %vm21_vm3, %v20_v9  }
  0x7b   :  { %28 = vst.msk [vmem:[#allocation0] sm:$0x1] %vm27_vm4, %v26_v11  }
  0x7c   :  { %v32_v12 = vpop.permute.xlu0 %31   ;;  %v38_v13 = vpop.permute.xlu1 %37  }
  0x7d   :  { %34 = vst.msk [vmem:[#allocation0] sm:$0x1] %vm33_vm5, %v32_v12  }
  0x7e   :  { %40 = vst.msk [vmem:[#allocation0] sm:$0x1] %vm39_vm6, %v38_v13  }
  0x80   :  { %v44_v14 = vpop.permute.xlu0 %43  }
  0x81   :  { %46 = vst.msk [vmem:[#allocation0] sm:$0x1] %vm45_vm7, %v44_v14  }
  0x88   :  { %v51_v15 = vld [vmem:[#allocation0] sm:$0x1] }
  0x89   :  { %54 = vst [vmem:[%s114_s1] sm:$0x1] %v51_v15 }

// kernel: tile.128
= control target key start
LH: loop header
LB: loop body
LE: loop exit
PB: predicated region body
PF: predicated region fallthrough
CT: control target
= control target key end

     0   :  { %s22_s0 = inlined_call_operand.vmem [shape: f32[32], index: 0, kind: input, shape index: {}]   ;;  %s23_s1 = inlined_call_operand.vmem [shape: f32[4,32], index: 1, kind: output, shape index: {}]  }
   0x1   :  { %v4_v0 = vld [vmem:[%s22_s0] ss:$0 sm:$0xff] }
   0x2   :  { %5 = vst [vmem:[%s23_s1] sm:$0xf] %v4_v0 }

// kernel: tile.129
= control target key start
LH: loop header
LB: loop body
LE: loop exit
PB: predicated region body
PF: predicated region fallthrough
CT: control target
= control target key end

     0   :  { %vm8_vm0 = vcmask 261120   ;;  %s40_s8 = smov 32   ;;  %s41_s9 = smov 64   ;;  %vm14_vm1 = vcmask 1048320   ;;  %vm20_vm2 = vcmask 785920   ;;  %vm26_vm3 = vcmask 523520   ;;  %s58_s0 = inlined_call_operand.vmem [shape: f32[4,32], index: 0, kind: input, shape index: {}]   ;;  %s59_s1 = inlined_call_operand.vmem [shape: f32[1,128], index: 1, kind: output, shape index: {}]  }
   0x1   :  { %v5_v0 = vld [vmem:[%s58_s0] sm:$0xf]  ;;  %s39_s0 = smov 96  }
   0x2   :  { %6 = vst [vmem:[#allocation1] sm:$0xf] %v5_v0 }
   0x9   :  { %v11_v1 = vld [vmem:[#allocation1 + $0x3] sm:$0x1]   ;;  %v23_v2 = vld [vmem:[#allocation1 + $0x1] sm:$0x1]   ;;  %v7_v3 = vld [vmem:[#allocation1] sm:$0x1]  }
   0xa   :  { %12 = vrot.lane.b32.xlu0 %v11_v1, %s39_s0  ;;  %24 = vrot.lane.b32.xlu1 %v23_v2, %s40_s8  ;;  %v17_v4 = vld [vmem:[#allocation1 + $0x2] sm:$0x1]   ;;  %9 = vst.msk [vmem:[#allocation0] sm:$0x1] %vm8_vm0, %v7_v3  }
   0xe   :  { %18 = vrot.lane.b32.xlu0 %v17_v4, %s41_s9 }
  0x7c   :  { %v13_v5 = vpop.permute.xlu0 %12   ;;  %v25_v6 = vpop.permute.xlu1 %24  }
  0x7d   :  { %15 = vst.msk [vmem:[#allocation0] sm:$0x1] %vm14_vm1, %v13_v5  }
  0x80   :  { %v19_v7 = vpop.permute.xlu0 %18  }
  0x81   :  { %21 = vst.msk [vmem:[#allocation0] sm:$0x1] %vm20_vm2, %v19_v7  }
  0x82   :  { %27 = vst.msk [vmem:[#allocation0] sm:$0x1] %vm26_vm3, %v25_v6  }
  0x89   :  { %v32_v8 = vld [vmem:[#allocation0] sm:$0x1] }
  0x8a   :  { %35 = vst [vmem:[%s59_s1] sm:$0x1] %v32_v8 }

// kernel: forward.1
= control target key start
LH: loop header
LB: loop body
LE: loop exit
PB: predicated region body
PF: predicated region fallthrough
CT: control target
= control target key end

     0   :  { %v24_v10 = vlaneseq  ;;  %vm6272_vm6 = vmmov 1   ;;  %v6273_v37 = vmov 0.0   ;;  %s8003_s0 = inlined_call_operand.vmem [shape: f32[32,128], index: 0, kind: input, shape index: {}]   ;;  %s8004_s1 = inlined_call_operand.vmem [shape: bf16[5248,128], index: 1, kind: input, shape index: {}]   ;;  %s8005_s2 = inlined_call_operand.vmem [shape: f32[232,128], index: 2, kind: input, shape index: {}]   ;;  %s8006_s3 = inlined_call_operand.hbm [shape: f32[1,2,128], index: 3, kind: output, shape index: {}]  }
   0x1   :  { %v5906_v0 = vld [vmem:[%s8004_s1 + $0x78] sm:$0xff]   ;;  %v5908_v2 = vld [vmem:[%s8004_s1 + $0x70] sm:$0xff]   ;;  %v5911_v5 = vld [vmem:[%s8004_s1 + $0x68] sm:$0xff]  }
   0x2   :  { %v5907_v1 = vld [vmem:[%s8004_s1 + $0x38] sm:$0xff]   ;;  %5100 = vmatprep.subr.bf16.mxu0 %v5906_v0  ;;  %v5910_v4 = vld [vmem:[%s8004_s1 + $0x30] sm:$0xff]   ;;  %v5913_v7 = vld [vmem:[%s8004_s1 + $0x28] sm:$0xff]   ;;  %v6336_v14 = vshrl.u32 %v24_v10, 7 }
   0x3   :  { %5101 = vmatpush3.bf16.msra.mxu0 %v5907_v1  ;;  %v5909_v3 = vld [vmem:[%s8004_s1 + $0xb8] sm:$0xff]   ;;  %v5912_v6 = vld [vmem:[%s8004_s1 + $0xb0] sm:$0xff]   ;;  %v5914_v8 = vld [vmem:[%s8004_s1 + $0x60] sm:$0xff]  }
   0x4   :  { %5102 = vmatprep.subr.bf16.mxu0 %v5908_v2  ;;  %5568 = vmatprep.subr.bf16.mxu1 %v5909_v3  ;;  %v5915_v9 = vld [vmem:[%s8004_s1 + $0xa8] sm:$0xff]   ;;  %v5916_v11 = vld [vmem:[%s8004_s1 + $0x20] sm:$0xff]   ;;  %v5917_v12 = vld [vmem:[%s8004_s1 + $0x58] sm:$0xff]   ;;  %v6348_v18 = vadd.s32 8, %v6336_v14  ;;  %v33_v20 = vadd.s32 24, %v6336_v14  ;;  %v32_v22 = vadd.s32 16, %v6336_v14 }
   0x5   :  { %5569 = vmatpush3.bf16.msra.mxu1 %v5909_v3  ;;  %v5918_v13 = vld [vmem:[%s8004_s1 + $0xa0] sm:$0xff]   ;;  %v5919_v15 = vld [vmem:[%s8004_s1 + $0x18] sm:$0xff]   ;;  %v5920_v17 = vld [vmem:[%s8004_s1 + $0x50] sm:$0xff]   ;;  %vm26_vm0 = vcmp.lt.s32.totalorder %v6336_v14, 1  ;;  %vm34_vm1 = vcmp.eq.s32.totalorder %v6336_v14, 0  ;;  %vm66_vm2 = vcmp.lt.s32.totalorder %v6336_v14, 7 }
   0x6   :  { %5570 = vmatprep.subr.bf16.mxu1 %v5912_v6  ;;  %v5921_v16 = vld [vmem:[%s8004_s1 + $0x98] sm:$0xff]   ;;  %v5922_v19 = vld [vmem:[%s8004_s1 + $0x10] sm:$0xff]   ;;  %v5923_v23 = vld [vmem:[%s8004_s1 + $0x48] sm:$0xff]   ;;  %vm72_vm3 = vcmp.eq.s32.totalorder %v6348_v18, 15  ;;  %vm78_vm4 = vcmp.eq.s32.totalorder %v33_v20, 31  ;;  %vm40_vm5 = vcmp.eq.s32.totalorder %v32_v22, 16 }
   0x7   :  { %5103 = vmatpush3.bf16.msra.mxu0 %v5910_v4  ;;  %v5924_v21 = vld [vmem:[%s8004_s1 + $0x90] sm:$0xff]   ;;  %v5925_v24 = vld [vmem:[%s8004_s1 + $0x8] sm:$0xff]   ;;  %v5926_v25 = vld [vmem:[%s8004_s1 + $0x40] sm:$0xff]  }
   0x8   :  { %5104 = vmatprep.subr.bf16.mxu0 %v5911_v5  ;;  %v5927_v26 = vld [vmem:[%s8004_s1 + $0x88] sm:$0xff]   ;;  %v16_v27 = vld [vmem:[%s8003_s0] sm:$0xff]  ;;  %v19_v29 = vld [vmem:[%s8003_s0 + $0x18] sm:$0xff] }
   0x9   :  { %5571 = vmatpush3.bf16.msra.mxu1 %v5912_v6  ;;  %v17_v28 = vld [vmem:[%s8003_s0 + $0x8] sm:$0xff]  ;;  %v20_v30 = vrot.slane %v16_v27, 7  ;;  %v62_v32 = vrot.slane %v16_v27, 1  ;;  %vm46_vm7 = vmxor %vm34_vm1, %vm6272_vm6  ;;  %v5928_v34 = vld [vmem:[%s8004_s1] sm:$0xff]   ;;  %v23_v36 = vrot.slane %v19_v29, 7  ;;  %v65_v41 = vrot.slane %v19_v29, 1 }
   0xa   :  { %5572 = vmatprep.subr.bf16.mxu1 %v5915_v9  ;;  %v21_v31 = vrot.slane %v17_v28, 7  ;;  %v63_v33 = vrot.slane %v17_v28, 1  ;;  %v148_v35 = vpack.c.bf16 %v17_v28, %v16_v27  ;;  %v6390_v38 = vsel %vm46_vm7, 1.0, %v6273_v37  ;;  %v18_v39 = vld [vmem:[%s8003_s0 + $0x10] sm:$0xff]  ;;  %vm84_vm8 = vmxor %vm72_vm3, %vm6272_vm6  ;;  %v5929_v44 = vld [vmem:[%s8004_s1 + $0x80] sm:$0xff]  }
   0xb   :  { %5105 = vmatpush3.bf16.msra.mxu0 %v5913_v7  ;;  %v64_v40 = vrot.slane %v18_v39, 1  ;;  %v30_v43 = vsel %vm26_vm0, %v23_v36, %v20_v30  ;;  %v6406_v45 = vsel %vm84_vm8, 1.0, %v6273_v37  ;;  %vm86_vm9 = vmxor %vm78_vm4, %vm6272_vm6  ;;  %v22_v46 = vrot.slane %v18_v39, 7  ;;  %v5930_v51 = vld [vmem:[%s8004_s1 + $0x138] sm:$0xff]   ;;  %v5933_v3 = vld [vmem:[%s8004_s1 + $0x130] sm:$0xff]  }
   0xc   :  { %5106 = vmatprep.subr.bf16.mxu0 %v5914_v8  ;;  %v29_v42 = vsel %vm26_vm0, %v20_v30, %v21_v31  ;;  %334 = vmatprep.mubr.bf16.mxu0 %v148_v35  ;;  %v58_v47 = vmul.f32 %v6390_v38, %v30_v43  ;;  %v69_v49 = vsel %vm66_vm2, %v62_v32, %v63_v33  ;;  %v6416_v50 = vsel %vm86_vm9, 1.0, %v6273_v37  ;;  %vm48_vm10 = vmxor %vm40_vm5, %vm6272_vm6  ;;  %v5931_v54 = vld [vmem:[%s8004_s1 + $0x178] sm:$0xff]   ;;  %v5934_v4 = vld [vmem:[%s8004_s1 + $0x170] sm:$0xff]  }
   0xd   :  { %5573 = vmatpush3.bf16.msra.mxu1 %v5915_v9  ;;  %v68_v48 = vsel %vm66_vm2, %v63_v33, %v64_v40  ;;  %v70_v53 = vsel %vm66_vm2, %v65_v41, %v62_v32  ;;  %v67_v56 = vsel %vm66_vm2, %v64_v40, %v65_v41  ;;  %v6433_v58 = vsel %vm48_vm10, 1.0, %v6273_v37  ;;  %v5932_v59 = vld [vmem:[%s8004_s1 + $0xf8] sm:$0xff]   ;;  %v5935_v5 = vld [vmem:[%s8004_s1 + $0xf0] sm:$0xff]   ;;  %v5936_v6 = vld [vmem:[%s8004_s1 + $0x128] sm:$0xff]  }
   0xe   :  { %5574 = vmatprep.subr.bf16.mxu1 %v5918_v13  ;;  %v96_v52 = vmul.f32 %v6406_v45, %v68_v48  ;;  %v147_v55 = vpack.c.bf16 %v29_v42, %v58_v47  ;;  %v98_v57 = vmul.f32 %v6416_v50, %v70_v53  ;;  %v151_v61 = vpack.c.bf16 %v19_v29, %v18_v39  ;;  %v5937_v7 = vld [vmem:[%s8004_s1 + $0x168] sm:$0xff]   ;;  %v5939_v9 = vld [vmem:[%s8004_s1 + $0x120] sm:$0xff]   ;;  %v5947_v20 = vld [vmem:[%s8004_s1 + $0xd0] sm:$0xff]  }
   0xf   :  { %5107 = vmatpush3.bf16.msra.mxu0 %v5916_v11  ;;  %v28_v62 = vsel %vm26_vm0, %v21_v31, %v22_v46  ;;  %v27_v1 = vsel %vm26_vm0, %v22_v46, %v23_v36  ;;  %v5938_v8 = vld [vmem:[%s8004_s1 + $0xe8] sm:$0xff]   ;;  %v5940_v11 = vld [vmem:[%s8004_s1 + $0x160] sm:$0xff]   ;;  %v5954_v27 = vld [vmem:[%s8004_s1 + $0x1f8] sm:$0xff]  }
  0x10   :  { %5108 = vmatprep.subr.bf16.mxu0 %v5917_v12  ;;  %v149_v60 = vpack.c.bf16 %v96_v52, %v69_v49  ;;  %v152_v63 = vpack.c.bf16 %v98_v57, %v67_v56  ;;  %v60_v0 = vmul.f32 %v6433_v58, %v28_v62  ;;  %v5941_v12 = vld [vmem:[%s8004_s1 + $0xe0] sm:$0xff]   ;;  %v5949_v22 = vld [vmem:[%s8004_s1 + $0x148] sm:$0xff]   ;;  %v6512_v28 = vld [vmem:[%s8004_s1 + $0x238] sm:$0xff]  }
  0x11   :  { %5575 = vmatpush3.bf16.msra.mxu1 %v5918_v13  ;;  %v5942_v13 = vld [vmem:[%s8004_s1 + $0x118] sm:$0xff]   ;;  %v4729_v30 = vld [vmem:[%s8005_s2 + $0x60] ss:$0 sm:$0xff] }
  0x12   :  { %5576 = vmatprep.subr.bf16.mxu1 %v5921_v16  ;;  %5584 = vmatprep.mubr.bf16.mxu1 %v149_v60  ;;  %v150_v2 = vpack.c.bf16 %v27_v1, %v60_v0 }
  0x13   :  { %5109 = vmatpush3.bf16.msra.mxu0 %v5919_v15  ;;  %v5943_v15 = vld [vmem:[%s8004_s1 + $0x158] sm:$0xff]  }
  0x14   :  { %5110 = vmatprep.subr.bf16.mxu0 %v5920_v17  ;;  %v5945_v17 = vld [vmem:[%s8004_s1 + $0x110] sm:$0xff]  }
  0x15   :  { %5577 = vmatpush3.bf16.msra.mxu1 %v5921_v16  ;;  %v5944_v16 = vld [vmem:[%s8004_s1 + $0xd8] sm:$0xff]  }
  0x16   :  { %5578 = vmatprep.subr.bf16.mxu1 %v5924_v21 }
  0x17   :  { %5111 = vmatpush3.bf16.msra.mxu0 %v5922_v19  ;;  %v5946_v19 = vld [vmem:[%s8004_s1 + $0x150] sm:$0xff]  }
  0x18   :  { %5112 = vmatprep.subr.bf16.mxu0 %v5923_v23  ;;  %v5950_v23 = vld [vmem:[%s8004_s1 + $0xc8] sm:$0xff]  }
  0x19   :  { %5579 = vmatpush3.bf16.msra.mxu1 %v5924_v21  ;;  %v5948_v21 = vld [vmem:[%s8004_s1 + $0x108] sm:$0xff]  }
  0x1a   :  { %5580 = vmatprep.subr.bf16.mxu1 %v5927_v26 }
  0x1b   :  { %5113 = vmatpush3.bf16.msra.mxu0 %v5925_v24  ;;  %v5951_v24 = vld [vmem:[%s8004_s1 + $0x100] sm:$0xff]  }
  0x1c   :  { %5114 = vmatprep.subr.bf16.mxu0 %v5926_v25  ;;  %v5952_v25 = vld [vmem:[%s8004_s1 + $0x140] sm:$0xff]  }
  0x1d   :  { %5581 = vmatpush3.bf16.msra.mxu1 %v5927_v26  ;;  %v5953_v26 = vld [vmem:[%s8004_s1 + $0xc0] sm:$0xff]  }
  0x1e   :  { %5582 = vmatprep.subr.bf16.mxu1 %v5929_v44 }
  0x1f   :  { %5115 = vmatpush3.bf16.msra.mxu0 %v5928_v34 }
  0x20   :  { %5138 = vmatprep.subr.bf16.mxu0 %v5930_v51 }
  0x21   :  { %5583 = vmatpush3.bf16.msra.mxu1 %v5929_v44  ;;  %v4754_v44 = vld [vmem:[%s8005_s2] ss:$0 sm:$0xff] }
  0x22   :  { %335 = vmatmul.mubr.bf16.vlgmr.msra.gmra.mxu0 %v147_v55  ;;  %5588 = vmatprep.subr.bf16.mxu1 %v5931_v54 }
  0x23   :  { %342 = vmatprep.mubr.bf16.mxu0 %v151_v61  ;;  %5139 = vmatpush3.bf16.msra.mxu0 %v5932_v59 }
  0x24   :  { %5585 = vmatmul.mubr.bf16.vlgmr.msra.gmra.mxu1 %v152_v63  ;;  %5140 = vmatprep.subr.bf16.mxu0 %v5933_v3 }
  0x25   :  { %5589 = vmatpush3.bf16.msra.mxu1 %v5931_v54  ;;  %v4755_v54 = vld [vmem:[%s8005_s2 + $0x8] ss:$0 sm:$0xff] }
  0x26   :  { %5590 = vmatprep.subr.bf16.mxu1 %v5934_v4 }
  0x27   :  { %5141 = vmatpush3.bf16.msra.mxu0 %v5935_v5  ;;  %v6544_v5 = vld [vmem:[%s8005_s2 + $0x20] ss:$0 sm:$0xff] }
  0x28   :  { %5142 = vmatprep.subr.bf16.mxu0 %v5936_v6  ;;  %v6549_v6 = vld [vmem:[%s8005_s2 + $0x10] ss:$0 sm:$0xff] }
  0x29   :  { %5591 = vmatpush3.bf16.msra.mxu1 %v5934_v4 }
  0x2a   :  { %343 = vmatmul.mubr.bf16.gmra.mxu0 %v150_v2  ;;  %5592 = vmatprep.subr.bf16.mxu1 %v5937_v7 }
  0x2b   :  { %5143 = vmatpush3.bf16.msra.mxu0 %v5938_v8 }
  0x2c   :  { %5144 = vmatprep.subr.bf16.mxu0 %v5939_v9 }
  0x2d   :  { %5593 = vmatpush3.bf16.msra.mxu1 %v5937_v7 }
  0x2e   :  { %5594 = vmatprep.subr.bf16.mxu1 %v5940_v11 }
  0x2f   :  { %5145 = vmatpush3.bf16.msra.mxu0 %v5941_v12 }
  0x30   :  { %5146 = vmatprep.subr.bf16.mxu0 %v5942_v13 }
  0x31   :  { %5595 = vmatpush3.bf16.msra.mxu1 %v5940_v11 }
  0x32   :  { %5596 = vmatprep.subr.bf16.mxu1 %v5943_v15 }
  0x33   :  { %5147 = vmatpush3.bf16.msra.mxu0 %v5944_v16 }
  0x34   :  { %5148 = vmatprep.subr.bf16.mxu0 %v5945_v17 }
  0x35   :  { %5597 = vmatpush3.bf16.msra.mxu1 %v5943_v15 }
  0x36   :  { %5598 = vmatprep.subr.bf16.mxu1 %v5946_v19 }
  0x37   :  { %5149 = vmatpush3.bf16.msra.mxu0 %v5947_v20 }
  0x38   :  { %5150 = vmatprep.subr.bf16.mxu0 %v5948_v21 }
  0x39   :  { %5599 = vmatpush3.bf16.msra.mxu1 %v5946_v19 }
  0x3a   :  { %5600 = vmatprep.subr.bf16.mxu1 %v5949_v22 }
  0x3b   :  { %5151 = vmatpush3.bf16.msra.mxu0 %v5950_v23 }
  0x3c   :  { %5152 = vmatprep.subr.bf16.mxu0 %v5951_v24 }
  0x3d   :  { %5601 = vmatpush3.bf16.msra.mxu1 %v5949_v22  ;;  %v6566_v22 = vld [vmem:[%s8005_s2 + $0x28] ss:$0 sm:$0xff] }
  0x3e   :  { %5602 = vmatprep.subr.bf16.mxu1 %v5952_v25 }
  0x3f   :  { %5153 = vmatpush3.bf16.msra.mxu0 %v5953_v26  ;;  %v6574_v26 = vld [vmem:[%s8005_s2 + $0x18] ss:$0 sm:$0xff] }
  0x40   :  { %5176 = vmatprep.subr.bf16.mxu0 %v5954_v27 }
  0x41   :  { %5603 = vmatpush3.bf16.msra.mxu1 %v5952_v25 }
  0x42   :  { %5608 = vmatprep.subr.bf16.mxu1 %v6512_v28 }
  0xe2   :  { %v5116_v29 = vpop.f32.mrf.mxu0 }
  0xe4   :  { %v5117_v31 = vpop.f32.mrf.mxu0  ;;  %v5586_v33 = vpop.f32.mrf.mxu1 }
  0xe5   :  { %v5118_v32 = vadd.f32 %v5117_v31, %v5116_v29 }
  0xe6   :  { %v5119_v34 = vpop.f32.mrf.mxu0  ;;  %v385_v36 = vpop.f32.mrf.mxu1 }
  0xe7   :  { %v337_v35 = vadd.f32 %v5118_v32, %v4729_v30 }
  0xe8   :  { %v5120_v39 = vpop.f32.mrf.mxu0  ;;  %v5587_v41 = vpop.f32.mrf.mxu1 }
  0xe9   :  { %v5121_v40 = vadd.f32 %v5120_v39, %v5119_v34  ;;  %v6518_v43 = vadd.f32 %v385_v36, %v337_v35 }
  0xea   :  { %v5122_v42 = vpop.f32.mrf.mxu0  ;;  %v388_v47 = vpop.f32.mrf.mxu1 }
  0xeb   :  { %v340_v46 = vadd.f32 %v5121_v40, %v4729_v30  ;;  %v405_v53 = vmul.f32 %v4754_v44, %v6518_v43  ;;  %v458_v56 = vmax.f32 %v6518_v43, 0.0 }
  0xec   :  { %v5123_v48 = vpop.f32.mrf.mxu0 }
  0xed   :  { %v5124_v49 = vadd.f32 %v5123_v48, %v5122_v42  ;;  %v6523_v51 = vadd.f32 %v388_v47, %v340_v46  ;;  %v6537_v1 = vadd.f32 %v4755_v54, %v405_v53  ;;  %v462_v12 = vrot.slane %v458_v56, 7  ;;  %v5956_v53 = vld [vmem:[%s8004_s1 + $0x1b8] sm:$0xff]  }
  0xee   :  { %v5125_v52 = vpop.f32.mrf.mxu0  ;;  %v474_v15 = vrot.slane %v458_v56, 1 }
  0xef   :  { %v345_v55 = vadd.f32 %v5124_v49, %v4729_v30  ;;  %v406_v57 = vmul.f32 %v4754_v44, %v6523_v51  ;;  %v6532_v59 = vmax.f32 %v6523_v51, 0.0  ;;  %v6557_v16 = vmax.f32 %v6537_v1, 0.0 }
  0xf0   :  { %v5126_v60 = vpop.f32.mrf.mxu0 }
  0xf1   :  { %v394_v61 = vadd.f32 %v5586_v33, %v345_v55  ;;  %v5127_v62 = vadd.f32 %v5126_v60, %v5125_v52  ;;  %v6534_v63 = vadd.f32 %v4755_v54, %v406_v57  ;;  %v535_v0 = vpack.c.bf16 %v6532_v59, %v458_v56  ;;  %v5957_v60 = vld [vmem:[%s8004_s1 + $0x1f0] sm:$0xff]  }
  0xf2   :  { %v475_v9 = vrot.slane %v6532_v59, 1  ;;  %v463_v23 = vrot.slane %v6532_v59, 7 }
  0xf3   :  { %v407_v2 = vmul.f32 %v4754_v44, %v394_v61  ;;  %v6539_v3 = vmax.f32 %v394_v61, 0.0  ;;  %v348_v4 = vadd.f32 %v5127_v62, %v4729_v30  ;;  %721 = vmatprep.mubr.bf16.mxu0 %v535_v0  ;;  %v6554_v13 = vmax.f32 %v6534_v63, 0.0 }
  0xf4   :  { %v425_v21 = vmul.f32 %v6549_v6, %v394_v61  ;;  %v480_v30 = vsel %vm66_vm2, %v474_v15, %v475_v9  ;;  %v468_v55 = vsel %vm26_vm0, %v462_v12, %v463_v23 }
  0xf5   :  { %v416_v7 = vadd.f32 %v4755_v54, %v407_v2  ;;  %v397_v8 = vadd.f32 %v5587_v41, %v348_v4  ;;  %v476_v11 = vrot.slane %v6539_v3, 1  ;;  %v822_v34 = vrot.slane %v6554_v13, 1 }
  0xf6   :  { %v821_v41 = vrot.slane %v6557_v16, 1  ;;  %v434_v42 = vadd.f32 %v6574_v26, %v425_v21 }
  0xf7   :  { %v443_v17 = vmul.f32 %v6544_v5, %v416_v7  ;;  %v6560_v19 = vmax.f32 %v416_v7, 0.0  ;;  %v408_v20 = vmul.f32 %v4754_v44, %v397_v8  ;;  %v461_v24 = vmax.f32 %v397_v8, 0.0 }
  0xf8   :  { %v479_v25 = vsel %vm66_vm2, %v475_v9, %v476_v11  ;;  %v426_v29 = vmul.f32 %v6549_v6, %v397_v8  ;;  %v827_v57 = vsel %vm66_vm2, %v821_v41, %v822_v34 }
  0xf9   :  { %v6576_v27 = vadd.f32 %v4755_v54, %v408_v20  ;;  %v483_v31 = vmul.f32 %v6406_v45, %v479_v25  ;;  %v465_v32 = vrot.slane %v461_v24, 7  ;;  %v477_v33 = vrot.slane %v461_v24, 1 }
  0xfa   :  { %v823_v35 = vrot.slane %v6560_v19, 1  ;;  %v452_v36 = vadd.f32 %v6566_v22, %v443_v17  ;;  %v435_v48 = vadd.f32 %v6574_v26, %v426_v29  ;;  %v464_v54 = vrot.slane %v6539_v3, 7 }
  0xfb   :  { %v444_v39 = vmul.f32 %v6544_v5, %v6576_v27  ;;  %v536_v40 = vpack.c.bf16 %v483_v31, %v480_v30  ;;  %v469_v44 = vsel %vm26_vm0, %v465_v32, %v462_v12  ;;  %v481_v46 = vsel %vm66_vm2, %v477_v33, %v474_v15  ;;  %v5958_v12 = vld [vmem:[%s8004_s1 + $0x230] sm:$0xff]  }
  0xfc   :  { %v826_v47 = vsel %vm66_vm2, %v822_v34, %v823_v35  ;;  %v470_v52 = vmul.f32 %v6390_v38, %v469_v44  ;;  %v485_v56 = vmul.f32 %v6416_v50, %v481_v46  ;;  %v456_v61 = vadd.f32 %v452_v36, %v434_v42 }
  0xfd   :  { %v453_v49 = vadd.f32 %v6566_v22, %v444_v39  ;;  %5604 = vmatprep.mubr.bf16.mxu1 %v536_v40  ;;  %v830_v59 = vmul.f32 %v6406_v45, %v826_v47  ;;  %v478_v2 = vsel %vm66_vm2, %v476_v11, %v477_v33  ;;  %v538_v9 = vpack.c.bf16 %v461_v24, %v6539_v3 }
  0xfe   :  { %v534_v0 = vpack.c.bf16 %v468_v55, %v470_v52  ;;  %v539_v4 = vpack.c.bf16 %v485_v56, %v478_v2 }
  0xff   :  { %v457_v62 = vadd.f32 %v453_v49, %v435_v48  ;;  %v883_v7 = vpack.c.bf16 %v830_v59, %v827_v57 }
 0x100   :  { %722 = vmatmul.mubr.bf16.vlgmr.msra.gmra.mxu0 %v534_v0 }
 0x101   :  { %v1159_v8 = vmax.f32 %v457_v62, 0.0 }
 0x102   :  { %8 = vsyncpa [#allocation3], 0  ;;  %5605 = vmatmul.mubr.bf16.vlgmr.msra.gmra.mxu1 %v539_v4  ;;  %5177 = vmatpush3.bf16.msra.mxu0 %v5956_v53  ;;  %v5959_v15 = vld [vmem:[%s8004_s1 + $0x1b0] sm:$0xff]   ;;  %v467_v11 = vsel %vm26_vm0, %v463_v23, %v464_v54  ;;  %v1158_v17 = vmax.f32 %v456_v61, 0.0  ;;  %v5960_v3 = vld [vmem:[%s8004_s1 + $0x1e8] sm:$0xff]   ;;  %v466_v21 = vsel %vm26_vm0, %v464_v54, %v465_v32  ;;  %v882_v30 = vpack.c.bf16 %v6554_v13, %v6557_v16  ;;  %s6275_s12 = smov [#allocation2]  }
 0x103   :  { %5609 = vmatpush3.bf16.msra.mxu1 %v6512_v28  ;;  %729 = vmatprep.mubr.bf16.mxu0 %v538_v9  ;;  %v5961_v20 = vld [vmem:[%s8004_s1 + $0x228] sm:$0xff]   ;;  %v472_v23 = vmul.f32 %v6433_v58, %v467_v11  ;;  %v5963_v29 = vld [vmem:[%s8004_s1 + $0x1e0] sm:$0xff]   ;;  %v5966_v33 = vld [vmem:[%s8004_s1 + $0x1d8] sm:$0xff]   ;;  %v808_v40 = vmax.f32 %v6576_v27, 0.0  ;;  %v809_v49 = vrot.slane %v6557_v16, 7  ;;  %v442_v54 = vmul.f32 %v6544_v5, %v6534_v63  ;;  %s4717_s13 = sshll.u32 %s6275_s12, 4  ;;  %s4718_s13 = int_to_ptr.vmem [resolvable:$true] %s4717_s13 }
 0x104   :  { %5624 = vmatprep.mubr.bf16.mxu1 %v883_v7  ;;  %5178 = vmatprep.subr.bf16.mxu0 %v5957_v60  ;;  %v6636_v24 = vpack.c.bf16 %v1159_v8, %v1158_v17  ;;  %v5962_v28 = vld [vmem:[%s8004_s1 + $0x1a8] sm:$0xff]   ;;  %v5964_v31 = vld [vmem:[%s8004_s1 + $0x220] sm:$0xff]   ;;  %v5967_v34 = vld [vmem:[%s8004_s1 + $0x218] sm:$0xff]   ;;  %v441_v59 = vmul.f32 %v6544_v5, %v6537_v1  ;;  %v424_v60 = vmul.f32 %v6549_v6, %v6523_v51  ;;  %v810_v63 = vrot.slane %v6554_v13, 7  ;;  %p6255_p1 = scmp.lt.s32.totalorder %s4718_s13, %s4718_s13 }
 0x105   :  { %5610 = vmatprep.subr.bf16.mxu1 %v5958_v12  ;;  %v537_v25 = vpack.c.bf16 %v466_v21, %v472_v23  ;;  %v5965_v32 = vld [vmem:[%s8004_s1 + $0x1a0] sm:$0xff]   ;;  %v5968_v36 = vld [vmem:[%s8004_s1 + $0x198] sm:$0xff]   ;;  %v5969_v39 = vld [vmem:[%s8004_s1 + $0x1d0] sm:$0xff]   ;;  %v812_v47 = vrot.slane %v808_v40, 7  ;;  %v824_v48 = vrot.slane %v808_v40, 1  ;;  %v423_v1 = vmul.f32 %v6549_v6, %v6518_v43 }
 0x106   :  { %5179 = vmatpush3.bf16.msra.mxu0 %v5959_v15  ;;  %v5970_v42 = vld [vmem:[%s8004_s1 + $0x210] sm:$0xff]   ;;  %v5972_v46 = vld [vmem:[%s8004_s1 + $0x1c8] sm:$0xff]   ;;  %v5975_v53 = vld [vmem:[%s8004_s1 + $0x1c0] sm:$0xff]   ;;  %v451_v5 = vadd.f32 %v6566_v22, %v442_v54  ;;  %v433_v13 = vadd.f32 %v6574_v26, %v424_v60  ;;  %v815_v62 = vsel %vm26_vm0, %v809_v49, %v810_v63  ;;  %v811_v0 = vrot.slane %v6560_v19, 7 }
 0x107   :  { %5611 = vmatpush3.bf16.msra.mxu1 %v5958_v12  ;;  %5180 = vmatprep.subr.bf16.mxu0 %v5960_v3  ;;  %v5971_v44 = vld [vmem:[%s8004_s1 + $0x190] sm:$0xff]   ;;  %v5973_v27 = vld [vmem:[%s8004_s1 + $0x208] sm:$0xff]   ;;  %v5976_v55 = vld [vmem:[%s8004_s1 + $0x200] sm:$0xff]   ;;  %v816_v56 = vsel %vm26_vm0, %v812_v47, %v809_v49  ;;  %v828_v57 = vsel %vm66_vm2, %v824_v48, %v821_v41  ;;  %v450_v2 = vadd.f32 %v6566_v22, %v441_v59  ;;  %vm6274_vm11 = vmmov 0  }
 0x108   :  { %5612 = vmatprep.subr.bf16.mxu1 %v5961_v20  ;;  %730 = vmatmul.mubr.bf16.gmra.mxu0 %v537_v25  ;;  %v5974_v52 = vld [vmem:[%s8004_s1 + $0x188] sm:$0xff]   ;;  %v5977_v61 = vld [vmem:[%s8004_s1 + $0x180] sm:$0xff]   ;;  %v817_v16 = vmul.f32 %v6390_v38, %v816_v56  ;;  %v5978_v41 = vld [vmem:[%s8004_s1 + $0x278] sm:$0xff]   ;;  %v832_v51 = vmul.f32 %v6416_v50, %v828_v57  ;;  %v825_v43 = vsel %vm66_vm2, %v823_v35, %v824_v48  ;;  %vm1644_vm14 = vcmask 261120  }
 0x109   :  { %1068 = vmatprep.mubr.bf16.mxu0 %v882_v30  ;;  %v432_v6 = vadd.f32 %v6574_v26, %v423_v1  ;;  %v885_v8 = vpack.c.bf16 %v808_v40, %v6560_v19  ;;  %v5979_v9 = vld [vmem:[%s8004_s1 + $0x270] sm:$0xff]   ;;  %v455_v12 = vadd.f32 %v451_v5, %v433_v13  ;;  %v814_v22 = vsel %vm26_vm0, %v810_v63, %v811_v0  ;;  %v5980_v19 = vld [vmem:[%s8004_s1 + $0x268] sm:$0xff]   ;;  %v5981_v21 = vld [vmem:[%s8004_s1 + $0x260] sm:$0xff]  }
 0x10a   :  { %5181 = vmatpush3.bf16.msra.mxu0 %v5962_v28  ;;  %v881_v4 = vpack.c.bf16 %v815_v62, %v817_v16  ;;  %v886_v7 = vpack.c.bf16 %v832_v51, %v825_v43  ;;  %v813_v26 = vsel %vm26_vm0, %v811_v0, %v812_v47  ;;  %v819_v11 = vmul.f32 %v6433_v58, %v814_v22  ;;  %v5982_v23 = vld [vmem:[%s8004_s1 + $0x258] sm:$0xff]   ;;  %v5983_v28 = vld [vmem:[%s8004_s1 + $0x250] sm:$0xff]   ;;  %v5984_v25 = vld [vmem:[%s8004_s1 + $0x248] sm:$0xff]  }
 0x10b   :  { %5613 = vmatpush3.bf16.msra.mxu1 %v5961_v20  ;;  %5182 = vmatprep.subr.bf16.mxu0 %v5963_v29  ;;  %v454_v15 = vadd.f32 %v450_v2, %v432_v6  ;;  %v1157_v35 = vmax.f32 %v455_v12, 0.0  ;;  %v5985_v29 = vld [vmem:[%s8004_s1 + $0x240] sm:$0xff]   ;;  %v5986_v30 = vld [vmem:[%s8004_s1 + $0x2f8] sm:$0xff]   ;;  %v5994_v40 = vld [vmem:[%s8004_s1 + $0x328] sm:$0xff]   ;;  %vm1696_vm15 = vcmp.eq.s32.totalorder %v6348_v18, 8  ;;  %vm1711_vm3 = vcmp.eq.s32.totalorder %v6336_v14, 7 }
 0x10c   :  { %5614 = vmatprep.subr.bf16.mxu1 %v5964_v31  ;;  %v884_v3 = vpack.c.bf16 %v813_v26, %v819_v11  ;;  %v5998_v47 = vld [vmem:[%s8004_s1 + $0x2d8] sm:$0xff]   ;;  %v6001_v49 = vld [vmem:[%s8004_s1 + $0x2d0] sm:$0xff]   ;;  %v6004_v54 = vld [vmem:[%s8004_s1 + $0x2c8] sm:$0xff]   ;;  %vm3329_vm7 = vcmp.eq.s32.totalorder %v6336_v14, 3 }
 0x10d   :  { %v1156_v17 = vmax.f32 %v454_v15, 0.0  ;;  %v6000_v48 = vld [vmem:[%s8004_s1 + $0x318] sm:$0xff]   ;;  %v6006_v56 = vld [vmem:[%s8004_s1 + $0x308] sm:$0xff]   ;;  %v6007_v57 = vld [vmem:[%s8004_s1 + $0x2c0] sm:$0xff]  }
 0x10e   :  { %5183 = vmatpush3.bf16.msra.mxu0 %v5965_v32  ;;  %v5988_v32 = vld [vmem:[%s8004_s1 + $0x338] sm:$0xff]   ;;  %v6008_v59 = vld [vmem:[%s8004_s1 + $0x280] sm:$0xff]   ;;  %vm1700_vm4 = vmxor %vm1696_vm15, %vm6272_vm6  ;;  %vm4552_vm15 = vcmask 64512  }
 0x10f   :  { %5615 = vmatpush3.bf16.msra.mxu1 %v5964_v31  ;;  %5184 = vmatprep.subr.bf16.mxu0 %v5966_v33  ;;  %v1176_v20 = vpack.c.bf16 %v1157_v35, %v1156_v17  ;;  %v5987_v31 = vld [vmem:[%s8004_s1 + $0x2b8] sm:$0xff]   ;;  %v5989_v33 = vld [vmem:[%s8004_s1 + $0x2f0] sm:$0xff]   ;;  %v6009_v60 = vld [vmem:[%s8004_s1 + $0x300] sm:$0xff]  }
 0x110   :  { %5616 = vmatprep.subr.bf16.mxu1 %v5967_v34  ;;  %v4787_v17 = vld [vmem:[%s8005_s2 + $0x70] ss:$0 sm:$0xff]  ;;  %vm1715_vm5 = vmxor %vm1711_vm3, %vm6272_vm6 }
 0x111   :  { %vm3330_vm9 = vmor %vm3329_vm7, %vm1711_vm3 }
 0x112   :  { %5185 = vmatpush3.bf16.msra.mxu0 %v5968_v36  ;;  %v5992_v36 = vld [vmem:[%s8004_s1 + $0x2e8] sm:$0xff]  }
 0x113   :  { %5617 = vmatpush3.bf16.msra.mxu1 %v5967_v34  ;;  %5186 = vmatprep.subr.bf16.mxu0 %v5969_v39  ;;  %v5990_v34 = vld [vmem:[%s8004_s1 + $0x2b0] sm:$0xff]   ;;  %v5993_v39 = vld [vmem:[%s8004_s1 + $0x2a8] sm:$0xff]  }
 0x114   :  { %5618 = vmatprep.subr.bf16.mxu1 %v5970_v42 }
 0x116   :  { %5187 = vmatpush3.bf16.msra.mxu0 %v5971_v44  ;;  %v5996_v44 = vld [vmem:[%s8004_s1 + $0x2a0] sm:$0xff]  }
 0x117   :  { %5619 = vmatpush3.bf16.msra.mxu1 %v5970_v42  ;;  %5188 = vmatprep.subr.bf16.mxu0 %v5972_v46  ;;  %v5995_v42 = vld [vmem:[%s8004_s1 + $0x2e0] sm:$0xff]  }
 0x118   :  { %5620 = vmatprep.subr.bf16.mxu1 %v5973_v27  ;;  %v5997_v46 = vld [vmem:[%s8004_s1 + $0x320] sm:$0xff]  }
 0x11a   :  { %5189 = vmatpush3.bf16.msra.mxu0 %v5974_v52  ;;  %v6002_v52 = vld [vmem:[%s8004_s1 + $0x290] sm:$0xff]  }
 0x11b   :  { %5621 = vmatpush3.bf16.msra.mxu1 %v5973_v27  ;;  %5190 = vmatprep.subr.bf16.mxu0 %v5975_v53  ;;  %v5999_v27 = vld [vmem:[%s8004_s1 + $0x298] sm:$0xff]   ;;  %v6003_v53 = vld [vmem:[%s8004_s1 + $0x310] sm:$0xff]  }
 0x11c   :  { %5622 = vmatprep.subr.bf16.mxu1 %v5976_v55 }
 0x11e   :  { %5191 = vmatpush3.bf16.msra.mxu0 %v5977_v61 }
 0x11f   :  { %5623 = vmatpush3.bf16.msra.mxu1 %v5976_v55  ;;  %5628 = vmatprep.subr.bf16.mxu0 %v5978_v41  ;;  %v6005_v55 = vld [vmem:[%s8004_s1 + $0x288] sm:$0xff]  }
 0x120   :  { %5224 = vmatprep.subr.bf16.mxu1 %v5986_v30 }
 0x121   :  { %1069 = vmatmul.mubr.bf16.vlgmr.msra.gmra.mxu0 %v881_v4 }
 0x122   :  { %5625 = vmatmul.mubr.bf16.vlgmr.msra.gmra.mxu1 %v886_v7  ;;  %1076 = vmatprep.mubr.bf16.mxu0 %v885_v8 }
 0x123   :  { %5629 = vmatpush3.bf16.msra.mxu0 %v5978_v41  ;;  %5225 = vmatpush3.bf16.msra.mxu1 %v5987_v31 }
 0x124   :  { %5630 = vmatprep.subr.bf16.mxu0 %v5979_v9  ;;  %5226 = vmatprep.subr.bf16.mxu1 %v5989_v33 }
 0x127   :  { %5631 = vmatpush3.bf16.msra.mxu0 %v5979_v9  ;;  %5227 = vmatpush3.bf16.msra.mxu1 %v5990_v34 }
 0x128   :  { %5632 = vmatprep.subr.bf16.mxu0 %v5980_v19  ;;  %5228 = vmatprep.subr.bf16.mxu1 %v5992_v36 }
 0x129   :  { %1077 = vmatmul.mubr.bf16.gmra.mxu0 %v884_v3 }
 0x12a   :  { %5644 = vmatprep.mubr.bf16.mxu0 %v1176_v20 }
 0x12b   :  { %5633 = vmatpush3.bf16.msra.mxu0 %v5980_v19  ;;  %5229 = vmatpush3.bf16.msra.mxu1 %v5993_v39 }
 0x12c   :  { %5634 = vmatprep.subr.bf16.mxu0 %v5981_v21  ;;  %5230 = vmatprep.subr.bf16.mxu1 %v5995_v42 }
 0x12f   :  { %5635 = vmatpush3.bf16.msra.mxu0 %v5981_v21  ;;  %5231 = vmatpush3.bf16.msra.mxu1 %v5996_v44  ;;  %v4760_v21 = vld [vmem:[%s8005_s2 + $0x68] ss:$0 sm:$0xff] }
 0x130   :  { %5636 = vmatprep.subr.bf16.mxu0 %v5982_v23  ;;  %5232 = vmatprep.subr.bf16.mxu1 %v5998_v47 }
 0x133   :  { %5637 = vmatpush3.bf16.msra.mxu0 %v5982_v23  ;;  %5233 = vmatpush3.bf16.msra.mxu1 %v5999_v27 }
 0x134   :  { %5638 = vmatprep.subr.bf16.mxu0 %v5983_v28  ;;  %5234 = vmatprep.subr.bf16.mxu1 %v6001_v49  ;;  %v4785_v49 = vld [vmem:[%s8005_s2 + $0x30] ss:$0 sm:$0xff] }
 0x137   :  { %5639 = vmatpush3.bf16.msra.mxu0 %v5983_v28  ;;  %5235 = vmatpush3.bf16.msra.mxu1 %v6002_v52 }
 0x138   :  { %5640 = vmatprep.subr.bf16.mxu0 %v5984_v25  ;;  %5236 = vmatprep.subr.bf16.mxu1 %v6004_v54 }
 0x13b   :  { %5641 = vmatpush3.bf16.msra.mxu0 %v5984_v25  ;;  %5237 = vmatpush3.bf16.msra.mxu1 %v6005_v55 }
 0x13c   :  { %5642 = vmatprep.subr.bf16.mxu0 %v5985_v29  ;;  %5238 = vmatprep.subr.bf16.mxu1 %v6007_v57 }
 0x13f   :  { %5643 = vmatpush3.bf16.msra.mxu0 %v5985_v29  ;;  %5239 = vmatpush3.bf16.msra.mxu1 %v6008_v59  ;;  %v4814_v59 = vld [vmem:[%s8005_s2 + $0x78] ss:$0 sm:$0xff] }
 0x140   :  { %5648 = vmatprep.subr.bf16.mxu0 %v5988_v32 }
 0x142   :  { %5645 = vmatmul.mubr.bf16.vlgmr.msra.gmra.mxu0 %v6636_v24  ;;  %v5991_v24 = vld [vmem:[%s8004_s1 + $0x330] sm:$0xff]  }
 0x143   :  { %5649 = vmatpush3.bf16.msra.mxu0 %v5988_v32 }
 0x144   :  { %5650 = vmatprep.subr.bf16.mxu0 %v5991_v24 }
 0x147   :  { %5651 = vmatpush3.bf16.msra.mxu0 %v5991_v24 }
 0x148   :  { %5652 = vmatprep.subr.bf16.mxu0 %v5994_v40 }
 0x14b   :  { %5653 = vmatpush3.bf16.msra.mxu0 %v5994_v40 }
 0x14c   :  { %5654 = vmatprep.subr.bf16.mxu0 %v5997_v46 }
 0x14f   :  { %5655 = vmatpush3.bf16.msra.mxu0 %v5997_v46  ;;  %v4812_v46 = vld [vmem:[%s8005_s2 + $0x40] ss:$0 sm:$0xff] }
 0x150   :  { %5656 = vmatprep.subr.bf16.mxu0 %v6000_v48 }
 0x153   :  { %5657 = vmatpush3.bf16.msra.mxu0 %v6000_v48 }
 0x154   :  { %5658 = vmatprep.subr.bf16.mxu0 %v6003_v53 }
 0x157   :  { %5659 = vmatpush3.bf16.msra.mxu0 %v6003_v53 }
 0x158   :  { %5660 = vmatprep.subr.bf16.mxu0 %v6006_v56 }
 0x15b   :  { %5661 = vmatpush3.bf16.msra.mxu0 %v6006_v56 }
 0x15c   :  { %5662 = vmatprep.subr.bf16.mxu0 %v6009_v60 }
 0x15f   :  { %5663 = vmatpush3.bf16.msra.mxu0 %v6009_v60  ;;  %v4813_v60 = vld [vmem:[%s8005_s2 + $0x48] ss:$0 sm:$0xff] }
 0x160   :  { %5668 = vmatprep.subr.bf16.mxu0 %v6273_v37 }
 0x1c0   :  { %v5154_v63 = vpop.f32.mrf.mxu0 }
 0x1c2   :  { %v5155_v61 = vpop.f32.mrf.mxu0  ;;  %v5606_v2 = vpop.f32.mrf.mxu1 }
 0x1c3   :  { %v5156_v3 = vadd.f32 %v5155_v61, %v5154_v63 }
 0x1c4   :  { %v5157_v16 = vpop.f32.mrf.mxu0  ;;  %v772_v6 = vpop.f32.mrf.mxu1 }
 0x1c5   :  { %v724_v32 = vadd.f32 %v5156_v3, %v4760_v21 }
 0x1c6   :  { %v5158_v41 = vpop.f32.mrf.mxu0  ;;  %v5607_v9 = vpop.f32.mrf.mxu1 }
 0x1c7   :  { %v5159_v33 = vadd.f32 %v5158_v41, %v5157_v16  ;;  %v773_v47 = vadd.f32 %v772_v6, %v724_v32 }
 0x1c8   :  { %v5160_v1 = vpop.f32.mrf.mxu0  ;;  %v775_v22 = vpop.f32.mrf.mxu1 }
 0x1c9   :  { %v727_v27 = vadd.f32 %v5159_v33, %v4760_v21  ;;  %v792_v63 = vmul.f32 %v4785_v49, %v773_v47 }
 0x1ca   :  { %v5161_v51 = vpop.f32.mrf.mxu0 }
 0x1cb   :  { %v5162_v19 = vadd.f32 %v5161_v51, %v5160_v1  ;;  %v776_v61 = vadd.f32 %v775_v22, %v727_v27  ;;  %v4823_v1 = vld [vmem:[%s8005_s2 + $0x50] ss:$0 sm:$0xff]  ;;  %v4786_v51 = vld [vmem:[%s8005_s2 + $0x38] ss:$0 sm:$0xff] }
 0x1cc   :  { %v5163_v5 = vpop.f32.mrf.mxu0 }
 0x1cd   :  { %v732_v25 = vadd.f32 %v5162_v19, %v4760_v21 }
 0x1ce   :  { %v5164_v13 = vpop.f32.mrf.mxu0 }
 0x1cf   :  { %v5165_v29 = vadd.f32 %v5164_v13, %v5163_v5  ;;  %v781_v39 = vadd.f32 %v5606_v2, %v732_v25 }
 0x1d1   :  { %v735_v40 = vadd.f32 %v5165_v29, %v4760_v21  ;;  %v794_v54 = vmul.f32 %v4785_v49, %v781_v39 }
 0x1d3   :  { %v784_v55 = vadd.f32 %v5607_v9, %v735_v40  ;;  %v801_v9 = vadd.f32 %v4786_v51, %v792_v63 }
 0x1e1   :  { %v5192_v62 = vpop.f32.mrf.mxu0 }
 0x1e2   :  { %v5626_v26 = vpop.f32.mrf.mxu1 }
 0x1e3   :  { %v5193_v0 = vpop.f32.mrf.mxu0 }
 0x1e4   :  { %v5194_v35 = vadd.f32 %v5193_v0, %v5192_v62  ;;  %v1119_v23 = vpop.f32.mrf.mxu1  ;;  %v803_v62 = vadd.f32 %v4786_v51, %v794_v54  ;;  %v795_v0 = vmul.f32 %v4785_v49, %v784_v55 }
 0x1e5   :  { %v5195_v4 = vpop.f32.mrf.mxu0 }
 0x1e6   :  { %v1071_v30 = vadd.f32 %v5194_v35, %v4787_v17  ;;  %v5627_v34 = vpop.f32.mrf.mxu1 }
 0x1e7   :  { %v5196_v43 = vpop.f32.mrf.mxu0 }
 0x1e8   :  { %v5197_v31 = vadd.f32 %v5196_v43, %v5195_v4  ;;  %v1120_v42 = vadd.f32 %v1119_v23, %v1071_v30  ;;  %v1122_v52 = vpop.f32.mrf.mxu1  ;;  %v4824_v43 = vld [vmem:[%s8005_s2 + $0x58] ss:$0 sm:$0xff] }
 0x1e9   :  { %v5198_v7 = vpop.f32.mrf.mxu0 }
 0x1ea   :  { %v1074_v44 = vadd.f32 %v5197_v31, %v4787_v17  ;;  %v1139_v56 = vmul.f32 %v4812_v46, %v1120_v42 }
 0x1eb   :  { %v5199_v8 = vpop.f32.mrf.mxu0 }
 0x1ec   :  { %v5200_v15 = vadd.f32 %v5199_v8, %v5198_v7  ;;  %v1123_v57 = vadd.f32 %v1122_v52, %v1074_v44  ;;  %v1148_v2 = vadd.f32 %v4813_v60, %v1139_v56 }
 0x1ed   :  { %v5201_v12 = vpop.f32.mrf.mxu0 }
 0x1ee   :  { %v1079_v20 = vadd.f32 %v5200_v15, %v4787_v17  ;;  %v1140_v4 = vmul.f32 %v4812_v46, %v1123_v57  ;;  %v1152_v3 = vadd.f32 %v1148_v2, %v801_v9 }
 0x1ef   :  { %v5202_v11 = vpop.f32.mrf.mxu0 }
 0x1f0   :  { %v5203_v28 = vadd.f32 %v5202_v11, %v5201_v12  ;;  %v1128_v24 = vadd.f32 %v5626_v26, %v1079_v20  ;;  %v793_v12 = vmul.f32 %v4785_v49, %v776_v61  ;;  %v1149_v20 = vadd.f32 %v4813_v60, %v1140_v4 }
 0x1f2   :  { %v1082_v36 = vadd.f32 %v5203_v28, %v4787_v17  ;;  %v1141_v48 = vmul.f32 %v4812_v46, %v1128_v24  ;;  %v804_v17 = vadd.f32 %v4786_v51, %v795_v0  ;;  %v802_v30 = vadd.f32 %v4786_v51, %v793_v12 }
 0x1f4   :  { %v1131_v53 = vadd.f32 %v5627_v34, %v1082_v36  ;;  %v1150_v16 = vadd.f32 %v4813_v60, %v1141_v48  ;;  %v1153_v36 = vadd.f32 %v1149_v20, %v802_v30  ;;  %v6016_v30 = vld [vmem:[%s8004_s1 + $0x3a8] sm:$0xff]  }
 0x1f6   :  { %v1142_v5 = vmul.f32 %v4812_v46, %v1131_v53  ;;  %v1154_v22 = vadd.f32 %v1150_v16, %v803_v62 }
 0x1f8   :  { %v1151_v26 = vadd.f32 %v4813_v60, %v1142_v5 }
 0x1fa   :  { %v1155_v32 = vadd.f32 %v1151_v26, %v804_v17 }
 0x202   :  { %v5646_v41 = vpop.f32.mrf.mxu0 }
 0x203   :  { %v1274_v13 = vadd.f32 %v5646_v41, %v4814_v59 }
 0x204   :  { %v1265_v6 = vpop.f32.mrf.mxu0 }
 0x205   :  { %v1287_v7 = vmul.f32 %v4823_v1, %v1274_v13  ;;  %v1266_v8 = vadd.f32 %v4814_v59, %v1265_v6 }
 0x206   :  { %v5647_v15 = vpop.f32.mrf.mxu0 }
 0x207   :  { %v1296_v19 = vadd.f32 %v4824_v43, %v1287_v7  ;;  %v1285_v35 = vmul.f32 %v4823_v1, %v1266_v8  ;;  %v1277_v11 = vadd.f32 %v5647_v15, %v4814_v59 }
 0x208   :  { %v1268_v21 = vpop.f32.mrf.mxu0 }
 0x209   :  { %v6849_v23 = vadd.f32 %v1296_v19, %v1154_v22  ;;  %v1294_v28 = vadd.f32 %v4824_v43, %v1285_v35  ;;  %v1288_v25 = vmul.f32 %v4823_v1, %v1277_v11  ;;  %v1269_v29 = vadd.f32 %v4814_v59, %v1268_v21 }
 0x20b   :  { %v6851_v31 = vadd.f32 %v1294_v28, %v1152_v3  ;;  %v1297_v33 = vadd.f32 %v4824_v43, %v1288_v25  ;;  %v1286_v24 = vmul.f32 %v4823_v1, %v1269_v29  ;;  %v1304_v34 = vmax.f32 %v6849_v23, 0.0  ;;  %v6013_v25 = vld [vmem:[%s8004_s1 + $0x3b0] sm:$0xff]  }
 0x20c   :  { %v2007_v44 = vrot.slane %v6849_v23, 1  ;;  %v6014_v29 = vld [vmem:[%s8004_s1 + $0x370] sm:$0xff]  }
 0x20d   :  { %v6854_v39 = vadd.f32 %v1297_v33, %v1155_v32  ;;  %v1295_v40 = vadd.f32 %v4824_v43, %v1286_v24  ;;  %v1302_v42 = vmax.f32 %v6851_v31, 0.0  ;;  %v2005_v27 = vrot.slane %v6851_v31, 1  ;;  %v6017_v32 = vld [vmem:[%s8004_s1 + $0x368] sm:$0xff]   ;;  %v6019_v33 = vld [vmem:[%s8004_s1 + $0x3a0] sm:$0xff]  }
 0x20e   :  { %v1320_v49 = vrot.slane %v1304_v34, 1  ;;  %v1308_v4 = vrot.slane %v1304_v34, 7  ;;  %v6020_v24 = vld [vmem:[%s8004_s1 + $0x360] sm:$0xff]  }
 0x20f   :  { %v1305_v46 = vmax.f32 %v6854_v39, 0.0  ;;  %v6859_v47 = vadd.f32 %v1295_v40, %v1153_v36  ;;  %v1306_v48 = vrot.slane %v1302_v42, 7  ;;  %v2008_v52 = vrot.slane %v6854_v39, 1 }
 0x210   :  { %v2051_v53 = vpack.c.bf16 %v6854_v39, %v6849_v23  ;;  %v1318_v56 = vrot.slane %v1302_v42, 1  ;;  %v6058_v23 = vld [vmem:[%s8004_s1 + $0x528] sm:$0xff]   ;;  %v6061_v39 = vld [vmem:[%s8004_s1 + $0x520] sm:$0xff]  }
 0x211   :  { %v1303_v54 = vmax.f32 %v6859_v47, 0.0  ;;  %v1309_v55 = vrot.slane %v1305_v46, 7  ;;  %v1321_v57 = vrot.slane %v1305_v46, 1  ;;  %v2006_v59 = vrot.slane %v6859_v47, 1 }
 0x212   :  { %v2049_v60 = vpack.c.bf16 %v6859_v47, %v6851_v31  ;;  %v6871_v63 = vsel %vm66_vm2, %v2007_v44, %v2008_v52  ;;  %v2012_v61 = vsel %vm66_vm2, %v2008_v52, %v2005_v27  ;;  %v1382_v6 = vpack.c.bf16 %v1305_v46, %v1304_v34  ;;  %v6022_v34 = vld [vmem:[%s8004_s1 + $0x398] sm:$0xff]   ;;  %v6055_v31 = vld [vmem:[%s8004_s1 + $0x530] sm:$0xff]  }
 0x213   :  { %v1379_v16 = vpack.c.bf16 %v1303_v54, %v1302_v42  ;;  %v1307_v41 = vrot.slane %v1303_v54, 7  ;;  %v1313_v1 = vsel %vm26_vm0, %v1309_v55, %v1306_v48  ;;  %v1319_v51 = vrot.slane %v1303_v54, 1 }
 0x214   :  { %v1314_v5 = vmul.f32 %v6390_v38, %v1313_v1  ;;  %v1325_v13 = vsel %vm66_vm2, %v1321_v57, %v1318_v56  ;;  %v2010_v8 = vsel %vm66_vm2, %v2006_v59, %v2007_v44  ;;  %v6894_v22 = vsel %vm66_vm2, %v2005_v27, %v2006_v59 }
 0x215   :  { %1560 = vmatprep.mubr.bf16.mxu1 %v1379_v16  ;;  %v1312_v62 = vsel %vm26_vm0, %v1306_v48, %v1307_v41  ;;  %v1323_v0 = vsel %vm66_vm2, %v1319_v51, %v1320_v49  ;;  %v1329_v2 = vmul.f32 %v6416_v50, %v1325_v13  ;;  %v1324_v9 = vsel %vm66_vm2, %v1318_v56, %v1319_v51 }
 0x216   :  { %v1378_v43 = vpack.c.bf16 %v1312_v62, %v1314_v5  ;;  %v1327_v7 = vmul.f32 %v6406_v45, %v1323_v0  ;;  %v1311_v12 = vsel %vm26_vm0, %v1307_v41, %v1308_v4  ;;  %v6897_v15 = vmul.f32 %v6406_v45, %v2010_v8  ;;  %v6015_v8 = vld [vmem:[%s8004_s1 + $0x3f0] sm:$0xff]  }
 0x217   :  { %v1322_v19 = vsel %vm66_vm2, %v1320_v49, %v1321_v57  ;;  %v6902_v35 = vmul.f32 %v6416_v50, %v2012_v61  ;;  %v1316_v3 = vmul.f32 %v6433_v58, %v1311_v12  ;;  %v1310_v21 = vsel %vm26_vm0, %v1308_v4, %v1309_v55  ;;  %v6010_v50 = vld [vmem:[%s8004_s1 + $0x3b8] sm:$0xff]   ;;  %v6021_v12 = vld [vmem:[%s8004_s1 + $0x3e0] sm:$0xff]  }
 0x218   :  { %1561 = vmatmul.mubr.bf16.vlgmr.msra.gmra.mxu1 %v1378_v43  ;;  %v1380_v26 = vpack.c.bf16 %v1327_v7, %v1324_v9  ;;  %v1383_v11 = vpack.c.bf16 %v1329_v2, %v1322_v19  ;;  %v2050_v17 = vpack.c.bf16 %v6897_v15, %v6894_v22  ;;  %v6011_v58 = vld [vmem:[%s8004_s1 + $0x378] sm:$0xff]   ;;  %5265 = vmatprep.subr.bf16.mxu1 %v6010_v50  ;;  %v6941_v57 = vand.u32 127, %v24_v10  ;;  %v6018_v9 = vld [vmem:[%s8004_s1 + $0x3e8] sm:$0xff]   ;;  %v6040_v22 = vld [vmem:[%s8004_s1 + $0x460] sm:$0xff]  }
 0x219   :  { %1568 = vmatprep.mubr.bf16.mxu1 %v1382_v6  ;;  %v2052_v20 = vpack.c.bf16 %v6902_v35, %v6871_v63  ;;  %v1381_v28 = vpack.c.bf16 %v1310_v21, %v1316_v3  ;;  %5266 = vmatpush3.bf16.msra.mxu1 %v6011_v58  ;;  %v1628_v59 = vmul.u32 2, %v6336_v14  ;;  %v1629_v61 = vmul.u32 2, %v6348_v18  ;;  %v6012_v7 = vld [vmem:[%s8004_s1 + $0x3f8] sm:$0xff]   ;;  %v6026_v3 = vld [vmem:[%s8004_s1 + $0x350] sm:$0xff]   ;;  %v6029_v50 = vld [vmem:[%s8004_s1 + $0x348] sm:$0xff]  }
 0x21a   :  { %5664 = vmatprep.mubr.bf16.mxu0 %v1380_v26  ;;  %5267 = vmatprep.subr.bf16.mxu1 %v6013_v25  ;;  %v6023_v26 = vld [vmem:[%s8004_s1 + $0x358] sm:$0xff]   ;;  %v6027_v21 = vld [vmem:[%s8004_s1 + $0x3d0] sm:$0xff]   ;;  %v6030_v58 = vld [vmem:[%s8004_s1 + $0x3c8] sm:$0xff]   ;;  %v7029_v18 = vsel %vm1715_vm5, 1.0, %v6273_v37 }
 0x21b   :  { %5665 = vmatmul.mubr.bf16.vlgmr.msra.gmra.mxu0 %v1383_v11  ;;  %vm1630_vm12 = vcmp.eq.s32.totalorder %v6941_v57, %v1628_v59  ;;  %vm1631_vm13 = vcmp.eq.s32.totalorder %v6941_v57, %v1629_v61  ;;  %v6024_v19 = vld [vmem:[%s8004_s1 + $0x3d8] sm:$0xff]   ;;  %v6025_v11 = vld [vmem:[%s8004_s1 + $0x390] sm:$0xff]   ;;  %v6031_v25 = vld [vmem:[%s8004_s1 + $0x380] sm:$0xff]  }
 0x21c   :  { %5672 = vmatprep.mubr.msk.bf16.mxu0 %vm6274_vm11, %v6273_v37  ;;  %v6948_v10 = vsel %vm1630_vm12, 1.0, %v6273_v37  ;;  %v4850_v4 = vsel %vm1631_vm13, 1.0, %v6273_v37  ;;  %v6041_v15 = vld [vmem:[%s8004_s1 + $0x420] sm:$0xff]   ;;  %vm3331_vm12 = vmxor %vm3330_vm9, %vm6272_vm6 }
 0x21d   :  { %5268 = vmatpush3.bf16.msra.mxu1 %v6014_v29  ;;  %v6953_v6 = vpack.c.bf16 %v4850_v4, %v6948_v10  ;;  %v6032_v29 = vld [vmem:[%s8004_s1 + $0x340] sm:$0xff]   ;;  %v6036_v4 = vld [vmem:[%s8004_s1 + $0x470] sm:$0xff]  }
 0x21e   :  { %5269 = vmatprep.subr.bf16.mxu1 %v6016_v30  ;;  %v6033_v30 = vld [vmem:[%s8004_s1 + $0x3c0] sm:$0xff]  }
 0x220   :  { %1569 = vmatmul.mubr.bf16.gmra.mxu1 %v1381_v28  ;;  %v6028_v28 = vld [vmem:[%s8004_s1 + $0x388] sm:$0xff]  }
 0x221   :  { %5270 = vmatpush3.bf16.msra.mxu1 %v6017_v32  ;;  %v6034_v32 = vld [vmem:[%s8004_s1 + $0x478] sm:$0xff]  }
 0x222   :  { %5271 = vmatprep.subr.bf16.mxu1 %v6019_v33  ;;  %v4851_v33 = vld [vmem:[%s8005_s2 + $0x80] ss:$0 sm:$0xff] }
 0x225   :  { %5272 = vmatpush3.bf16.msra.mxu1 %v6020_v24 }
 0x226   :  { %5273 = vmatprep.subr.bf16.mxu1 %v6022_v34 }
 0x229   :  { %5274 = vmatpush3.bf16.msra.mxu1 %v6023_v26  ;;  %v6045_v26 = vld [vmem:[%s8004_s1 + $0x410] sm:$0xff]  }
 0x22a   :  { %5275 = vmatprep.subr.bf16.mxu1 %v6025_v11  ;;  %v6047_v11 = vld [vmem:[%s8004_s1 + $0x408] sm:$0xff]  }
 0x22d   :  { %5276 = vmatpush3.bf16.msra.mxu1 %v6026_v3  ;;  %v6048_v3 = vld [vmem:[%s8004_s1 + $0x440] sm:$0xff]  }
 0x22e   :  { %5277 = vmatprep.subr.bf16.mxu1 %v6028_v28  ;;  %v6052_v28 = vld [vmem:[%s8004_s1 + $0x538] sm:$0xff]  }
 0x231   :  { %5278 = vmatpush3.bf16.msra.mxu1 %v6029_v50 }
 0x232   :  { %5279 = vmatprep.subr.bf16.mxu1 %v6031_v25 }
 0x235   :  { %5280 = vmatpush3.bf16.msra.mxu1 %v6032_v29 }
 0x236   :  { %5296 = vmatprep.subr.bf16.mxu1 %v6034_v32 }
 0x2d8   :  { %v5240_v36 = vpop.f32.mrf.mxu1 }
 0x2da   :  { %v5241_v40 = vpop.f32.mrf.mxu1 }
 0x2db   :  { %v5666_v42 = vpop.f32.mrf.mxu0  ;;  %v5242_v51 = vadd.f32 %v5241_v40, %v5240_v36 }
 0x2dc   :  { %v5243_v44 = vpop.f32.mrf.mxu1 }
 0x2dd   :  { %v1611_v27 = vpop.f32.mrf.mxu0 }
 0x2de   :  { %v5244_v46 = vpop.f32.mrf.mxu1  ;;  %v1612_v2 = vadd.f32 %v5242_v51, %v1611_v27 }
 0x2df   :  { %v5667_v52 = vpop.f32.mrf.mxu0  ;;  %v5245_v16 = vadd.f32 %v5244_v46, %v5243_v44 }
 0x2e0   :  { %v5246_v48 = vpop.f32.mrf.mxu1 }
 0x2e1   :  { %v1614_v1 = vpop.f32.mrf.mxu0 }
 0x2e2   :  { %v5247_v49 = vpop.f32.mrf.mxu1  ;;  %v1615_v62 = vadd.f32 %v5245_v16, %v1614_v1 }
 0x2e3   :  { %v5248_v55 = vadd.f32 %v5247_v49, %v5246_v48  ;;  %v7026_v49 = vsel %vm1700_vm4, 1.0, %v6273_v37 }
 0x2e4   :  { %v5249_v54 = vpop.f32.mrf.mxu1  ;;  %v1637_v43 = vpack.c.bf16 %v1615_v62, %v1612_v2  ;;  %v6035_v62 = vld [vmem:[%s8004_s1 + $0x438] sm:$0xff]  }
 0x2e5   :  { %v1620_v5 = vadd.f32 %v5666_v42, %v5248_v55 }
 0x2e6   :  { %v5250_v56 = vpop.f32.mrf.mxu1 }
 0x2e7   :  { %v5251_v41 = vadd.f32 %v5250_v56, %v5249_v54 }
 0x2e9   :  { %v1623_v13 = vadd.f32 %v5667_v52, %v5251_v41 }
 0x2eb   :  { %v1638_v0 = vpack.c.bf16 %v1623_v13, %v1620_v5 }
 0x2ed   :  { %5669 = vmatpush3.bf16.msra.mxu0 %v1638_v0 }
 0x2ee   :  { %5670 = vmatprep.subr.bf16.mxu0 %v6273_v37 }
 0x2f1   :  { %5671 = vmatpush3.bf16.msra.mxu0 %v1637_v43  ;;  %v6037_v43 = vld [vmem:[%s8004_s1 + $0x430] sm:$0xff]  }
 0x2f2   :  { %5676 = vmatprep.subr.bf16.mxu0 %v6273_v37 }
 0x2f4   :  { %5673 = vmatmul.mubr.msk.bf16.vlgmr.msra.gmra.mxu0 %vm1644_vm14, %v6953_v6 }
 0x2f5   :  { %5677 = vmatpush3.bf16.msra.mxu0 %v6012_v7  ;;  %5692 = vmatprep.mubr.msk.bf16.mxu0 %vm6274_vm11, %v6273_v37  ;;  %v6038_v7 = vld [vmem:[%s8004_s1 + $0x468] sm:$0xff]  }
 0x2f6   :  { %5678 = vmatprep.subr.bf16.mxu0 %v6273_v37 }
 0x2f9   :  { %5679 = vmatpush3.bf16.msra.mxu0 %v6015_v8  ;;  %v6039_v8 = vld [vmem:[%s8004_s1 + $0x428] sm:$0xff]  }
 0x2fa   :  { %5680 = vmatprep.subr.bf16.mxu0 %v6273_v37 }
 0x2fd   :  { %5681 = vmatpush3.bf16.msra.mxu0 %v6018_v9  ;;  %v6043_v9 = vld [vmem:[%s8004_s1 + $0x418] sm:$0xff]  }
 0x2fe   :  { %5682 = vmatprep.subr.bf16.mxu0 %v6273_v37 }
 0x301   :  { %5683 = vmatpush3.bf16.msra.mxu0 %v6021_v12  ;;  %v6044_v12 = vld [vmem:[%s8004_s1 + $0x450] sm:$0xff]  }
 0x302   :  { %5684 = vmatprep.subr.bf16.mxu0 %v6273_v37 }
 0x305   :  { %5685 = vmatpush3.bf16.msra.mxu0 %v6024_v19  ;;  %v6046_v19 = vld [vmem:[%s8004_s1 + $0x448] sm:$0xff]  }
 0x306   :  { %5686 = vmatprep.subr.bf16.mxu0 %v6273_v37 }
 0x309   :  { %5687 = vmatpush3.bf16.msra.mxu0 %v6027_v21  ;;  %v6049_v21 = vld [vmem:[%s8004_s1 + $0x400] sm:$0xff]  }
 0x30a   :  { %5688 = vmatprep.subr.bf16.mxu0 %v6273_v37 }
 0x30d   :  { %5689 = vmatpush3.bf16.msra.mxu0 %v6030_v58 }
 0x30e   :  { %5690 = vmatprep.subr.bf16.mxu0 %v6273_v37 }
 0x311   :  { %5691 = vmatpush3.bf16.msra.mxu0 %v6033_v30 }
 0x312   :  { %5696 = vmatprep.subr.bf16.mxu0 %v6273_v37 }
 0x3b4   :  { %v1682_v24 = vpop.f32.mrf.mxu0 }
 0x3b5   :  { %v1683_v34 = vadd.f32 %v4851_v33, %v1682_v24 }
 0x3b6   :  { %v5674_v36 = vpop.f32.mrf.mxu0 }
 0x3b7   :  { %v1689_v40 = vmax.f32 %v1683_v34, 0.0 }
 0x3b8   :  { %v1685_v42 = vpop.f32.mrf.mxu0 }
 0x3b9   :  { %v1686_v44 = vadd.f32 %v4851_v33, %v1685_v42  ;;  %v1691_v48 = vrot.slane %v1689_v40, 7  ;;  %v1707_v52 = vrot.slane %v1689_v40, 1 }
 0x3ba   :  { %v5675_v46 = vpop.f32.mrf.mxu0 }
 0x3bb   :  { %v1690_v27 = vmax.f32 %v1686_v44, 0.0 }
 0x3bd   :  { %v1692_v54 = vrot.slane %v1690_v27, 7  ;;  %v1708_v55 = vrot.slane %v1690_v27, 1  ;;  %v1772_v56 = vpack.c.bf16 %v1690_v27, %v1689_v40 }
 0x3bf   :  { %v1693_v59 = vsel %vm26_vm0, %v1691_v48, %v1692_v54  ;;  %v1694_v61 = vsel %vm26_vm0, %v1692_v54, %v1691_v48  ;;  %v1709_v16 = vsel %vm66_vm2, %v1707_v52, %v1708_v55  ;;  %v1710_v41 = vsel %vm66_vm2, %v1708_v55, %v1707_v52  ;;  %1955 = vmatprep.mubr.bf16.mxu1 %v1772_v56 }
 0x3c0   :  { %v1705_v1 = vmul.f32 %v6390_v38, %v1694_v61  ;;  %v1706_v51 = vmul.f32 %v7026_v49, %v1693_v59  ;;  %v1721_v5 = vmul.f32 %v7029_v18, %v1709_v16  ;;  %v1722_v13 = vmul.f32 %v6406_v45, %v1710_v41  ;;  %v6050_v16 = vld [vmem:[%s8004_s1 + $0x4f8] sm:$0xff]  }
 0x3c2   :  { %v1771_v0 = vpack.c.bf16 %v1706_v51, %v1705_v1  ;;  %v1773_v2 = vpack.c.bf16 %v1722_v13, %v1721_v5  ;;  %v6051_v1 = vld [vmem:[%s8004_s1 + $0x4b8] sm:$0xff]   ;;  %v6053_v51 = vld [vmem:[%s8004_s1 + $0x4f0] sm:$0xff]   ;;  %v6056_v13 = vld [vmem:[%s8004_s1 + $0x4e8] sm:$0xff]  }
 0x3c3   :  { %v6054_v5 = vld [vmem:[%s8004_s1 + $0x4b0] sm:$0xff]  }
 0x3c4   :  { %1956 = vmatmul.mubr.bf16.vlgmr.msra.gmra.mxu1 %v1771_v0  ;;  %5693 = vmatmul.mubr.bf16.vlgmr.msra.gmra.mxu0 %v1773_v2  ;;  %v6060_v0 = vld [vmem:[%s8004_s1 + $0x4a0] sm:$0xff]   ;;  %v6062_v2 = vld [vmem:[%s8004_s1 + $0x4d8] sm:$0xff]  }
 0x3c5   :  { %5297 = vmatpush3.bf16.msra.mxu1 %v6035_v62  ;;  %2181 = vmatprep.mubr.bf16.mxu1 %v2050_v17  ;;  %v6042_v17 = vld [vmem:[%s8004_s1 + $0x458] sm:$0xff]   ;;  %v6057_v62 = vld [vmem:[%s8004_s1 + $0x4a8] sm:$0xff]  }
 0x3c6   :  { %5298 = vmatprep.subr.bf16.mxu1 %v6036_v4  ;;  %5700 = vmatprep.mubr.msk.bf16.mxu0 %vm6274_vm11, %v6273_v37  ;;  %v6063_v4 = vld [vmem:[%s8004_s1 + $0x498] sm:$0xff]  }
 0x3c9   :  { %5299 = vmatpush3.bf16.msra.mxu1 %v6037_v43  ;;  %v6064_v43 = vld [vmem:[%s8004_s1 + $0x518] sm:$0xff]  }
 0x3ca   :  { %5300 = vmatprep.subr.bf16.mxu1 %v6038_v7  ;;  %v6065_v7 = vld [vmem:[%s8004_s1 + $0x4d0] sm:$0xff]  }
 0x3cd   :  { %5301 = vmatpush3.bf16.msra.mxu1 %v6039_v8  ;;  %v6066_v8 = vld [vmem:[%s8004_s1 + $0x490] sm:$0xff]  }
 0x3ce   :  { %5302 = vmatprep.subr.bf16.mxu1 %v6040_v22  ;;  %v6067_v22 = vld [vmem:[%s8004_s1 + $0x510] sm:$0xff]  }
 0x3d1   :  { %5303 = vmatpush3.bf16.msra.mxu1 %v6041_v15  ;;  %v6068_v15 = vld [vmem:[%s8004_s1 + $0x4c8] sm:$0xff]  }
 0x3d2   :  { %5304 = vmatprep.subr.bf16.mxu1 %v6042_v17  ;;  %v6069_v17 = vld [vmem:[%s8004_s1 + $0x488] sm:$0xff]  }
 0x3d5   :  { %5305 = vmatpush3.bf16.msra.mxu1 %v6043_v9  ;;  %v6070_v9 = vld [vmem:[%s8004_s1 + $0x508] sm:$0xff]  }
 0x3d6   :  { %5306 = vmatprep.subr.bf16.mxu1 %v6044_v12  ;;  %v6071_v12 = vld [vmem:[%s8004_s1 + $0x4c0] sm:$0xff]  }
 0x3d9   :  { %5307 = vmatpush3.bf16.msra.mxu1 %v6045_v26  ;;  %v6072_v26 = vld [vmem:[%s8004_s1 + $0x480] sm:$0xff]  }
 0x3da   :  { %5308 = vmatprep.subr.bf16.mxu1 %v6046_v19  ;;  %v6073_v19 = vld [vmem:[%s8004_s1 + $0x500] sm:$0xff]  }
 0x3dd   :  { %5309 = vmatpush3.bf16.msra.mxu1 %v6047_v11  ;;  %v6074_v11 = vld [vmem:[%s8004_s1 + $0x5b8] sm:$0xff]  }
 0x3de   :  { %5310 = vmatprep.subr.bf16.mxu1 %v6048_v3 }
 0x3e1   :  { %5311 = vmatpush3.bf16.msra.mxu1 %v6049_v21 }
 0x3e2   :  { %5704 = vmatprep.subr.bf16.mxu1 %v6273_v37 }
 0x3e4   :  { %2182 = vmatmul.mubr.bf16.vlgmr.msra.gmra.mxu1 %v2049_v60  ;;  %v4857_v60 = vld [vmem:[%s8005_s2 + $0x88] ss:$0 sm:$0xff] }
 0x3e5   :  { %2189 = vmatprep.mubr.bf16.mxu1 %v2052_v20  ;;  %5705 = vmatpush3.bf16.msra.mxu1 %v6052_v28 }
 0x3e6   :  { %5706 = vmatprep.subr.bf16.mxu1 %v6273_v37 }
 0x3e9   :  { %5707 = vmatpush3.bf16.msra.mxu1 %v6055_v31  ;;  %v7202_v31 = vld [vmem:[%s8005_s2] ss:$0 sm:$0xff] }
 0x3ea   :  { %5708 = vmatprep.subr.bf16.mxu1 %v6273_v37 }
 0x3ec   :  { %2190 = vmatmul.mubr.bf16.gmra.mxu1 %v2051_v53 }
 0x3ed   :  { %5720 = vmatprep.mubr.msk.bf16.mxu1 %vm6274_vm11, %v6273_v37  ;;  %5709 = vmatpush3.bf16.msra.mxu1 %v6058_v23 }
 0x3ee   :  { %5710 = vmatprep.subr.bf16.mxu1 %v6273_v37 }
 0x3f1   :  { %5711 = vmatpush3.bf16.msra.mxu1 %v6061_v39 }
 0x3f2   :  { %5712 = vmatprep.subr.bf16.mxu1 %v6273_v37 }
 0x3f5   :  { %5713 = vmatpush3.bf16.msra.mxu1 %v6064_v43 }
 0x3f6   :  { %5714 = vmatprep.subr.bf16.mxu1 %v6273_v37 }
 0x3f9   :  { %5715 = vmatpush3.bf16.msra.mxu1 %v6067_v22 }
 0x3fa   :  { %5716 = vmatprep.subr.bf16.mxu1 %v6273_v37 }
 0x3fd   :  { %5717 = vmatpush3.bf16.msra.mxu1 %v6070_v9  ;;  %v6077_v9 = vld [vmem:[%s8004_s1 + $0x5b0] sm:$0xff]  }
 0x3fe   :  { %5718 = vmatprep.subr.bf16.mxu1 %v6273_v37 }
 0x401   :  { %5719 = vmatpush3.bf16.msra.mxu1 %v6073_v19  ;;  %v6079_v19 = vld [vmem:[%s8004_s1 + $0x5f0] sm:$0xff]  }
 0x402   :  { %5724 = vmatprep.subr.bf16.mxu1 %v6273_v37 }
 0x484   :  { %v5281_v47 = vpop.f32.mrf.mxu1  ;;  %v1998_v53 = vpop.f32.mrf.mxu0 }
 0x486   :  { %v5282_v63 = vpop.f32.mrf.mxu1  ;;  %v5694_v35 = vpop.f32.mrf.mxu0 }
 0x487   :  { %v5283_v20 = vadd.f32 %v5282_v63, %v5281_v47  ;;  %v7208_v47 = vld [vmem:[%s8005_s2 + $0x8] ss:$0 sm:$0xff] }
 0x488   :  { %v5284_v50 = vpop.f32.mrf.mxu1  ;;  %v2001_v58 = vpop.f32.mrf.mxu0 }
 0x489   :  { %v1958_v25 = vadd.f32 %v5283_v20, %v4857_v60 }
 0x48a   :  { %v5285_v29 = vpop.f32.mrf.mxu1  ;;  %v5695_v30 = vpop.f32.mrf.mxu0 }
 0x48b   :  { %v5286_v32 = vadd.f32 %v5285_v29, %v5284_v50  ;;  %v7124_v33 = vadd.f32 %v1998_v53, %v1958_v25 }
 0x48d   :  { %v1961_v24 = vadd.f32 %v5286_v32, %v4857_v60  ;;  %v6236_v60 = vld [vmem:[%s8005_s2 + $0x10] ss:$0 sm:$0xff]  ;;  %v6238_v32 = vld [vmem:[%s8005_s2 + $0x18] ss:$0 sm:$0xff] }
 0x48f   :  { %v7126_v34 = vadd.f32 %v2001_v58, %v1961_v24  ;;  %v6237_v58 = vld [vmem:[%s8005_s2 + $0x20] ss:$0 sm:$0xff]  ;;  %v6239_v24 = vld [vmem:[%s8005_s2 + $0x28] ss:$0 sm:$0xff] }
 0x4a4   :  { %v5312_v36 = vpop.f32.mrf.mxu1 }
 0x4a6   :  { %v5313_v40 = vpop.f32.mrf.mxu1 }
 0x4a7   :  { %v5314_v61 = vadd.f32 %v5313_v40, %v5312_v36 }
 0x4a8   :  { %v5315_v42 = vpop.f32.mrf.mxu1 }
 0x4aa   :  { %v5316_v44 = vpop.f32.mrf.mxu1 }
 0x4ab   :  { %v5317_v56 = vadd.f32 %v5316_v44, %v5315_v42 }
 0x4ac   :  { %v5318_v46 = vpop.f32.mrf.mxu1 }
 0x4ad   :  { %v2198_v41 = vpack.c.bf16 %v5317_v56, %v5314_v61 }
 0x4ae   :  { %v5319_v27 = vpop.f32.mrf.mxu1 }
 0x4af   :  { %v5320_v54 = vadd.f32 %v5319_v27, %v5318_v46 }
 0x4b0   :  { %v5321_v48 = vpop.f32.mrf.mxu1 }
 0x4b2   :  { %v5322_v52 = vpop.f32.mrf.mxu1 }
 0x4b3   :  { %v5323_v55 = vadd.f32 %v5322_v52, %v5321_v48 }
 0x4b5   :  { %v2199_v59 = vpack.c.bf16 %v5323_v55, %v5320_v54 }
 0x4b7   :  { %5697 = vmatpush3.bf16.msra.mxu0 %v2199_v59 }
 0x4b8   :  { %5698 = vmatprep.subr.bf16.mxu0 %v6273_v37 }
 0x4bb   :  { %5699 = vmatpush3.bf16.msra.mxu0 %v2198_v41 }
 0x4bc   :  { %5327 = vmatprep.subr.bf16.mxu0 %v6050_v16 }
 0x4be   :  { %5701 = vmatmul.mubr.msk.bf16.vlgmr.msra.gmra.mxu0 %vm1644_vm14, %v6953_v6  ;;  %v6059_v6 = vld [vmem:[%s8004_s1 + $0x4e0] sm:$0xff]   ;;  %vm4556_vm14 = vcmask 1043456  }
 0x4bf   :  { %5328 = vmatpush3.bf16.msra.mxu0 %v6051_v1 }
 0x4c0   :  { %5329 = vmatprep.subr.bf16.mxu0 %v6053_v51 }
 0x4c3   :  { %5330 = vmatpush3.bf16.msra.mxu0 %v6054_v5 }
 0x4c4   :  { %5331 = vmatprep.subr.bf16.mxu0 %v6056_v13 }
 0x4c7   :  { %5332 = vmatpush3.bf16.msra.mxu0 %v6057_v62 }
 0x4c8   :  { %5333 = vmatprep.subr.bf16.mxu0 %v6059_v6  ;;  %v6076_v6 = vld [vmem:[%s8004_s1 + $0x5f8] sm:$0xff]  }
 0x4cb   :  { %5334 = vmatpush3.bf16.msra.mxu0 %v6060_v0 }
 0x4cc   :  { %5335 = vmatprep.subr.bf16.mxu0 %v6062_v2 }
 0x4cf   :  { %5336 = vmatpush3.bf16.msra.mxu0 %v6063_v4  ;;  %v6075_v4 = vld [vmem:[%s8004_s1 + $0x578] sm:$0xff]  }
 0x4d0   :  { %5337 = vmatprep.subr.bf16.mxu0 %v6065_v7 }
 0x4d3   :  { %5338 = vmatpush3.bf16.msra.mxu0 %v6066_v8 }
 0x4d4   :  { %5339 = vmatprep.subr.bf16.mxu0 %v6068_v15 }
 0x4d7   :  { %5340 = vmatpush3.bf16.msra.mxu0 %v6069_v17 }
 0x4d8   :  { %5341 = vmatprep.subr.bf16.mxu0 %v6071_v12 }
 0x4db   :  { %5342 = vmatpush3.bf16.msra.mxu0 %v6072_v26 }
 0x4dc   :  { %5358 = vmatprep.subr.bf16.mxu0 %v6074_v11 }
 0x57e   :  { %v2234_v3 = vpop.f32.mrf.mxu0 }
 0x57f   :  { %v2241_v21 = vadd.f32 %v2234_v3, %v7124_v33 }
 0x580   :  { %v5702_v28 = vpop.f32.mrf.mxu0 }
 0x581   :  { %v2243_v23 = vmul.f32 %v7202_v31, %v2241_v21  ;;  %v2247_v63 = vmul.f32 %v6236_v60, %v2241_v21  ;;  %v2257_v35 = vmax.f32 %v2241_v21, 0.0 }
 0x582   :  { %v2237_v39 = vpop.f32.mrf.mxu0 }
 0x583   :  { %v2245_v53 = vadd.f32 %v7208_v47, %v2243_v23  ;;  %v2242_v20 = vadd.f32 %v2237_v39, %v7126_v34  ;;  %v2249_v33 = vadd.f32 %v6238_v32, %v2247_v63  ;;  %v2259_v34 = vrot.slane %v2257_v35, 7  ;;  %v6078_v23 = vld [vmem:[%s8004_s1 + $0x570] sm:$0xff]   ;;  %v6080_v63 = vld [vmem:[%s8004_s1 + $0x5a8] sm:$0xff]  }
 0x584   :  { %v5703_v50 = vpop.f32.mrf.mxu0  ;;  %v2265_v40 = vrot.slane %v2257_v35, 1 }
 0x585   :  { %v2251_v25 = vmul.f32 %v6237_v58, %v2245_v53  ;;  %v2244_v29 = vmul.f32 %v7202_v31, %v2242_v20  ;;  %v2258_v30 = vmax.f32 %v2242_v20, 0.0  ;;  %v2248_v44 = vmul.f32 %v6236_v60, %v2242_v20 }
 0x586   :  { %v2557_v54 = vmax.f32 %v2245_v53, 0.0 }
 0x587   :  { %v2253_v36 = vadd.f32 %v6239_v24, %v2251_v25  ;;  %v2246_v42 = vadd.f32 %v7208_v47, %v2244_v29  ;;  %v2260_v46 = vrot.slane %v2258_v30, 7  ;;  %v2266_v27 = vrot.slane %v2258_v30, 1  ;;  %v6082_v25 = vld [vmem:[%s8004_s1 + $0x5e8] sm:$0xff]  }
 0x588   :  { %v2320_v52 = vpack.c.bf16 %v2258_v30, %v2257_v35  ;;  %v2250_v5 = vadd.f32 %v6238_v32, %v2248_v44  ;;  %v2559_v43 = vrot.slane %v2557_v54, 7  ;;  %v2565_v7 = vrot.slane %v2557_v54, 1  ;;  %v6081_v30 = vld [vmem:[%s8004_s1 + $0x568] sm:$0xff]   ;;  %v6083_v32 = vld [vmem:[%s8004_s1 + $0x5a0] sm:$0xff]   ;;  %v6091_v44 = vld [vmem:[%s8004_s1 + $0x5d0] sm:$0xff]  }
 0x589   :  { %v2255_v48 = vadd.f32 %v2253_v36, %v2249_v33  ;;  %v2252_v55 = vmul.f32 %v6237_v58, %v2246_v42  ;;  %v2267_v56 = vsel %vm66_vm2, %v2265_v40, %v2266_v27  ;;  %v2268_v59 = vsel %vm66_vm2, %v2266_v27, %v2265_v40  ;;  %v6085_v33 = vld [vmem:[%s8004_s1 + $0x5e0] sm:$0xff]   ;;  %v6086_v36 = vld [vmem:[%s8004_s1 + $0x598] sm:$0xff]   ;;  %v6092_v27 = vld [vmem:[%s8004_s1 + $0x588] sm:$0xff]  }
 0x58a   :  { %v2261_v61 = vsel %vm26_vm0, %v2259_v34, %v2260_v46  ;;  %2503 = vmatprep.mubr.bf16.mxu0 %v2320_v52  ;;  %v2262_v16 = vsel %vm26_vm0, %v2260_v46, %v2259_v34  ;;  %v2269_v1 = vmul.f32 %v7029_v18, %v2267_v56  ;;  %v2270_v51 = vmul.f32 %v6406_v45, %v2268_v59  ;;  %v6088_v34 = vld [vmem:[%s8004_s1 + $0x5d8] sm:$0xff]   ;;  %v6090_v46 = vld [vmem:[%s8004_s1 + $0x550] sm:$0xff]   ;;  %v6093_v52 = vld [vmem:[%s8004_s1 + $0x548] sm:$0xff]  }
 0x58b   :  { %v2264_v41 = vmul.f32 %v7026_v49, %v2261_v61  ;;  %v2254_v13 = vadd.f32 %v6239_v24, %v2252_v55  ;;  %v2263_v62 = vmul.f32 %v6390_v38, %v2262_v16  ;;  %v2558_v0 = vmax.f32 %v2246_v42, 0.0  ;;  %v6084_v24 = vld [vmem:[%s8004_s1 + $0x560] sm:$0xff]   ;;  %v6087_v40 = vld [vmem:[%s8004_s1 + $0x558] sm:$0xff]   ;;  %v6089_v42 = vld [vmem:[%s8004_s1 + $0x590] sm:$0xff]  }
 0x58c   :  { %v2321_v2 = vpack.c.bf16 %v2270_v51, %v2269_v1  ;;  %v2859_v26 = vmax.f32 %v2255_v48, 0.0  ;;  %v6094_v48 = vld [vmem:[%s8004_s1 + $0x5c8] sm:$0xff]   ;;  %v6097_v55 = vld [vmem:[%s8004_s1 + $0x5c0] sm:$0xff]   ;;  %v6098_v59 = vld [vmem:[%s8004_s1 + $0x638] sm:$0xff]  }
 0x58d   :  { %v2256_v8 = vadd.f32 %v2254_v13, %v2250_v5  ;;  %v2319_v22 = vpack.c.bf16 %v2264_v41, %v2263_v62  ;;  %v2560_v15 = vrot.slane %v2558_v0, 7  ;;  %v2566_v17 = vrot.slane %v2558_v0, 1  ;;  %v6096_v56 = vld [vmem:[%s8004_s1 + $0x540] sm:$0xff]   ;;  %v6099_v61 = vld [vmem:[%s8004_s1 + $0x630] sm:$0xff]   ;;  %v6100_v16 = vld [vmem:[%s8004_s1 + $0x628] sm:$0xff]  }
 0x58e   :  { %5721 = vmatmul.mubr.bf16.vlgmr.msra.gmra.mxu1 %v2321_v2  ;;  %v2620_v12 = vpack.c.bf16 %v2558_v0, %v2557_v54  ;;  %v6095_v54 = vld [vmem:[%s8004_s1 + $0x580] sm:$0xff]   ;;  %v6102_v1 = vld [vmem:[%s8004_s1 + $0x618] sm:$0xff]   ;;  %v6103_v51 = vld [vmem:[%s8004_s1 + $0x610] sm:$0xff]  }
 0x58f   :  { %2504 = vmatmul.mubr.bf16.vlgmr.msra.gmra.mxu0 %v2319_v22  ;;  %5725 = vmatpush3.bf16.msra.mxu1 %v6076_v6  ;;  %v2561_v11 = vsel %vm26_vm0, %v2559_v43, %v2560_v15  ;;  %v2562_v3 = vsel %vm26_vm0, %v2560_v15, %v2559_v43  ;;  %v2567_v21 = vsel %vm66_vm2, %v2565_v7, %v2566_v17  ;;  %v2860_v28 = vmax.f32 %v2256_v8, 0.0  ;;  %v6101_v41 = vld [vmem:[%s8004_s1 + $0x620] sm:$0xff]   ;;  %v6104_v5 = vld [vmem:[%s8004_s1 + $0x608] sm:$0xff]   ;;  %v6106_v62 = vld [vmem:[%s8004_s1 + $0x6b8] sm:$0xff]  }
 0x590   :  { %5359 = vmatpush3.bf16.msra.mxu0 %v6075_v4  ;;  %2803 = vmatprep.mubr.bf16.mxu0 %v2620_v12  ;;  %v2563_v39 = vmul.f32 %v6390_v38, %v2562_v3  ;;  %v2564_v53 = vmul.f32 %v7026_v49, %v2561_v11  ;;  %v2568_v60 = vsel %vm66_vm2, %v2566_v17, %v2565_v7  ;;  %v6105_v13 = vld [vmem:[%s8004_s1 + $0x600] sm:$0xff]   ;;  %v6107_v6 = vld [vmem:[%s8004_s1 + $0x678] sm:$0xff]   ;;  %v6109_v2 = vld [vmem:[%s8004_s1 + $0x6b0] sm:$0xff]  }
 0x591   :  { %5360 = vmatprep.subr.bf16.mxu0 %v6077_v9  ;;  %5726 = vmatprep.subr.bf16.mxu1 %v6273_v37  ;;  %v2569_v35 = vmul.f32 %v7029_v18, %v2567_v21  ;;  %v2570_v20 = vmul.f32 %v6406_v45, %v2568_v60  ;;  %v7269_v50 = vpack.c.bf16 %v2860_v28, %v2859_v26  ;;  %v6108_v0 = vld [vmem:[%s8004_s1 + $0x6f8] sm:$0xff]   ;;  %v6111_v4 = vld [vmem:[%s8004_s1 + $0x6f0] sm:$0xff]   ;;  %v6112_v7 = vld [vmem:[%s8004_s1 + $0x6a8] sm:$0xff]  }
 0x592   :  { %5740 = vmatprep.mubr.msk.bf16.mxu1 %vm6274_vm11, %v6273_v37  ;;  %v2619_v58 = vpack.c.bf16 %v2564_v53, %v2563_v39  ;;  %v6110_v43 = vld [vmem:[%s8004_s1 + $0x670] sm:$0xff]   ;;  %v6114_v8 = vld [vmem:[%s8004_s1 + $0x6e8] sm:$0xff]   ;;  %v6115_v15 = vld [vmem:[%s8004_s1 + $0x6a0] sm:$0xff]  }
 0x593   :  { %5727 = vmatpush3.bf16.msra.mxu1 %v6079_v19  ;;  %v2621_v29 = vpack.c.bf16 %v2570_v20, %v2569_v35  ;;  %v6113_v22 = vld [vmem:[%s8004_s1 + $0x668] sm:$0xff]   ;;  %v6116_v17 = vld [vmem:[%s8004_s1 + $0x660] sm:$0xff]   ;;  %v6118_v12 = vld [vmem:[%s8004_s1 + $0x698] sm:$0xff]  }
 0x594   :  { %5361 = vmatpush3.bf16.msra.mxu0 %v6078_v23  ;;  %5728 = vmatprep.subr.bf16.mxu1 %v6273_v37  ;;  %v6117_v9 = vld [vmem:[%s8004_s1 + $0x6e0] sm:$0xff]   ;;  %v6119_v26 = vld [vmem:[%s8004_s1 + $0x658] sm:$0xff]   ;;  %v6121_v11 = vld [vmem:[%s8004_s1 + $0x690] sm:$0xff]  }
 0x595   :  { %5362 = vmatprep.subr.bf16.mxu0 %v6080_v63  ;;  %v6120_v19 = vld [vmem:[%s8004_s1 + $0x6d8] sm:$0xff]   ;;  %v6123_v3 = vld [vmem:[%s8004_s1 + $0x6d0] sm:$0xff]   ;;  %v6124_v28 = vld [vmem:[%s8004_s1 + $0x688] sm:$0xff]  }
 0x596   :  { %v6122_v21 = vld [vmem:[%s8004_s1 + $0x650] sm:$0xff]   ;;  %v6126_v23 = vld [vmem:[%s8004_s1 + $0x6c8] sm:$0xff]   ;;  %v6127_v53 = vld [vmem:[%s8004_s1 + $0x680] sm:$0xff]  }
 0x597   :  { %5729 = vmatpush3.bf16.msra.mxu1 %v6082_v25  ;;  %v6125_v39 = vld [vmem:[%s8004_s1 + $0x648] sm:$0xff]   ;;  %v6129_v60 = vld [vmem:[%s8004_s1 + $0x6c0] sm:$0xff]  }
 0x598   :  { %5363 = vmatpush3.bf16.msra.mxu0 %v6081_v30  ;;  %5730 = vmatprep.subr.bf16.mxu1 %v6273_v37  ;;  %v6128_v63 = vld [vmem:[%s8004_s1 + $0x640] sm:$0xff]  }
 0x599   :  { %5364 = vmatprep.subr.bf16.mxu0 %v6083_v32 }
 0x59b   :  { %5731 = vmatpush3.bf16.msra.mxu1 %v6085_v33 }
 0x59c   :  { %5365 = vmatpush3.bf16.msra.mxu0 %v6084_v24  ;;  %5732 = vmatprep.subr.bf16.mxu1 %v6273_v37 }
 0x59d   :  { %5366 = vmatprep.subr.bf16.mxu0 %v6086_v36 }
 0x59f   :  { %5733 = vmatpush3.bf16.msra.mxu1 %v6088_v34 }
 0x5a0   :  { %5367 = vmatpush3.bf16.msra.mxu0 %v6087_v40  ;;  %5734 = vmatprep.subr.bf16.mxu1 %v6273_v37 }
 0x5a1   :  { %5368 = vmatprep.subr.bf16.mxu0 %v6089_v42 }
 0x5a3   :  { %5735 = vmatpush3.bf16.msra.mxu1 %v6091_v44 }
 0x5a4   :  { %5369 = vmatpush3.bf16.msra.mxu0 %v6090_v46  ;;  %5736 = vmatprep.subr.bf16.mxu1 %v6273_v37 }
 0x5a5   :  { %5370 = vmatprep.subr.bf16.mxu0 %v6092_v27  ;;  %v4924_v27 = vld [vmem:[%s8005_s2 + $0x98] ss:$0 sm:$0xff] }
 0x5a7   :  { %5737 = vmatpush3.bf16.msra.mxu1 %v6094_v48 }
 0x5a8   :  { %5371 = vmatpush3.bf16.msra.mxu0 %v6093_v52  ;;  %5738 = vmatprep.subr.bf16.mxu1 %v6273_v37 }
 0x5a9   :  { %5372 = vmatprep.subr.bf16.mxu0 %v6095_v54  ;;  %v4899_v54 = vld [vmem:[%s8005_s2 + $0x90] ss:$0 sm:$0xff] }
 0x5ab   :  { %5739 = vmatpush3.bf16.msra.mxu1 %v6097_v55 }
 0x5ac   :  { %5373 = vmatpush3.bf16.msra.mxu0 %v6096_v56  ;;  %5398 = vmatprep.subr.bf16.mxu1 %v6106_v62 }
 0x5ad   :  { %5744 = vmatprep.subr.bf16.mxu0 %v6273_v37 }
 0x5ae   :  { %5741 = vmatmul.mubr.bf16.vlgmr.msra.gmra.mxu1 %v2621_v29 }
 0x5af   :  { %2804 = vmatmul.mubr.bf16.vlgmr.msra.gmra.mxu0 %v2619_v58  ;;  %5399 = vmatpush3.bf16.msra.mxu1 %v6107_v6  ;;  %v4949_v6 = vld [vmem:[%s8005_s2 + $0xa0] ss:$0 sm:$0xff] }
 0x5b0   :  { %5745 = vmatpush3.bf16.msra.mxu0 %v6098_v59  ;;  %5760 = vmatprep.mubr.msk.bf16.mxu0 %vm6274_vm11, %v6273_v37 }
 0x5b1   :  { %5746 = vmatprep.subr.bf16.mxu0 %v6273_v37  ;;  %5400 = vmatprep.subr.bf16.mxu1 %v6109_v2 }
 0x5b3   :  { %5401 = vmatpush3.bf16.msra.mxu1 %v6110_v43 }
 0x5b4   :  { %5747 = vmatpush3.bf16.msra.mxu0 %v6099_v61  ;;  %5402 = vmatprep.subr.bf16.mxu1 %v6112_v7  ;;  %v7473_v7 = vld [vmem:[%s8005_s2 + $0x48] ss:$0 sm:$0xff] }
 0x5b5   :  { %5748 = vmatprep.subr.bf16.mxu0 %v6273_v37 }
 0x5b7   :  { %5403 = vmatpush3.bf16.msra.mxu1 %v6113_v22 }
 0x5b8   :  { %5749 = vmatpush3.bf16.msra.mxu0 %v6100_v16  ;;  %5404 = vmatprep.subr.bf16.mxu1 %v6115_v15 }
 0x5b9   :  { %5750 = vmatprep.subr.bf16.mxu0 %v6273_v37 }
 0x5bb   :  { %5405 = vmatpush3.bf16.msra.mxu1 %v6116_v17 }
 0x5bc   :  { %5751 = vmatpush3.bf16.msra.mxu0 %v6101_v41  ;;  %5406 = vmatprep.subr.bf16.mxu1 %v6118_v12 }
 0x5bd   :  { %5752 = vmatprep.subr.bf16.mxu0 %v6273_v37 }
 0x5bf   :  { %5407 = vmatpush3.bf16.msra.mxu1 %v6119_v26 }
 0x5c0   :  { %5753 = vmatpush3.bf16.msra.mxu0 %v6102_v1  ;;  %5408 = vmatprep.subr.bf16.mxu1 %v6121_v11 }
 0x5c1   :  { %5754 = vmatprep.subr.bf16.mxu0 %v6273_v37 }
 0x5c3   :  { %5409 = vmatpush3.bf16.msra.mxu1 %v6122_v21 }
 0x5c4   :  { %5755 = vmatpush3.bf16.msra.mxu0 %v6103_v51  ;;  %5410 = vmatprep.subr.bf16.mxu1 %v6124_v28 }
 0x5c5   :  { %5756 = vmatprep.subr.bf16.mxu0 %v6273_v37 }
 0x5c7   :  { %5411 = vmatpush3.bf16.msra.mxu1 %v6125_v39 }
 0x5c8   :  { %5757 = vmatpush3.bf16.msra.mxu0 %v6104_v5  ;;  %5412 = vmatprep.subr.bf16.mxu1 %v6127_v53  ;;  %v7458_v5 = vld [vmem:[%s8005_s2 + $0x40] ss:$0 sm:$0xff] }
 0x5c9   :  { %5758 = vmatprep.subr.bf16.mxu0 %v6273_v37 }
 0x5cb   :  { %5413 = vmatpush3.bf16.msra.mxu1 %v6128_v63 }
 0x5cc   :  { %5759 = vmatpush3.bf16.msra.mxu0 %v6105_v13  ;;  %5784 = vmatprep.subr.bf16.mxu1 %v6273_v37 }
 0x5cd   :  { %5764 = vmatprep.subr.bf16.mxu0 %v6273_v37 }
 0x5cf   :  { %5761 = vmatmul.mubr.bf16.vlgmr.msra.gmra.mxu0 %v7269_v50 }
 0x5d0   :  { %5780 = vmatprep.mubr.msk.bf16.mxu0 %vm6274_vm11, %v6273_v37  ;;  %5765 = vmatpush3.bf16.msra.mxu0 %v6108_v0  ;;  %v7467_v0 = vld [vmem:[%s8005_s2 + $0x30] ss:$0 sm:$0xff] }
 0x5d1   :  { %5766 = vmatprep.subr.bf16.mxu0 %v6273_v37 }
 0x5d4   :  { %5767 = vmatpush3.bf16.msra.mxu0 %v6111_v4 }
 0x5d5   :  { %5768 = vmatprep.subr.bf16.mxu0 %v6273_v37 }
 0x5d8   :  { %5769 = vmatpush3.bf16.msra.mxu0 %v6114_v8 }
 0x5d9   :  { %5770 = vmatprep.subr.bf16.mxu0 %v6273_v37 }
 0x5dc   :  { %5771 = vmatpush3.bf16.msra.mxu0 %v6117_v9  ;;  %v7480_v9 = vld [vmem:[%s8005_s2 + $0x38] ss:$0 sm:$0xff] }
 0x5dd   :  { %5772 = vmatprep.subr.bf16.mxu0 %v6273_v37 }
 0x5e0   :  { %5773 = vmatpush3.bf16.msra.mxu0 %v6120_v19  ;;  %v7487_v19 = vld [vmem:[%s8005_s2 + $0x50] ss:$0 sm:$0xff] }
 0x5e1   :  { %5774 = vmatprep.subr.bf16.mxu0 %v6273_v37 }
 0x5e4   :  { %5775 = vmatpush3.bf16.msra.mxu0 %v6123_v3 }
 0x5e5   :  { %5776 = vmatprep.subr.bf16.mxu0 %v6273_v37 }
 0x5e8   :  { %5777 = vmatpush3.bf16.msra.mxu0 %v6126_v23  ;;  %v7494_v23 = vld [vmem:[%s8005_s2 + $0x58] ss:$0 sm:$0xff] }
 0x5e9   :  { %5778 = vmatprep.subr.bf16.mxu0 %v6273_v37 }
 0x5ec   :  { %5779 = vmatpush3.bf16.msra.mxu0 %v6129_v60 }
 0x5ed   :  { %5790 = vmatprep.subr.bf16.mxu0 %v6273_v37 }
 0x64e   :  { %v2546_v35 = vpop.f32.mrf.mxu1 }
 0x64f   :  { %v5343_v25 = vpop.f32.mrf.mxu0 }
 0x650   :  { %v5722_v20 = vpop.f32.mrf.mxu1 }
 0x651   :  { %v5344_v29 = vpop.f32.mrf.mxu0 }
 0x652   :  { %v2549_v50 = vpop.f32.mrf.mxu1  ;;  %v5345_v52 = vadd.f32 %v5344_v29, %v5343_v25 }
 0x653   :  { %v5346_v32 = vpop.f32.mrf.mxu0 }
 0x654   :  { %v5723_v58 = vpop.f32.mrf.mxu1  ;;  %v2506_v59 = vadd.f32 %v5345_v52, %v4899_v54 }
 0x655   :  { %v5347_v36 = vpop.f32.mrf.mxu0 }
 0x656   :  { %v5348_v61 = vadd.f32 %v5347_v36, %v5346_v32  ;;  %v2547_v1 = vadd.f32 %v2546_v35, %v2506_v59 }
 0x658   :  { %v2509_v51 = vadd.f32 %v5348_v61, %v4899_v54  ;;  %v2553_v2 = vmul.f32 %v7467_v0, %v2547_v1 }
 0x65a   :  { %v2550_v4 = vadd.f32 %v2549_v50, %v2509_v51  ;;  %v2555_v12 = vadd.f32 %v7480_v9, %v2553_v2 }
 0x65c   :  { %v2554_v26 = vmul.f32 %v7467_v0, %v2550_v4 }
 0x65e   :  { %v2556_v63 = vadd.f32 %v7480_v9, %v2554_v26 }
 0x66e   :  { %v2846_v30 = vpop.f32.mrf.mxu1 }
 0x66f   :  { %v5374_v40 = vpop.f32.mrf.mxu0 }
 0x670   :  { %v5742_v33 = vpop.f32.mrf.mxu1 }
 0x671   :  { %v5375_v42 = vpop.f32.mrf.mxu0 }
 0x672   :  { %v2849_v24 = vpop.f32.mrf.mxu1  ;;  %v5376_v46 = vadd.f32 %v5375_v42, %v5374_v40 }
 0x673   :  { %v5377_v44 = vpop.f32.mrf.mxu0 }
 0x674   :  { %v5743_v34 = vpop.f32.mrf.mxu1  ;;  %v2806_v55 = vadd.f32 %v5376_v46, %v4924_v27 }
 0x675   :  { %v5378_v48 = vpop.f32.mrf.mxu0 }
 0x676   :  { %v5379_v56 = vadd.f32 %v5378_v48, %v5377_v44  ;;  %v2847_v16 = vadd.f32 %v2846_v30, %v2806_v55 }
 0x678   :  { %v2809_v41 = vadd.f32 %v5379_v56, %v4924_v27  ;;  %v2853_v13 = vmul.f32 %v7458_v5, %v2847_v16 }
 0x67a   :  { %v2850_v62 = vadd.f32 %v2849_v24, %v2809_v41  ;;  %v2855_v8 = vadd.f32 %v7473_v7, %v2853_v13 }
 0x67c   :  { %v2854_v22 = vmul.f32 %v7458_v5, %v2850_v62  ;;  %v2857_v28 = vadd.f32 %v2855_v8, %v2555_v12 }
 0x67e   :  { %v2856_v21 = vadd.f32 %v7473_v7, %v2854_v22 }
 0x680   :  { %v2858_v50 = vadd.f32 %v2856_v21, %v2556_v63  ;;  %v6133_v63 = vld [vmem:[%s8004_s1 + $0x770] sm:$0xff]  }
 0x68f   :  { %v2965_v43 = vpop.f32.mrf.mxu0 }
 0x690   :  { %v2966_v15 = vadd.f32 %v4949_v6, %v2965_v43 }
 0x691   :  { %v5762_v17 = vpop.f32.mrf.mxu0 }
 0x692   :  { %v2972_v11 = vmul.f32 %v7487_v19, %v2966_v15 }
 0x693   :  { %v2968_v3 = vpop.f32.mrf.mxu0 }
 0x694   :  { %v2974_v39 = vadd.f32 %v7494_v23, %v2972_v11  ;;  %v2969_v53 = vadd.f32 %v4949_v6, %v2968_v3  ;;  %v6144_v6 = vld [vmem:[%s8004_s1 + $0x798] sm:$0xff]  }
 0x695   :  { %v5763_v60 = vpop.f32.mrf.mxu0 }
 0x696   :  { %v7498_v35 = vadd.f32 %v2974_v39, %v2857_v28  ;;  %v2973_v20 = vmul.f32 %v7487_v19, %v2969_v53  ;;  %v6130_v28 = vld [vmem:[%s8004_s1 + $0x778] sm:$0xff]   ;;  %v7563_v53 = vpack.c.bf16 %v6948_v10, %v6948_v10  ;;  %v6134_v10 = vld [vmem:[%s8004_s1 + $0x730] sm:$0xff]  }
 0x697   :  { %v6131_v60 = vld [vmem:[%s8004_s1 + $0x738] sm:$0xff]  }
 0x698   :  { %v2975_v58 = vadd.f32 %v7494_v23, %v2973_v20  ;;  %v2978_v25 = vmax.f32 %v7498_v35, 0.0  ;;  %v3615_v30 = vrot.slane %v7498_v35, 1  ;;  %v6136_v20 = vld [vmem:[%s8004_s1 + $0x768] sm:$0xff]  }
 0x69a   :  { %v7503_v29 = vadd.f32 %v2975_v58, %v2858_v50  ;;  %v2980_v36 = vrot.slane %v2978_v25, 7  ;;  %v2986_v34 = vrot.slane %v2978_v25, 1  ;;  %v6137_v50 = vld [vmem:[%s8004_s1 + $0x728] sm:$0xff]   ;;  %v6139_v58 = vld [vmem:[%s8004_s1 + $0x760] sm:$0xff]  }
 0x69c   :  { %v3616_v32 = vrot.slane %v7503_v29, 1  ;;  %v2979_v33 = vmax.f32 %v7503_v29, 0.0  ;;  %v3653_v24 = vpack.c.bf16 %v7503_v29, %v7498_v35  ;;  %v6178_v35 = vld [vmem:[%s8004_s1 + $0x8e8] sm:$0xff]   ;;  %v6181_v29 = vld [vmem:[%s8004_s1 + $0x8e0] sm:$0xff]  }
 0x69e   :  { %v2981_v40 = vrot.slane %v2979_v33, 7  ;;  %v2987_v42 = vrot.slane %v2979_v33, 1  ;;  %v3041_v44 = vpack.c.bf16 %v2979_v33, %v2978_v25  ;;  %v3617_v46 = vsel %vm66_vm2, %v3615_v30, %v3616_v32  ;;  %v6140_v25 = vld [vmem:[%s8004_s1 + $0x720] sm:$0xff]   ;;  %v6145_v33 = vld [vmem:[%s8004_s1 + $0x750] sm:$0xff]  }
 0x69f   :  { %v3618_v27 = vsel %vm66_vm2, %v3616_v32, %v3615_v30  ;;  %v7515_v48 = vmul.f32 %v7029_v18, %v3617_v46  ;;  %v6142_v30 = vld [vmem:[%s8004_s1 + $0x758] sm:$0xff]   ;;  %v6151_v46 = vld [vmem:[%s8004_s1 + $0x740] sm:$0xff]  }
 0x6a0   :  { %3219 = vmatprep.mubr.bf16.mxu1 %v3041_v44  ;;  %v2982_v52 = vsel %vm26_vm0, %v2980_v36, %v2981_v40  ;;  %v2983_v54 = vsel %vm26_vm0, %v2981_v40, %v2980_v36  ;;  %v2988_v55 = vsel %vm66_vm2, %v2986_v34, %v2987_v42  ;;  %v2989_v56 = vsel %vm66_vm2, %v2987_v42, %v2986_v34  ;;  %v6143_v32 = vld [vmem:[%s8004_s1 + $0x718] sm:$0xff]   ;;  %v6146_v36 = vld [vmem:[%s8004_s1 + $0x710] sm:$0xff]   ;;  %v6148_v40 = vld [vmem:[%s8004_s1 + $0x748] sm:$0xff]  }
 0x6a1   :  { %v2984_v59 = vmul.f32 %v6390_v38, %v2983_v54  ;;  %v2985_v61 = vmul.f32 %v7026_v49, %v2982_v52  ;;  %v2990_v16 = vmul.f32 %v7029_v18, %v2988_v55  ;;  %v2991_v41 = vmul.f32 %v6406_v45, %v2989_v56  ;;  %v6132_v38 = vld [vmem:[%s8004_s1 + $0x7b8] sm:$0xff]   ;;  %v6138_v49 = vld [vmem:[%s8004_s1 + $0x7a8] sm:$0xff]   ;;  %v6141_v18 = vld [vmem:[%s8004_s1 + $0x7a0] sm:$0xff]  }
 0x6a2   :  { %v7530_v1 = vmul.f32 %v6406_v45, %v3618_v27  ;;  %v6135_v45 = vld [vmem:[%s8004_s1 + $0x7b0] sm:$0xff]   ;;  %vm3276_vm0 = vcmask 130048   ;;  %v6149_v42 = vld [vmem:[%s8004_s1 + $0x708] sm:$0xff]   ;;  %v6152_v27 = vld [vmem:[%s8004_s1 + $0x700] sm:$0xff]   ;;  %vm3322_vm2 = vcmp.eq.s32.totalorder %v6336_v14, 4 }
 0x6a3   :  { %v3040_v51 = vpack.c.bf16 %v2985_v61, %v2984_v59  ;;  %v3042_v13 = vpack.c.bf16 %v2991_v41, %v2990_v16  ;;  %v6147_v34 = vld [vmem:[%s8004_s1 + $0x790] sm:$0xff]   ;;  %v6150_v44 = vld [vmem:[%s8004_s1 + $0x788] sm:$0xff]   ;;  %v6154_v52 = vld [vmem:[%s8004_s1 + $0x838] sm:$0xff]  }
 0x6a4   :  { %v3654_v62 = vpack.c.bf16 %v7530_v1, %v7515_v48  ;;  %v6153_v54 = vld [vmem:[%s8004_s1 + $0x780] sm:$0xff]   ;;  %vm3323_vm8 = vmor %vm34_vm1, %vm3322_vm2  ;;  %v4982_v55 = vld [vmem:[%s8005_s2 + $0xa8] ss:$0 sm:$0xff] }
 0x6a5   :  { %3220 = vmatmul.mubr.bf16.vlgmr.msra.gmra.mxu1 %v3040_v51  ;;  %5781 = vmatmul.mubr.bf16.vlgmr.msra.gmra.mxu0 %v3042_v13  ;;  %vm3324_vm10 = vmxor %vm3323_vm8, %vm6272_vm6  ;;  %v7642_v51 = vsel %vm3331_vm12, 1.0, %v6273_v37  ;;  %v6160_v48 = vld [vmem:[%s8004_s1 + $0x820] sm:$0xff]  }
 0x6a6   :  { %5786 = vmatprep.mubr.msk.bf16.mxu1 %vm6274_vm11, %v6273_v37  ;;  %5806 = vmatprep.mubr.msk.bf16.mxu0 %vm6274_vm11, %v6273_v37  ;;  %v7639_v41 = vsel %vm3324_vm10, 1.0, %v6273_v37  ;;  %v6161_v1 = vld [vmem:[%s8004_s1 + $0x7e0] sm:$0xff]  }
 0x6a7   :  { %5791 = vmatpush3.bf16.msra.mxu0 %v6132_v38 }
 0x6a8   :  { %5792 = vmatprep.subr.bf16.mxu0 %v6273_v37 }
 0x6ab   :  { %5793 = vmatpush3.bf16.msra.mxu0 %v6135_v45 }
 0x6ac   :  { %5794 = vmatprep.subr.bf16.mxu0 %v6273_v37 }
 0x6af   :  { %5795 = vmatpush3.bf16.msra.mxu0 %v6138_v49 }
 0x6b0   :  { %5796 = vmatprep.subr.bf16.mxu0 %v6273_v37 }
 0x6b3   :  { %5797 = vmatpush3.bf16.msra.mxu0 %v6141_v18 }
 0x6b4   :  { %5798 = vmatprep.subr.bf16.mxu0 %v6273_v37 }
 0x6b7   :  { %5799 = vmatpush3.bf16.msra.mxu0 %v6144_v6 }
 0x6b8   :  { %5800 = vmatprep.subr.bf16.mxu0 %v6273_v37 }
 0x6bb   :  { %5801 = vmatpush3.bf16.msra.mxu0 %v6147_v34 }
 0x6bc   :  { %5802 = vmatprep.subr.bf16.mxu0 %v6273_v37 }
 0x6bf   :  { %5803 = vmatpush3.bf16.msra.mxu0 %v6150_v44 }
 0x6c0   :  { %5804 = vmatprep.subr.bf16.mxu0 %v6273_v37 }
 0x6c3   :  { %5805 = vmatpush3.bf16.msra.mxu0 %v6153_v54 }
 0x6c4   :  { %5810 = vmatprep.subr.bf16.mxu0 %v6273_v37 }
 0x765   :  { %v5414_v2 = vpop.f32.mrf.mxu1  ;;  %v3262_v4 = vpop.f32.mrf.mxu0 }
 0x767   :  { %v5415_v43 = vpop.f32.mrf.mxu1  ;;  %v5782_v8 = vpop.f32.mrf.mxu0 }
 0x768   :  { %v5416_v17 = vadd.f32 %v5415_v43, %v5414_v2 }
 0x769   :  { %v5417_v22 = vpop.f32.mrf.mxu1  ;;  %v3265_v15 = vpop.f32.mrf.mxu0 }
 0x76a   :  { %v3263_v3 = vadd.f32 %v5416_v17, %v3262_v4  ;;  %v6155_v4 = vld [vmem:[%s8004_s1 + $0x7f8] sm:$0xff]   ;;  %v6158_v17 = vld [vmem:[%s8004_s1 + $0x828] sm:$0xff]  }
 0x76b   :  { %v5418_v12 = vpop.f32.mrf.mxu1  ;;  %v5783_v26 = vpop.f32.mrf.mxu0 }
 0x76c   :  { %v5419_v11 = vadd.f32 %v5418_v12, %v5417_v22  ;;  %v6156_v22 = vld [vmem:[%s8004_s1 + $0x830] sm:$0xff]   ;;  %v6159_v12 = vld [vmem:[%s8004_s1 + $0x7e8] sm:$0xff]   ;;  %v6163_v26 = vld [vmem:[%s8004_s1 + $0x7d8] sm:$0xff]  }
 0x76e   :  { %v3266_v21 = vadd.f32 %v5419_v11, %v3265_v15  ;;  %v6157_v15 = vld [vmem:[%s8004_s1 + $0x7f0] sm:$0xff]  }
 0x76f   :  { %v6164_v11 = vld [vmem:[%s8004_s1 + $0x810] sm:$0xff]  }
 0x770   :  { %v3270_v39 = vpack.c.bf16 %v3266_v21, %v3263_v3  ;;  %v6165_v3 = vld [vmem:[%s8004_s1 + $0x7d0] sm:$0xff]   ;;  %v6166_v21 = vld [vmem:[%s8004_s1 + $0x808] sm:$0xff]  }
 0x772   :  { %5785 = vmatpush3.bf16.msra.mxu1 %v3270_v39  ;;  %v6168_v39 = vld [vmem:[%s8004_s1 + $0x800] sm:$0xff]  }
 0x773   :  { %5431 = vmatprep.subr.bf16.mxu1 %v6130_v28  ;;  %v6167_v28 = vld [vmem:[%s8004_s1 + $0x7c8] sm:$0xff]  }
 0x775   :  { %5787 = vmatmul.mubr.msk.bf16.vlgmr.msra.gmra.mxu1 %vm3276_vm0, %v7563_v53 }
 0x776   :  { %5432 = vmatpush3.bf16.msra.mxu1 %v6131_v60  ;;  %v6169_v60 = vld [vmem:[%s8004_s1 + $0x7c0] sm:$0xff]  }
 0x777   :  { %5433 = vmatprep.subr.bf16.mxu1 %v6133_v63  ;;  %v6172_v63 = vld [vmem:[%s8004_s1 + $0x8f8] sm:$0xff]  }
 0x77a   :  { %5434 = vmatpush3.bf16.msra.mxu1 %v6134_v10  ;;  %v6175_v10 = vld [vmem:[%s8004_s1 + $0x8f0] sm:$0xff]  }
 0x77b   :  { %5435 = vmatprep.subr.bf16.mxu1 %v6136_v20  ;;  %v6187_v20 = vld [vmem:[%s8004_s1 + $0x8d0] sm:$0xff]  }
 0x77e   :  { %5436 = vmatpush3.bf16.msra.mxu1 %v6137_v50 }
 0x77f   :  { %5437 = vmatprep.subr.bf16.mxu1 %v6139_v58 }
 0x782   :  { %5438 = vmatpush3.bf16.msra.mxu1 %v6140_v25  ;;  %v4986_v25 = vld [vmem:[%s8005_s2 + $0xb0] ss:$0 sm:$0xff] }
 0x783   :  { %5439 = vmatprep.subr.bf16.mxu1 %v6142_v30 }
 0x786   :  { %5440 = vmatpush3.bf16.msra.mxu1 %v6143_v32 }
 0x787   :  { %5441 = vmatprep.subr.bf16.mxu1 %v6145_v33 }
 0x78a   :  { %5442 = vmatpush3.bf16.msra.mxu1 %v6146_v36 }
 0x78b   :  { %5443 = vmatprep.subr.bf16.mxu1 %v6148_v40 }
 0x78e   :  { %5444 = vmatpush3.bf16.msra.mxu1 %v6149_v42 }
 0x78f   :  { %5445 = vmatprep.subr.bf16.mxu1 %v6151_v46 }
 0x792   :  { %5446 = vmatpush3.bf16.msra.mxu1 %v6152_v27 }
 0x793   :  { %5462 = vmatprep.subr.bf16.mxu1 %v6154_v52 }
 0x835   :  { %v3314_v56 = vpop.f32.mrf.mxu1 }
 0x836   :  { %v3315_v59 = vadd.f32 %v4982_v55, %v3314_v56 }
 0x837   :  { %v5788_v61 = vpop.f32.mrf.mxu1 }
 0x838   :  { %v3320_v16 = vmax.f32 %v3315_v59, 0.0  ;;  %v6170_v61 = vld [vmem:[%s8004_s1 + $0x8b8] sm:$0xff]  }
 0x839   :  { %v3317_v13 = vpop.f32.mrf.mxu1 }
 0x83a   :  { %v3321_v38 = vrot.slane %v3320_v16, 7  ;;  %v3328_v45 = vrot.slane %v3320_v16, 1  ;;  %v3384_v49 = vpack.c.bf16 %v3320_v16, %v3320_v16  ;;  %v6171_v13 = vld [vmem:[%s8004_s1 + $0x878] sm:$0xff]  }
 0x83b   :  { %v5789_v18 = vpop.f32.mrf.mxu1 }
 0x83c   :  { %v3327_v6 = vmul.f32 %v7639_v41, %v3321_v38  ;;  %v3334_v2 = vmul.f32 %v7642_v51, %v3328_v45  ;;  %3567 = vmatprep.mubr.bf16.mxu1 %v3384_v49  ;;  %v6173_v38 = vld [vmem:[%s8004_s1 + $0x8b0] sm:$0xff]   ;;  %v6176_v49 = vld [vmem:[%s8004_s1 + $0x8a8] sm:$0xff]  }
 0x83d   :  { %v6174_v45 = vld [vmem:[%s8004_s1 + $0x870] sm:$0xff]   ;;  %v6177_v18 = vld [vmem:[%s8004_s1 + $0x868] sm:$0xff]  }
 0x83e   :  { %v3383_v43 = vpack.c.bf16 %v3327_v6, %v3327_v6  ;;  %v3385_v8 = vpack.c.bf16 %v3334_v2, %v3334_v2  ;;  %v6180_v6 = vld [vmem:[%s8004_s1 + $0x860] sm:$0xff]   ;;  %v6182_v2 = vld [vmem:[%s8004_s1 + $0x898] sm:$0xff]  }
 0x840   :  { %3568 = vmatmul.mubr.bf16.vlgmr.msra.gmra.mxu1 %v3383_v43  ;;  %5807 = vmatmul.mubr.bf16.vlgmr.msra.gmra.mxu0 %v3385_v8  ;;  %v6185_v43 = vld [vmem:[%s8004_s1 + $0x890] sm:$0xff]  }
 0x841   :  { %5463 = vmatpush3.bf16.msra.mxu1 %v6155_v4  ;;  %3783 = vmatprep.mubr.bf16.mxu1 %v3654_v62  ;;  %v6162_v62 = vld [vmem:[%s8004_s1 + $0x818] sm:$0xff]   ;;  %v6186_v8 = vld [vmem:[%s8004_s1 + $0x850] sm:$0xff]  }
 0x842   :  { %5464 = vmatprep.subr.bf16.mxu1 %v6156_v22  ;;  %5812 = vmatprep.mubr.msk.bf16.mxu0 %vm6274_vm11, %v6273_v37  ;;  %v6183_v4 = vld [vmem:[%s8004_s1 + $0x858] sm:$0xff]   ;;  %v6188_v22 = vld [vmem:[%s8004_s1 + $0x888] sm:$0xff]  }
 0x845   :  { %5465 = vmatpush3.bf16.msra.mxu1 %v6157_v15  ;;  %v6189_v15 = vld [vmem:[%s8004_s1 + $0x848] sm:$0xff]  }
 0x846   :  { %5466 = vmatprep.subr.bf16.mxu1 %v6158_v17  ;;  %v6190_v17 = vld [vmem:[%s8004_s1 + $0x8c8] sm:$0xff]  }
 0x849   :  { %5467 = vmatpush3.bf16.msra.mxu1 %v6159_v12  ;;  %v6191_v12 = vld [vmem:[%s8004_s1 + $0x880] sm:$0xff]  }
 0x84a   :  { %5468 = vmatprep.subr.bf16.mxu1 %v6160_v48  ;;  %v6193_v48 = vld [vmem:[%s8004_s1 + $0x8c0] sm:$0xff]  }
 0x84d   :  { %5469 = vmatpush3.bf16.msra.mxu1 %v6161_v1  ;;  %v6192_v1 = vld [vmem:[%s8004_s1 + $0x840] sm:$0xff]  }
 0x84e   :  { %5470 = vmatprep.subr.bf16.mxu1 %v6162_v62  ;;  %v6194_v62 = vld [vmem:[%s8004_s1 + $0x978] sm:$0xff]  }
 0x851   :  { %5471 = vmatpush3.bf16.msra.mxu1 %v6163_v26 }
 0x852   :  { %5472 = vmatprep.subr.bf16.mxu1 %v6164_v11 }
 0x855   :  { %5473 = vmatpush3.bf16.msra.mxu1 %v6165_v3 }
 0x856   :  { %5474 = vmatprep.subr.bf16.mxu1 %v6166_v21 }
 0x859   :  { %5475 = vmatpush3.bf16.msra.mxu1 %v6167_v28 }
 0x85a   :  { %5476 = vmatprep.subr.bf16.mxu1 %v6168_v39 }
 0x85d   :  { %5477 = vmatpush3.bf16.msra.mxu1 %v6169_v60 }
 0x85e   :  { %5816 = vmatprep.subr.bf16.mxu1 %v6273_v37 }
 0x860   :  { %3784 = vmatmul.mubr.bf16.vlgmr.msra.gmra.mxu1 %v3653_v24  ;;  %v6184_v24 = vld [vmem:[%s8004_s1 + $0x8d8] sm:$0xff]  }
 0x861   :  { %5832 = vmatprep.mubr.msk.bf16.mxu1 %vm6274_vm11, %v6273_v37  ;;  %5817 = vmatpush3.bf16.msra.mxu1 %v6172_v63 }
 0x862   :  { %5818 = vmatprep.subr.bf16.mxu1 %v6273_v37 }
 0x865   :  { %5819 = vmatpush3.bf16.msra.mxu1 %v6175_v10 }
 0x866   :  { %5820 = vmatprep.subr.bf16.mxu1 %v6273_v37 }
 0x869   :  { %5821 = vmatpush3.bf16.msra.mxu1 %v6178_v35 }
 0x86a   :  { %5822 = vmatprep.subr.bf16.mxu1 %v6273_v37 }
 0x86d   :  { %5823 = vmatpush3.bf16.msra.mxu1 %v6181_v29 }
 0x86e   :  { %5824 = vmatprep.subr.bf16.mxu1 %v6273_v37 }
 0x871   :  { %5825 = vmatpush3.bf16.msra.mxu1 %v6184_v24 }
 0x872   :  { %5826 = vmatprep.subr.bf16.mxu1 %v6273_v37 }
 0x875   :  { %5827 = vmatpush3.bf16.msra.mxu1 %v6187_v20 }
 0x876   :  { %5828 = vmatprep.subr.bf16.mxu1 %v6273_v37 }
 0x879   :  { %5829 = vmatpush3.bf16.msra.mxu1 %v6190_v17  ;;  %v6222_v17 = vld [vmem:[%s8004_s1 + $0x9d8] sm:$0xff]  }
 0x87a   :  { %5830 = vmatprep.subr.bf16.mxu1 %v6273_v37 }
 0x87d   :  { %5831 = vmatpush3.bf16.msra.mxu1 %v6193_v48 }
 0x87e   :  { %5836 = vmatprep.subr.bf16.mxu1 %v6273_v37 }
 0x900   :  { %v5447_v50 = vpop.f32.mrf.mxu1  ;;  %v3609_v58 = vpop.f32.mrf.mxu0 }
 0x902   :  { %v5448_v30 = vpop.f32.mrf.mxu1  ;;  %v5808_v32 = vpop.f32.mrf.mxu0 }
 0x903   :  { %v5449_v33 = vadd.f32 %v5448_v30, %v5447_v50  ;;  %v6197_v32 = vld [vmem:[%s8004_s1 + $0x970] sm:$0xff]  }
 0x904   :  { %v5450_v36 = vpop.f32.mrf.mxu1  ;;  %v3612_v34 = vpop.f32.mrf.mxu0 }
 0x905   :  { %v3570_v40 = vadd.f32 %v5449_v33, %v4986_v25  ;;  %v6198_v33 = vld [vmem:[%s8004_s1 + $0x930] sm:$0xff]   ;;  %v6200_v34 = vld [vmem:[%s8004_s1 + $0x968] sm:$0xff]  }
 0x906   :  { %v5451_v42 = vpop.f32.mrf.mxu1  ;;  %v5809_v44 = vpop.f32.mrf.mxu0  ;;  %v6199_v36 = vld [vmem:[%s8004_s1 + $0x9b0] sm:$0xff]  }
 0x907   :  { %v3610_v46 = vadd.f32 %v3609_v58, %v3570_v40  ;;  %v6201_v40 = vld [vmem:[%s8004_s1 + $0x928] sm:$0xff]   ;;  %v6203_v44 = vld [vmem:[%s8004_s1 + $0x960] sm:$0xff]  }
 0x908   :  { %v6202_v42 = vld [vmem:[%s8004_s1 + $0x9a8] sm:$0xff]  }
 0x920   :  { %v5478_v27 = vpop.f32.mrf.mxu1 }
 0x922   :  { %v5479_v52 = vpop.f32.mrf.mxu1 }
 0x923   :  { %v5480_v56 = vadd.f32 %v5479_v52, %v5478_v27  ;;  %v6205_v27 = vld [vmem:[%s8004_s1 + $0x9a0] sm:$0xff]   ;;  %v6206_v52 = vld [vmem:[%s8004_s1 + $0x958] sm:$0xff]  }
 0x924   :  { %v5481_v54 = vpop.f32.mrf.mxu1 }
 0x926   :  { %v5482_v55 = vpop.f32.mrf.mxu1 }
 0x927   :  { %v5483_v59 = vadd.f32 %v5482_v55, %v5481_v54  ;;  %v6207_v54 = vld [vmem:[%s8004_s1 + $0x918] sm:$0xff]  }
 0x928   :  { %v6208_v55 = vld [vmem:[%s8004_s1 + $0x998] sm:$0xff]  }
 0x929   :  { %v3792_v16 = vpack.c.bf16 %v5483_v59, %v5480_v56  ;;  %v6209_v56 = vld [vmem:[%s8004_s1 + $0x950] sm:$0xff]  }
 0x92a   :  { %v6210_v59 = vld [vmem:[%s8004_s1 + $0x910] sm:$0xff]  }
 0x92b   :  { %5811 = vmatpush3.bf16.msra.mxu0 %v3792_v16  ;;  %v6212_v16 = vld [vmem:[%s8004_s1 + $0x948] sm:$0xff]  }
 0x92c   :  { %5486 = vmatprep.subr.bf16.mxu0 %v6170_v61  ;;  %v6211_v61 = vld [vmem:[%s8004_s1 + $0x990] sm:$0xff]  }
 0x92e   :  { %5813 = vmatmul.mubr.msk.bf16.vlgmr.msra.gmra.mxu0 %vm3276_vm0, %v7563_v53  ;;  %v6179_v53 = vld [vmem:[%s8004_s1 + $0x8a0] sm:$0xff]  }
 0x92f   :  { %5487 = vmatpush3.bf16.msra.mxu0 %v6171_v13  ;;  %v6213_v13 = vld [vmem:[%s8004_s1 + $0x908] sm:$0xff]  }
 0x930   :  { %5488 = vmatprep.subr.bf16.mxu0 %v6173_v38  ;;  %v6214_v38 = vld [vmem:[%s8004_s1 + $0x988] sm:$0xff]  }
 0x933   :  { %5489 = vmatpush3.bf16.msra.mxu0 %v6174_v45  ;;  %v6215_v45 = vld [vmem:[%s8004_s1 + $0x940] sm:$0xff]  }
 0x934   :  { %5490 = vmatprep.subr.bf16.mxu0 %v6176_v49 }
 0x937   :  { %5491 = vmatpush3.bf16.msra.mxu0 %v6177_v18 }
 0x938   :  { %5492 = vmatprep.subr.bf16.mxu0 %v6179_v53  ;;  %v6216_v53 = vld [vmem:[%s8004_s1 + $0x900] sm:$0xff]  }
 0x93b   :  { %5493 = vmatpush3.bf16.msra.mxu0 %v6180_v6  ;;  %v6217_v6 = vld [vmem:[%s8004_s1 + $0x980] sm:$0xff]  }
 0x93c   :  { %5494 = vmatprep.subr.bf16.mxu0 %v6182_v2 }
 0x93f   :  { %5495 = vmatpush3.bf16.msra.mxu0 %v6183_v4 }
 0x940   :  { %5496 = vmatprep.subr.bf16.mxu0 %v6185_v43  ;;  %v6218_v43 = vld [vmem:[%s8004_s1 + $0x9f8] sm:$0xff]  }
 0x943   :  { %5497 = vmatpush3.bf16.msra.mxu0 %v6186_v8 }
 0x944   :  { %5498 = vmatprep.subr.bf16.mxu0 %v6188_v22 }
 0x947   :  { %5499 = vmatpush3.bf16.msra.mxu0 %v6189_v15  ;;  %v6221_v15 = vld [vmem:[%s8004_s1 + $0x9e0] sm:$0xff]  }
 0x948   :  { %5500 = vmatprep.subr.bf16.mxu0 %v6191_v12  ;;  %v6246_v12 = vld [vmem:[%s8005_s2 + $0x20] ss:$0 sm:$0xff] }
 0x94b   :  { %5501 = vmatpush3.bf16.msra.mxu0 %v6192_v1  ;;  %v6247_v1 = vld [vmem:[%s8005_s2 + $0x10] ss:$0 sm:$0xff] }
 0x94c   :  { %5517 = vmatprep.subr.bf16.mxu0 %v6194_v62 }
 0x9ee   :  { %v3827_v26 = vpop.f32.mrf.mxu0 }
 0x9ef   :  { %v7790_v11 = vadd.f32 %v3827_v26, %v3610_v46  ;;  %v6204_v46 = vld [vmem:[%s8004_s1 + $0x920] sm:$0xff]   ;;  %v6223_v26 = vld [vmem:[%s8004_s1 + $0x9d0] sm:$0xff]  }
 0x9f0   :  { %v5814_v3 = vpop.f32.mrf.mxu0 }
 0x9f1   :  { %v3834_v21 = vmul.f32 %v7202_v31, %v7790_v11  ;;  %v3841_v28 = vmax.f32 %v7790_v11, 0.0  ;;  %v6195_v31 = vld [vmem:[%s8004_s1 + $0x938] sm:$0xff]   ;;  %v3836_v62 = vmul.f32 %v6247_v1, %v7790_v11  ;;  %v6248_v3 = vld [vmem:[%s8005_s2 + $0x28] ss:$0 sm:$0xff] }
 0x9f2   :  { %v3830_v39 = vpop.f32.mrf.mxu0  ;;  %v6224_v11 = vld [vmem:[%s8004_s1 + $0x9c8] sm:$0xff]  }
 0x9f3   :  { %v7796_v60 = vadd.f32 %v7208_v47, %v3834_v21  ;;  %v3842_v63 = vrot.slane %v3841_v28, 7  ;;  %v3844_v10 = vrot.slane %v3841_v28, 1  ;;  %v3895_v29 = vpack.c.bf16 %v3841_v28, %v3841_v28  ;;  %v6196_v47 = vld [vmem:[%s8004_s1 + $0x9b8] sm:$0xff]   ;;  %v6228_v1 = vld [vmem:[%s8004_s1 + $0xa28] sm:$0xff]  }
 0x9f4   :  { %v5815_v35 = vpop.f32.mrf.mxu0  ;;  %v6249_v28 = vld [vmem:[%s8005_s2 + $0x18] ss:$0 sm:$0xff] }
 0x9f5   :  { %v3843_v24 = vmul.f32 %v7639_v41, %v3842_v63  ;;  %v3845_v20 = vmul.f32 %v7642_v51, %v3844_v10  ;;  %v7801_v50 = vmax.f32 %v7796_v60, 0.0  ;;  %4078 = vmatprep.mubr.bf16.mxu0 %v3895_v29  ;;  %v3838_v48 = vmul.f32 %v6246_v12, %v7796_v60  ;;  %v6225_v63 = vld [vmem:[%s8004_s1 + $0x9c0] sm:$0xff]  }
 0x9f6   :  { %v3837_v39 = vadd.f32 %v6249_v28, %v3836_v62  ;;  %v6229_v62 = vld [vmem:[%s8004_s1 + $0xa20] sm:$0xff]  }
 0x9f7   :  { %v3894_v58 = vpack.c.bf16 %v3843_v24, %v3843_v24  ;;  %v3896_v25 = vpack.c.bf16 %v3845_v20, %v3845_v20  ;;  %v4182_v30 = vpack.c.bf16 %v7801_v50, %v7801_v50  ;;  %v4129_v49 = vrot.slane %v7801_v50, 7  ;;  %v6233_v28 = vld [vmem:[%s8004_s1 + $0xa00] sm:$0xff]  }
 0x9f8   :  { %v4131_v18 = vrot.slane %v7801_v50, 1  ;;  %v3839_v21 = vadd.f32 %v6248_v3, %v3838_v48  ;;  %v6226_v48 = vld [vmem:[%s8004_s1 + $0xa38] sm:$0xff]   ;;  %v6231_v3 = vld [vmem:[%s8004_s1 + $0xa10] sm:$0xff]  }
 0x9f9   :  { %4079 = vmatmul.mubr.bf16.vlgmr.msra.gmra.mxu0 %v3894_v58  ;;  %5833 = vmatmul.mubr.bf16.vlgmr.msra.gmra.mxu1 %v3896_v25  ;;  %v4130_v2 = vmul.f32 %v7639_v41, %v4129_v49  ;;  %v6219_v41 = vld [vmem:[%s8004_s1 + $0x9f0] sm:$0xff]   ;;  %v4543_v49 = vmul.u32 4, %v6336_v14  ;;  %v5088_v14 = vld [vmem:[%s8005_s2 + $0xd8] ss:$0 sm:$0xff] }
 0x9fa   :  { %5518 = vmatpush3.bf16.msra.mxu0 %v6195_v31  ;;  %5837 = vmatpush3.bf16.msra.mxu1 %v6196_v47  ;;  %v4132_v4 = vmul.f32 %v7642_v51, %v4131_v18  ;;  %v6220_v51 = vld [vmem:[%s8004_s1 + $0x9e8] sm:$0xff]   ;;  %v3840_v60 = vadd.f32 %v3839_v21, %v3837_v39 }
 0x9fb   :  { %4365 = vmatprep.mubr.bf16.mxu0 %v4182_v30  ;;  %5519 = vmatprep.subr.bf16.mxu0 %v6197_v32  ;;  %v4181_v8 = vpack.c.bf16 %v4130_v2, %v4130_v2  ;;  %vm4544_vm1 = vcmp.ge.s32.totalorder %v6941_v57, %v4543_v49  ;;  %v6232_v21 = vld [vmem:[%s8004_s1 + $0xa08] sm:$0xff]  }
 0x9fc   :  { %5838 = vmatprep.subr.bf16.mxu1 %v6273_v37  ;;  %5852 = vmatprep.mubr.msk.bf16.mxu1 %vm6274_vm11, %v6273_v37  ;;  %v4183_v22 = vpack.c.bf16 %v4132_v4, %v4132_v4  ;;  %v4416_v10 = vmax.f32 %v3840_v60, 0.0 }
 0x9fe   :  { %5520 = vmatpush3.bf16.msra.mxu0 %v6198_v33  ;;  %5839 = vmatpush3.bf16.msra.mxu1 %v6199_v36  ;;  %v4433_v35 = vpack.c.bf16 %v4416_v10, %v4416_v10 }
 0x9ff   :  { %5521 = vmatprep.subr.bf16.mxu0 %v6200_v34  ;;  %5840 = vmatprep.subr.bf16.mxu1 %v6273_v37 }
 0xa02   :  { %5522 = vmatpush3.bf16.msra.mxu0 %v6201_v40  ;;  %5841 = vmatpush3.bf16.msra.mxu1 %v6202_v42 }
 0xa03   :  { %5523 = vmatprep.subr.bf16.mxu0 %v6203_v44  ;;  %5842 = vmatprep.subr.bf16.mxu1 %v6273_v37 }
 0xa06   :  { %5524 = vmatpush3.bf16.msra.mxu0 %v6204_v46  ;;  %5843 = vmatpush3.bf16.msra.mxu1 %v6205_v27  ;;  %v5053_v27 = vld [vmem:[%s8005_s2 + $0xc0] ss:$0 sm:$0xff] }
 0xa07   :  { %5525 = vmatprep.subr.bf16.mxu0 %v6206_v52  ;;  %5844 = vmatprep.subr.bf16.mxu1 %v6273_v37 }
 0xa0a   :  { %5526 = vmatpush3.bf16.msra.mxu0 %v6207_v54  ;;  %5845 = vmatpush3.bf16.msra.mxu1 %v6208_v55  ;;  %v5028_v54 = vld [vmem:[%s8005_s2 + $0xb8] ss:$0 sm:$0xff] }
 0xa0b   :  { %5527 = vmatprep.subr.bf16.mxu0 %v6209_v56  ;;  %5846 = vmatprep.subr.bf16.mxu1 %v6273_v37 }
 0xa0e   :  { %5528 = vmatpush3.bf16.msra.mxu0 %v6210_v59  ;;  %5847 = vmatpush3.bf16.msra.mxu1 %v6211_v61 }
 0xa0f   :  { %5529 = vmatprep.subr.bf16.mxu0 %v6212_v16  ;;  %5848 = vmatprep.subr.bf16.mxu1 %v6273_v37 }
 0xa12   :  { %5530 = vmatpush3.bf16.msra.mxu0 %v6213_v13  ;;  %5849 = vmatpush3.bf16.msra.mxu1 %v6214_v38  ;;  %v5078_v13 = vld [vmem:[%s8005_s2 + $0xc8] ss:$0 sm:$0xff] }
 0xa13   :  { %5531 = vmatprep.subr.bf16.mxu0 %v6215_v45  ;;  %5850 = vmatprep.subr.bf16.mxu1 %v6273_v37 }
 0xa16   :  { %5532 = vmatpush3.bf16.msra.mxu0 %v6216_v53  ;;  %5851 = vmatpush3.bf16.msra.mxu1 %v6217_v6 }
 0xa17   :  { %5856 = vmatprep.subr.bf16.mxu0 %v6273_v37  ;;  %5876 = vmatprep.subr.bf16.mxu1 %v6273_v37 }
 0xa19   :  { %4366 = vmatmul.mubr.bf16.vlgmr.msra.gmra.mxu0 %v4181_v8  ;;  %5853 = vmatmul.mubr.bf16.vlgmr.msra.gmra.mxu1 %v4183_v22  ;;  %v4545_v8 = vadd.s32 4, %v4543_v49 }
 0xa1a   :  { %5857 = vmatpush3.bf16.msra.mxu0 %v6218_v43  ;;  %5872 = vmatprep.mubr.msk.bf16.mxu0 %vm6274_vm11, %v6273_v37 }
 0xa1b   :  { %5858 = vmatprep.subr.bf16.mxu0 %v6273_v37  ;;  %5878 = vmatprep.mubr.msk.bf16.mxu1 %vm6274_vm11, %v6273_v37  ;;  %vm4546_vm6 = vcmp.lt.s32.totalorder %v6941_v57, %v4545_v8  ;;  %v6227_v57 = vld [vmem:[%s8004_s1 + $0xa30] sm:$0xff]  }
 0xa1c   :  { %vm4547_vm13 = vmand %vm4544_vm1, %vm4546_vm6 }
 0xa1e   :  { %5859 = vmatpush3.bf16.msra.mxu0 %v6219_v41 }
 0xa1f   :  { %5860 = vmatprep.subr.bf16.mxu0 %v6273_v37 }
 0xa22   :  { %5861 = vmatpush3.bf16.msra.mxu0 %v6220_v51 }
 0xa23   :  { %5862 = vmatprep.subr.bf16.mxu0 %v6273_v37 }
 0xa26   :  { %5863 = vmatpush3.bf16.msra.mxu0 %v6221_v15 }
 0xa27   :  { %5864 = vmatprep.subr.bf16.mxu0 %v6273_v37 }
 0xa2a   :  { %5865 = vmatpush3.bf16.msra.mxu0 %v6222_v17 }
 0xa2b   :  { %5866 = vmatprep.subr.bf16.mxu0 %v6273_v37 }
 0xa2e   :  { %5867 = vmatpush3.bf16.msra.mxu0 %v6223_v26  ;;  %v6230_v26 = vld [vmem:[%s8004_s1 + $0xa18] sm:$0xff]   ;;  %s6250_s1 = scalar_lea.vmem %s4718_s13, 32 }
 0xa2f   :  { %5868 = vmatprep.subr.bf16.mxu0 %v6273_v37  ;;  %p6251_p0 = scmp.ne.s32.totalorder %s4718_s13, %s6250_s1  ;;  %p6256_p2 = scmp.lt.s32.totalorder %s6250_s1, %s6250_s1 }
 0xa31   :  { %p6257_p3 = por %p6256_p2, %p6255_p1 }
 0xa32   :  { %5869 = vmatpush3.bf16.msra.mxu0 %v6224_v11 }
 0xa33   :  { %5870 = vmatprep.subr.bf16.mxu0 %v6273_v37  ;;  %p6258_p4 = pnand %p6257_p3, %p6251_p0 }
 0xa36   :  { %5871 = vmatpush3.bf16.msra.mxu0 %v6225_v63 }
 0xa39   :  { %5873 = vmatmul.mubr.bf16.vlgmr.msra.gmra.mxu0 %v4433_v35  ;;  %v5091_v35 = vld [vmem:[%s8005_s2 + $0xe0] ss:$0 sm:$0xff] }
 0xab9   :  { %v5502_v29 = vpop.f32.mrf.mxu0  ;;  %v4120_v24 = vpop.f32.mrf.mxu1 }
 0xabb   :  { %v5503_v20 = vpop.f32.mrf.mxu0  ;;  %v5834_v50 = vpop.f32.mrf.mxu1 }
 0xabc   :  { %v5504_v52 = vadd.f32 %v5503_v20, %v5502_v29 }
 0xabd   :  { %v5505_v31 = vpop.f32.mrf.mxu0  ;;  %v4123_v47 = vpop.f32.mrf.mxu1 }
 0xabe   :  { %v4081_v56 = vadd.f32 %v5504_v52, %v5028_v54 }
 0xabf   :  { %v5506_v58 = vpop.f32.mrf.mxu0  ;;  %v5835_v25 = vpop.f32.mrf.mxu1 }
 0xac0   :  { %v4121_v61 = vadd.f32 %v4120_v24, %v4081_v56 }
 0xac2   :  { %v4126_v38 = vmul.f32 %v7467_v0, %v4121_v61  ;;  %v5087_v0 = vld [vmem:[%s8005_s2 + $0xd0] ss:$0 sm:$0xff] }
 0xac4   :  { %v4127_v2 = vadd.f32 %v7480_v9, %v4126_v38 }
 0xad9   :  { %v5533_v30 = vpop.f32.mrf.mxu0  ;;  %v4407_v32 = vpop.f32.mrf.mxu1 }
 0xadb   :  { %v5534_v33 = vpop.f32.mrf.mxu0  ;;  %v5854_v36 = vpop.f32.mrf.mxu1 }
 0xadc   :  { %v5535_v46 = vadd.f32 %v5534_v33, %v5533_v30 }
 0xadd   :  { %v5536_v34 = vpop.f32.mrf.mxu0  ;;  %v4410_v40 = vpop.f32.mrf.mxu1 }
 0xade   :  { %v4368_v55 = vadd.f32 %v5535_v46, %v5053_v27 }
 0xadf   :  { %v5537_v42 = vpop.f32.mrf.mxu0  ;;  %v5855_v44 = vpop.f32.mrf.mxu1 }
 0xae0   :  { %v4408_v59 = vadd.f32 %v4407_v32, %v4368_v55 }
 0xae2   :  { %v4413_v16 = vmul.f32 %v7458_v5, %v4408_v59 }
 0xae4   :  { %v4414_v18 = vadd.f32 %v7473_v7, %v4413_v16 }
 0xae6   :  { %v4415_v5 = vadd.f32 %v4414_v18, %v4127_v2 }
 0xaf9   :  { %v4521_v45 = vpop.f32.mrf.mxu0 }
 0xafa   :  { %v4522_v53 = vadd.f32 %v5078_v13, %v4521_v45 }
 0xafb   :  { %v5874_v6 = vpop.f32.mrf.mxu0 }
 0xafc   :  { %v4527_v4 = vmul.f32 %v7487_v19, %v4522_v53 }
 0xafd   :  { %v4524_v43 = vpop.f32.mrf.mxu0 }
 0xafe   :  { %v4528_v22 = vadd.f32 %v7494_v23, %v4527_v4  ;;  %v5089_v23 = vsel %vm4547_vm13, 1.0, %v6273_v37 }
 0xaff   :  { %v5875_v41 = vpop.f32.mrf.mxu0  ;;  %v4550_v12 = vpack.c.bf16 %v5089_v23, %v5089_v23 }
 0xb00   :  { %v4529_v51 = vadd.f32 %v4528_v22, %v4415_v5 }
 0xb02   :  { %v4535_v7 = vmul.f32 %v5087_v0, %v4529_v51 }
 0xb04   :  { %v4541_v9 = vadd.f32 %v5088_v14, %v4535_v7 }
 0xb06   :  { %v4542_v19 = vmax.f32 %v4541_v9, 0.0 }
 0xb08   :  { %v4551_v15 = vpack.c.bf16 %v4542_v19, %v4542_v19 }
 0xb0a   :  { %v4558_v17 = vsel %vm4556_vm14, %v4551_v15, 0 }
 0xb0b   :  { %5877 = vmatpush3.bf16.msra.mxu1 %v4558_v17 }
 0xb0c   :  { %5882 = vmatprep.subr.bf16.mxu1 %v6273_v37 }
 0xb0e   :  { %5879 = vmatmul.mubr.msk.bf16.vlgmr.msra.gmra.mxu1 %vm4552_vm15, %v4550_v12 }
 0xb0f   :  { %5883 = vmatpush3.bf16.msra.mxu1 %v6226_v48  ;;  %5898 = vmatprep.mubr.msk.bf16.mxu1 %vm6274_vm11, %v6273_v37 }
 0xb10   :  { %5884 = vmatprep.subr.bf16.mxu1 %v6273_v37 }
 0xb13   :  { %5885 = vmatpush3.bf16.msra.mxu1 %v6227_v57 }
 0xb14   :  { %5886 = vmatprep.subr.bf16.mxu1 %v6273_v37 }
 0xb17   :  { %5887 = vmatpush3.bf16.msra.mxu1 %v6228_v1 }
 0xb18   :  { %5888 = vmatprep.subr.bf16.mxu1 %v6273_v37 }
 0xb1b   :  { %5889 = vmatpush3.bf16.msra.mxu1 %v6229_v62 }
 0xb1c   :  { %5890 = vmatprep.subr.bf16.mxu1 %v6273_v37 }
 0xb1f   :  { %5891 = vmatpush3.bf16.msra.mxu1 %v6230_v26 }
 0xb20   :  { %5892 = vmatprep.subr.bf16.mxu1 %v6273_v37 }
 0xb23   :  { %5893 = vmatpush3.bf16.msra.mxu1 %v6231_v3 }
 0xb24   :  { %5894 = vmatprep.subr.bf16.mxu1 %v6273_v37 }
 0xb27   :  { %5895 = vmatpush3.bf16.msra.mxu1 %v6232_v21 }
 0xb28   :  { %5896 = vmatprep.subr.bf16.mxu1 %v6273_v37 }
 0xb2b   :  { %5897 = vmatpush3.bf16.msra.mxu1 %v6233_v28 }
 0xbce   :  { %v4594_v39 = vpop.f32.mrf.mxu1 }
 0xbcf   :  { %v4616_v11 = vpack.c.bf16 %v4594_v39, %v4594_v39 }
 0xbd0   :  { %v5880_v60 = vpop.f32.mrf.mxu1 }
 0xbd1   :  { %5899 = vmatmul.mubr.bf16.vlgmr.msra.gmra.mxu1 %v4616_v11 }
 0xbd2   :  { %v4597_v63 = vpop.f32.mrf.mxu1 }
 0xbd4   :  { %v5881_v10 = vpop.f32.mrf.mxu1 }
 0xc91   :  { %v4704_v29 = vpop.f32.mrf.mxu1 }
 0xc92   :  { %v4705_v24 = vadd.f32 %v5091_v35, %v4704_v29 }
 0xc93   :  { %v5900_v37 = vpop.f32.mrf.mxu1 }
 0xc94   :  { %4710 = vst [vmem:[#allocation2] sm:$0x3] %v4705_v24 }
 0xc95   :  { %v4707_v20 = vpop.f32.mrf.mxu1 }
 0xc96   :  { %6261 = shalt.err (!%p6258_p4)
}
 0xc97   :  { %4720 = dma.vmem_to_hbm [thread:$0]  %s4718_s13, 32, %s8006_s3, [#allocation3]   ;;  %v5901_v50 = vpop.f32.mrf.mxu1 }
 0xc98   :  { %6270 = dma.done.wait [#allocation3], 32  }
 0xc99   :  { %6271 = vsyncadd [#allocation3], 4294967264 }
 0xc9a   :  { %4724 = vsyncpa [#allocation3], 1 }

</bundles_post_ra>
